<compile_context>
chip_gen: v5e
topology: v5e:2x2
jax: 0.10.0
libtpu: 0.0.40
codegen_flags: <defaults>
</compile_context>

<pallas_src>
import math
import functools

import jax
import jax.numpy as jnp
from jax import lax
from jax.experimental import pallas as pl
from jax.experimental.pallas import tpu as pltpu


# ----------------------------- in-kernel helpers -----------------------------

def _layernorm(x, gamma, beta, eps=1e-5):
    # x: (R, E) f32; gamma/beta: (1, E) f32
    mean = jnp.mean(x, axis=-1, keepdims=True)
    var = jnp.mean((x - mean) ** 2, axis=-1, keepdims=True)
    return (x - mean) * lax.rsqrt(var + eps) * gamma + beta


# ------------------------- fused whole-model kernel ---------------------------

def _fused_transformer_kernel(
    x_ref, mask_ref,
    w_qkv_ref, b_qkv_ref, w_ao_ref, b_ao_ref,
    w_ff1_ref, b_ff1_ref, w_ff2_ref, b_ff2_ref,
    g1_ref, be1_ref, g2_ref, be2_ref,
    gf_ref, bf_ref, w_out_ref, b_out_ref,
    o_ref,
    x_sc,
    *, batch, seq, num_heads, head_dim,
):
    layer = pl.program_id(0)
    E = num_heads * head_dim
    scale = 1.0 / math.sqrt(head_dim)

    # Load the (B*S, E) activation into the resident VMEM scratch once.
    @pl.when(layer == 0)
    def _():
        x_sc[...] = x_ref[...]

    x = x_sc[...]                                              # (B*S, E) f32

    # ---- self-attention sublayer (pre-norm) ----
    h = _layernorm(x, g1_ref[0], be1_ref[0])                   # f32
    qkv = jnp.dot(h.astype(jnp.bfloat16), w_qkv_ref[0],
                  preferred_element_type=jnp.float32) + b_qkv_ref[0]   # (B*S, 3E) f32

    # Single bf16 cast of qkv; fold the 1/sqrt(D) attention scale into q here
    # so it rides on a cast that already happens (f32 qkv dies immediately).
    q_all = (qkv[:, 0 * E:1 * E] * scale).astype(jnp.bfloat16)  # (B*S, E) bf16
    k_all = qkv[:, 1 * E:2 * E].astype(jnp.bfloat16)
    v_all = qkv[:, 2 * E:3 * E].astype(jnp.bfloat16)

    # Additive causal-mask bias; broadcasts inside the add (no materialisation).
    mask = mask_ref[...][None, :, :]                           # (1, S, S) f32

    w_ao = w_ao_ref[0]                                         # (E, E) bf16
    attn_proj = None
    # num_heads is small (2); Python unroll is fine.  If H grows >= 8, switch
    # to lax.fori_loop over head slices read from a VMEM qkv scratch instead.
    for hd in range(num_heads):
        sl = slice(hd * head_dim, (hd + 1) * head_dim)          # lane-aligned
        qh = q_all[:, sl].reshape(batch, seq, head_dim)
        kh = k_all[:, sl].reshape(batch, seq, head_dim)
        vh = v_all[:, sl].reshape(batch, seq, head_dim)

        s = jnp.einsum('bqd,bkd->bqk', qh, kh,
                       preferred_element_type=jnp.float32)      # (B,S,S) f32
        s = s + mask
        s = s - jnp.max(s, axis=-1, keepdims=True)
        p = jnp.exp(s)
        p = p * pl.reciprocal(jnp.sum(p, axis=-1, keepdims=True), approx=True)

        oh = jnp.einsum('bqk,bkd->bqd', p.astype(jnp.bfloat16), vh,
                        preferred_element_type=jnp.float32)      # (B,S,D) f32

        # Fold the head concat into the output projection: sum of per-head
        # (B*S, D) @ (D, E) dots against row-slices of w_ao.
        contrib = jnp.dot(
            oh.reshape(batch * seq, head_dim).astype(jnp.bfloat16),
            w_ao[sl, :],
            preferred_element_type=jnp.float32)
        attn_proj = contrib if attn_proj is None else attn_proj + contrib

    x1 = x + attn_proj + b_ao_ref[0]                           # residual 1 (f32)

    # ---- feed-forward sublayer (pre-norm) ----
    h2 = _layernorm(x1, g2_ref[0], be2_ref[0])
    f = jnp.dot(h2.astype(jnp.bfloat16), w_ff1_ref[0],
                preferred_element_type=jnp.float32) + b_ff1_ref[0]
    f = jnp.maximum(f, 0.0)
    f = jnp.dot(f.astype(jnp.bfloat16), w_ff2_ref[0],
                preferred_element_type=jnp.float32) + b_ff2_ref[0]
    x2 = x1 + f                                                # residual 2 (f32)
    x_sc[...] = x2

    # ---- final LayerNorm + vocab projection on the last layer step ----
    @pl.when(layer == pl.num_programs(0) - 1)
    def _():
        hf = _layernorm(x2, gf_ref[...], bf_ref[...])
        o_ref[...] = jnp.dot(hf.astype(jnp.bfloat16), w_out_ref[...],
                             preferred_element_type=jnp.float32) + b_out_ref[...]


# ------------------------------- wrapper ---------------------------------------

def transformer_forward(tokens, params, *, num_heads, causal_mask=True):
    B, S = tokens.shape
    emb = params["embedding"]                                  # (V, E) f32
    E = emb.shape[1]
    H = num_heads
    D = E // H
    assert H * D == E, "embed_dim must be divisible by num_heads"
    L = params["w_qkv"].shape[0]
    V = params["w_out"].shape[1]

    # Glue outside the kernel: token-embedding gather + sinusoidal positions.
    # TODO(synk): embedding gather stays in plain JAX (data-dependent row gather).
    x = emb[tokens] * math.sqrt(E)                             # (B, S, E)
    x = x + positional_encoding(S, E)[None, :, :]
    x = x.reshape(B * S, E).astype(jnp.float32)

    if causal_mask:
        row = jnp.arange(S)[:, None]
        col = jnp.arange(S)[None, :]
        mask = jnp.where(col <= row, 0.0, -1e9).astype(jnp.float32)
    else:
        mask = jnp.zeros((S, S), jnp.float32)

    def const_spec(a):
        nd = a.ndim
        return pl.BlockSpec(a.shape, lambda l, _nd=nd: (0,) * _nd)

    def layer_spec(a):
        nd = a.ndim
        return pl.BlockSpec((1,) + a.shape[1:],
                            lambda l, _nd=nd: (l,) + (0,) * (_nd - 1))

    inputs = [
        x, mask,
        params["w_qkv"], params["b_qkv"], params["w_ao"], params["b_ao"],
        params["w_ff1"], params["b_ff1"], params["w_ff2"], params["b_ff2"],
        params["g1"], params["beta1"], params["g2"], params["beta2"],
        params["final_gamma"], params["final_beta"],
        params["w_out"], params["b_out"],
    ]
    in_specs = ([const_spec(x), const_spec(mask)]
                + [layer_spec(a) for a in inputs[2:14]]
                + [const_spec(a) for a in inputs[14:]])

    kernel = functools.partial(
        _fused_transformer_kernel,
        batch=B, seq=S, num_heads=H, head_dim=D,
    )

    # NOTE: at real model dims (e.g. E=1024, F=4E) the double-buffered per-layer
    # weight slab (~2*2B*(3E^2+E^2+2EF)) exceeds scoped-VMEM defaults and v7x's
    # 64 MiB physical VMEM; split the layer step per-matrix / K-tile and set
    # pltpu.CompilerParams(vmem_limit_bytes=...) before scaling this design up.
    logits = pl.pallas_call(
        kernel,
        out_shape=jax.ShapeDtypeStruct((B * S, V), jnp.float32),
        grid_spec=pltpu.PrefetchScalarGridSpec(
            num_scalar_prefetch=0,
            grid=(L,),                                          # layer axis
            in_specs=in_specs,
            out_specs=pl.BlockSpec((B * S, V), lambda l: (0, 0)),
            scratch_shapes=[pltpu.VMEM((B * S, E), jnp.float32)],
        ),
        compiler_params=pltpu.CompilerParams(
            dimension_semantics=("arbitrary",)),                # sequential over layers
    )(*inputs)
    return logits.reshape(B, S, V)


# ------------------------------- parameter init -------------------------------

def init_params(key, vocab_size, embed_dim, num_heads, num_layers, ff_dim):
    E, F, V, L = embed_dim, ff_dim, vocab_size, num_layers
    ks = jax.random.split(key, 11)

    def rnd(k, shape):
        return 0.02 * jax.random.normal(k, shape, jnp.float32)

    # Matmul weights stored as [in, out] (y = x @ W + b) and cast to bf16 for
    # the MXU-native path; biases / LayerNorm params stay f32.
    return {
        "embedding":   rnd(ks[0], (V, E)),
        "w_qkv":  rnd(ks[1], (L, E, 3 * E)).astype(jnp.bfloat16),
        "b_qkv":  rnd(ks[2], (L, 1, 3 * E)),
        "w_ao":   rnd(ks[3], (L, E, E)).astype(jnp.bfloat16),
        "b_ao":   rnd(ks[4], (L, 1, E)),
        "w_ff1":  rnd(ks[5], (L, E, F)).astype(jnp.bfloat16),
        "b_ff1":  rnd(ks[6], (L, 1, F)),
        "w_ff2":  rnd(ks[7], (L, F, E)).astype(jnp.bfloat16),
        "b_ff2":  rnd(ks[8], (L, 1, E)),
        "g1":     jnp.ones((L, 1, E), jnp.float32),
        "beta1":  jnp.zeros((L, 1, E), jnp.float32),
        "g2":     jnp.ones((L, 1, E), jnp.float32),
        "beta2":  jnp.zeros((L, 1, E), jnp.float32),
        "final_gamma": jnp.ones((1, E), jnp.float32),
        "final_beta":  jnp.zeros((1, E), jnp.float32),
        "w_out":  rnd(ks[9], (E, V)).astype(jnp.bfloat16),
        "b_out":  rnd(ks[10], (1, V)),
    }


def positional_encoding(seq_len, embed_dim):
    position = jnp.arange(seq_len, dtype=jnp.float32)[:, None]
    div_term = jnp.exp(jnp.arange(0, embed_dim, 2, dtype=jnp.float32)
                       * (-math.log(10000.0) / embed_dim))
    pe = jnp.zeros((seq_len, embed_dim), jnp.float32)
    pe = pe.at[:, 0::2].set(jnp.sin(position * div_term))
    pe = pe.at[:, 1::2].set(jnp.cos(position * div_term))
    return pe


# ------------------------------------ main -------------------------------------

if __name__ == "__main__":
    # Lane/sublane-friendly small sizes: E, D, F, V multiples of 128; B*S = 32.
    vocab_size = 128
    embed_dim = 256
    num_heads = 2          # head_dim = 128 -> lane-aligned per-head slices
    num_layers = 2
    ff_dim = 512
    batch = 2
    seq = 16

    key = jax.random.PRNGKey(0)
    pkey, tkey = jax.random.split(key)
    params = init_params(pkey, vocab_size, embed_dim, num_heads,
                         num_layers, ff_dim)
    tokens = jax.random.randint(tkey, (batch, seq), 0, vocab_size, jnp.int32)

    fwd = jax.jit(functools.partial(transformer_forward,
                                    num_heads=num_heads, causal_mask=True))
    logits = fwd(tokens, params)
    jax.block_until_ready(logits)
    assert logits.shape == (batch, seq, vocab_size)
    assert bool(jnp.all(jnp.isfinite(logits)))
    print("KERNEL_OK")
</pallas_src>

<mosaic_0001>
module attributes {stable_mosaic.version = 11 : i64} {
  func.func @_fused_transformer_kernel(%arg0: i32, %arg1: memref<32x256xf32, #tpu.memory_space<vmem>>, %arg2: memref<16x16xf32, #tpu.memory_space<vmem>>, %arg3: memref<1x256x768xbf16, #tpu.memory_space<vmem>>, %arg4: memref<1x1x768xf32, #tpu.memory_space<vmem>>, %arg5: memref<1x256x256xbf16, #tpu.memory_space<vmem>>, %arg6: memref<1x1x256xf32, #tpu.memory_space<vmem>>, %arg7: memref<1x256x512xbf16, #tpu.memory_space<vmem>>, %arg8: memref<1x1x512xf32, #tpu.memory_space<vmem>>, %arg9: memref<1x512x256xbf16, #tpu.memory_space<vmem>>, %arg10: memref<1x1x256xf32, #tpu.memory_space<vmem>>, %arg11: memref<1x1x256xf32, #tpu.memory_space<vmem>>, %arg12: memref<1x1x256xf32, #tpu.memory_space<vmem>>, %arg13: memref<1x1x256xf32, #tpu.memory_space<vmem>>, %arg14: memref<1x1x256xf32, #tpu.memory_space<vmem>>, %arg15: memref<1x256xf32, #tpu.memory_space<vmem>>, %arg16: memref<1x256xf32, #tpu.memory_space<vmem>>, %arg17: memref<256x128xbf16, #tpu.memory_space<vmem>>, %arg18: memref<1x128xf32, #tpu.memory_space<vmem>>, %arg19: memref<32x128xf32, #tpu.memory_space<vmem>>, %arg20: memref<32x256xf32, #tpu.memory_space<vmem>>) attributes {dimension_semantics = [#tpu.dimension_semantics<arbitrary>], iteration_bounds = array<i64: 2>, scalar_prefetch = 0 : i64, scratch_operands = 1 : i64, tpu.core_type = #tpu.core_type<tc>, window_params = [{pipeline_mode = #tpu.pipeline_mode<synchronous>, transform_indices = @transform_0, window_bounds = array<i64: 32, 256>}, {pipeline_mode = #tpu.pipeline_mode<synchronous>, transform_indices = @transform_1, window_bounds = array<i64: 16, 16>}, {transform_indices = @transform_2, window_bounds = array<i64: 1, 256, 768>}, {transform_indices = @transform_3, window_bounds = array<i64: 1, 1, 768>}, {transform_indices = @transform_4, window_bounds = array<i64: 1, 256, 256>}, {transform_indices = @transform_5, window_bounds = array<i64: 1, 1, 256>}, {transform_indices = @transform_6, window_bounds = array<i64: 1, 256, 512>}, {transform_indices = @transform_7, window_bounds = array<i64: 1, 1, 512>}, {transform_indices = @transform_8, window_bounds = array<i64: 1, 512, 256>}, {transform_indices = @transform_9, window_bounds = array<i64: 1, 1, 256>}, {transform_indices = @transform_10, window_bounds = array<i64: 1, 1, 256>}, {transform_indices = @transform_11, window_bounds = array<i64: 1, 1, 256>}, {transform_indices = @transform_12, window_bounds = array<i64: 1, 1, 256>}, {transform_indices = @transform_13, window_bounds = array<i64: 1, 1, 256>}, {pipeline_mode = #tpu.pipeline_mode<synchronous>, transform_indices = @transform_14, window_bounds = array<i64: 1, 256>}, {pipeline_mode = #tpu.pipeline_mode<synchronous>, transform_indices = @transform_15, window_bounds = array<i64: 1, 256>}, {pipeline_mode = #tpu.pipeline_mode<synchronous>, transform_indices = @transform_16, window_bounds = array<i64: 256, 128>}, {pipeline_mode = #tpu.pipeline_mode<synchronous>, transform_indices = @transform_17, window_bounds = array<i64: 1, 128>}, {pipeline_mode = #tpu.pipeline_mode<synchronous>, transform_indices = @transform_18, window_bounds = array<i64: 32, 128>}]} {
    %c0_i32 = arith.constant 0 : i32
    %0 = arith.cmpi eq, %arg0, %c0_i32 : i32
    %1 = arith.extui %0 : i1 to i32
    %c0_i32_0 = arith.constant 0 : i32
    %2 = arith.cmpi ne, %1, %c0_i32_0 : i32
    scf.if %2 {
      %c0_67 = arith.constant 0 : index
      %c0_68 = arith.constant 0 : index
      %155 = vector.load %arg1[%c0_67, %c0_68] : memref<32x256xf32, #tpu.memory_space<vmem>>, vector<32x256xf32>
      %c0_69 = arith.constant 0 : index
      %c0_70 = arith.constant 0 : index
      %156 = vector.load %arg20[%c0_69, %c0_70] : memref<32x256xf32, #tpu.memory_space<vmem>>, vector<32x256xf32>
      tpu.vector_store %arg20[%c0_69, %c0_70], %155 {strides = array<i32>} : memref<32x256xf32, #tpu.memory_space<vmem>>, vector<32x256xf32>,
    } else {
    }
    %c0 = arith.constant 0 : index
    %c0_1 = arith.constant 0 : index
    %3 = vector.load %arg20[%c0, %c0_1] : memref<32x256xf32, #tpu.memory_space<vmem>>, vector<32x256xf32>
    %c0_2 = arith.constant 0 : index
    %c0_3 = arith.constant 0 : index
    %c0_4 = arith.constant 0 : index
    %4 = vector.load %arg11[%c0_2, %c0_3, %c0_4] : memref<1x1x256xf32, #tpu.memory_space<vmem>>, vector<1x1x256xf32>
    %5 = vector.shape_cast %4 : vector<1x1x256xf32> to vector<1x256xf32>
    %c0_5 = arith.constant 0 : index
    %c0_6 = arith.constant 0 : index
    %c0_7 = arith.constant 0 : index
    %6 = vector.load %arg12[%c0_5, %c0_6, %c0_7] : memref<1x1x256xf32, #tpu.memory_space<vmem>>, vector<1x1x256xf32>
    %7 = vector.shape_cast %6 : vector<1x1x256xf32> to vector<1x256xf32>
    %cst = arith.constant dense<0.000000e+00> : vector<32xf32>
    %8 = vector.multi_reduction <add>, %3, %cst [1] : vector<32x256xf32> to vector<32xf32>
    %9 = vector.shape_cast %8 : vector<32xf32> to vector<32x1xf32>
    %cst_8 = arith.constant 2.560000e+02 : f32
    %10 = vector.broadcast %cst_8 : f32 to vector<32x1xf32>
    %11 = arith.divf %9, %10 : vector<32x1xf32>
    %12 = vector.broadcast %11 : vector<32x1xf32> to vector<32x256xf32>
    %13 = arith.subf %3, %12 : vector<32x256xf32>
    %14 = arith.mulf %13, %13 : vector<32x256xf32>
    %cst_9 = arith.constant dense<0.000000e+00> : vector<32xf32>
    %15 = vector.multi_reduction <add>, %14, %cst_9 [1] : vector<32x256xf32> to vector<32xf32>
    %16 = vector.shape_cast %15 : vector<32xf32> to vector<32x1xf32>
    %cst_10 = arith.constant 2.560000e+02 : f32
    %17 = vector.broadcast %cst_10 : f32 to vector<32x1xf32>
    %18 = arith.divf %16, %17 : vector<32x1xf32>
    %19 = vector.broadcast %11 : vector<32x1xf32> to vector<32x256xf32>
    %20 = arith.subf %3, %19 : vector<32x256xf32>
    %cst_11 = arith.constant 9.99999974E-6 : f32
    %21 = vector.broadcast %cst_11 : f32 to vector<32x1xf32>
    %22 = arith.addf %18, %21 : vector<32x1xf32>
    %23 = math.rsqrt %22 : vector<32x1xf32>
    %24 = vector.broadcast %23 : vector<32x1xf32> to vector<32x256xf32>
    %25 = arith.mulf %20, %24 : vector<32x256xf32>
    %26 = vector.broadcast %5 : vector<1x256xf32> to vector<32x256xf32>
    %27 = arith.mulf %25, %26 : vector<32x256xf32>
    %28 = vector.broadcast %7 : vector<1x256xf32> to vector<32x256xf32>
    %29 = arith.addf %27, %28 : vector<32x256xf32>
    %30 = arith.truncf %29 : vector<32x256xf32> to vector<32x256xbf16>
    %c0_12 = arith.constant 0 : index
    %c0_13 = arith.constant 0 : index
    %c0_14 = arith.constant 0 : index
    %31 = vector.load %arg3[%c0_12, %c0_13, %c0_14] : memref<1x256x768xbf16, #tpu.memory_space<vmem>>, vector<1x256x768xbf16>
    %32 = vector.shape_cast %31 : vector<1x256x768xbf16> to vector<256x768xbf16>
    %cst_15 = arith.constant dense<0.000000e+00> : vector<32x768xf32>
    %33 = tpu.matmul %30, %32, %cst_15 {dimension_numbers = #tpu.dot_dimension_numbers<[1], [0], [0], [1], [0, 0, 1, 1], [], []>} : vector<32x256xbf16>, vector<256x768xbf16>, vector<32x768xf32> -> vector<32x768xf32>
    %c0_16 = arith.constant 0 : index
    %c0_17 = arith.constant 0 : index
    %c0_18 = arith.constant 0 : index
    %34 = vector.load %arg4[%c0_16, %c0_17, %c0_18] : memref<1x1x768xf32, #tpu.memory_space<vmem>>, vector<1x1x768xf32>
    %35 = vector.shape_cast %34 : vector<1x1x768xf32> to vector<1x768xf32>
    %36 = vector.broadcast %35 : vector<1x768xf32> to vector<32x768xf32>
    %37 = arith.addf %33, %36 : vector<32x768xf32>
    %38 = vector.extract_strided_slice %37 {offsets = [0, 0], sizes = [32, 256], strides = [1, 1]} : vector<32x768xf32> to vector<32x256xf32>
    %cst_19 = arith.constant 0.0883883461 : f32
    %39 = vector.broadcast %cst_19 : f32 to vector<32x256xf32>
    %40 = arith.mulf %38, %39 : vector<32x256xf32>
    %41 = arith.truncf %40 : vector<32x256xf32> to vector<32x256xbf16>
    %42 = vector.extract_strided_slice %37 {offsets = [0, 256], sizes = [32, 256], strides = [1, 1]} : vector<32x768xf32> to vector<32x256xf32>
    %43 = arith.truncf %42 : vector<32x256xf32> to vector<32x256xbf16>
    %44 = vector.extract_strided_slice %37 {offsets = [0, 512], sizes = [32, 256], strides = [1, 1]} : vector<32x768xf32> to vector<32x256xf32>
    %45 = arith.truncf %44 : vector<32x256xf32> to vector<32x256xbf16>
    %c0_20 = arith.constant 0 : index
    %c0_21 = arith.constant 0 : index
    %46 = vector.load %arg2[%c0_20, %c0_21] : memref<16x16xf32, #tpu.memory_space<vmem>>, vector<16x16xf32>
    %47 = vector.shape_cast %46 : vector<16x16xf32> to vector<1x16x16xf32>
    %c0_22 = arith.constant 0 : index
    %c0_23 = arith.constant 0 : index
    %c0_24 = arith.constant 0 : index
    %48 = vector.load %arg5[%c0_22, %c0_23, %c0_24] : memref<1x256x256xbf16, #tpu.memory_space<vmem>>, vector<1x256x256xbf16>
    %49 = vector.shape_cast %48 : vector<1x256x256xbf16> to vector<256x256xbf16>
    %50 = vector.extract_strided_slice %41 {offsets = [0, 0], sizes = [32, 128], strides = [1, 1]} : vector<32x256xbf16> to vector<32x128xbf16>
    %51 = vector.shape_cast %50 : vector<32x128xbf16> to vector<2x16x128xbf16>
    %52 = vector.extract_strided_slice %43 {offsets = [0, 0], sizes = [32, 128], strides = [1, 1]} : vector<32x256xbf16> to vector<32x128xbf16>
    %53 = vector.shape_cast %52 : vector<32x128xbf16> to vector<2x16x128xbf16>
    %54 = vector.extract_strided_slice %45 {offsets = [0, 0], sizes = [32, 128], strides = [1, 1]} : vector<32x256xbf16> to vector<32x128xbf16>
    %55 = vector.shape_cast %54 : vector<32x128xbf16> to vector<2x16x128xbf16>
    "tpu.trace_start"() <{level = 10 : i32, message = "bqd,bkd->bqk"}> : () -> ()
    %cst_25 = arith.constant dense<0.000000e+00> : vector<2x16x16xf32>
    %56 = tpu.matmul %51, %53, %cst_25 {dimension_numbers = #tpu.dot_dimension_numbers<[2], [2], [1], [1], [0, 0, 0, 1, 1, 1], [0], [0]>} : vector<2x16x128xbf16>, vector<2x16x128xbf16>, vector<2x16x16xf32> -> vector<2x16x16xf32>
    "tpu.trace_stop"() : () -> ()
    %57 = vector.broadcast %47 : vector<1x16x16xf32> to vector<2x16x16xf32>
    %58 = arith.addf %56, %57 : vector<2x16x16xf32>
    %cst_26 = arith.constant dense<0xFF800000> : vector<2x16xf32>
    %59 = vector.multi_reduction <maximumf>, %58, %cst_26 [2] : vector<2x16x16xf32> to vector<2x16xf32>
    %60 = vector.shape_cast %59 : vector<2x16xf32> to vector<2x16x1xf32>
    %61 = vector.broadcast %60 : vector<2x16x1xf32> to vector<2x16x16xf32>
    %62 = arith.subf %58, %61 : vector<2x16x16xf32>
    %63 = math.exp %62 : vector<2x16x16xf32>
    %cst_27 = arith.constant dense<0.000000e+00> : vector<2x16xf32>
    %64 = vector.multi_reduction <add>, %63, %cst_27 [2] : vector<2x16x16xf32> to vector<2x16xf32>
    %65 = vector.shape_cast %64 : vector<2x16xf32> to vector<2x16x1xf32>
    %66 = tpu.reciprocal %65 {approx = true} : vector<2x16x1xf32> -> vector<2x16x1xf32>
    %67 = vector.broadcast %66 : vector<2x16x1xf32> to vector<2x16x16xf32>
    %68 = arith.mulf %63, %67 : vector<2x16x16xf32>
    %69 = arith.truncf %68 : vector<2x16x16xf32> to vector<2x16x16xbf16>
    "tpu.trace_start"() <{level = 10 : i32, message = "bqk,bkd->bqd"}> : () -> ()
    %cst_28 = arith.constant dense<0.000000e+00> : vector<2x16x128xf32>
    %70 = tpu.matmul %69, %55, %cst_28 {dimension_numbers = #tpu.dot_dimension_numbers<[2], [1], [1], [2], [0, 0, 0, 1, 1, 2], [0], [0]>} : vector<2x16x16xbf16>, vector<2x16x128xbf16>, vector<2x16x128xf32> -> vector<2x16x128xf32>
    "tpu.trace_stop"() : () -> ()
    %71 = vector.shape_cast %70 : vector<2x16x128xf32> to vector<32x128xf32>
    %72 = arith.truncf %71 : vector<32x128xf32> to vector<32x128xbf16>
    %73 = vector.extract_strided_slice %49 {offsets = [0, 0], sizes = [128, 256], strides = [1, 1]} : vector<256x256xbf16> to vector<128x256xbf16>
    %cst_29 = arith.constant dense<0.000000e+00> : vector<32x256xf32>
    %74 = tpu.matmul %72, %73, %cst_29 {dimension_numbers = #tpu.dot_dimension_numbers<[1], [0], [0], [1], [0, 0, 1, 1], [], []>} : vector<32x128xbf16>, vector<128x256xbf16>, vector<32x256xf32> -> vector<32x256xf32>
    %75 = vector.extract_strided_slice %41 {offsets = [0, 128], sizes = [32, 128], strides = [1, 1]} : vector<32x256xbf16> to vector<32x128xbf16>
    %76 = vector.shape_cast %75 : vector<32x128xbf16> to vector<2x16x128xbf16>
    %77 = vector.extract_strided_slice %43 {offsets = [0, 128], sizes = [32, 128], strides = [1, 1]} : vector<32x256xbf16> to vector<32x128xbf16>
    %78 = vector.shape_cast %77 : vector<32x128xbf16> to vector<2x16x128xbf16>
    %79 = vector.extract_strided_slice %45 {offsets = [0, 128], sizes = [32, 128], strides = [1, 1]} : vector<32x256xbf16> to vector<32x128xbf16>
    %80 = vector.shape_cast %79 : vector<32x128xbf16> to vector<2x16x128xbf16>
    "tpu.trace_start"() <{level = 10 : i32, message = "bqd,bkd->bqk"}> : () -> ()
    %cst_30 = arith.constant dense<0.000000e+00> : vector<2x16x16xf32>
    %81 = tpu.matmul %76, %78, %cst_30 {dimension_numbers = #tpu.dot_dimension_numbers<[2], [2], [1], [1], [0, 0, 0, 1, 1, 1], [0], [0]>} : vector<2x16x128xbf16>, vector<2x16x128xbf16>, vector<2x16x16xf32> -> vector<2x16x16xf32>
    "tpu.trace_stop"() : () -> ()
    %82 = vector.broadcast %47 : vector<1x16x16xf32> to vector<2x16x16xf32>
    %83 = arith.addf %81, %82 : vector<2x16x16xf32>
    %cst_31 = arith.constant dense<0xFF800000> : vector<2x16xf32>
    %84 = vector.multi_reduction <maximumf>, %83, %cst_31 [2] : vector<2x16x16xf32> to vector<2x16xf32>
    %85 = vector.shape_cast %84 : vector<2x16xf32> to vector<2x16x1xf32>
    %86 = vector.broadcast %85 : vector<2x16x1xf32> to vector<2x16x16xf32>
    %87 = arith.subf %83, %86 : vector<2x16x16xf32>
    %88 = math.exp %87 : vector<2x16x16xf32>
    %cst_32 = arith.constant dense<0.000000e+00> : vector<2x16xf32>
    %89 = vector.multi_reduction <add>, %88, %cst_32 [2] : vector<2x16x16xf32> to vector<2x16xf32>
    %90 = vector.shape_cast %89 : vector<2x16xf32> to vector<2x16x1xf32>
    %91 = tpu.reciprocal %90 {approx = true} : vector<2x16x1xf32> -> vector<2x16x1xf32>
    %92 = vector.broadcast %91 : vector<2x16x1xf32> to vector<2x16x16xf32>
    %93 = arith.mulf %88, %92 : vector<2x16x16xf32>
    %94 = arith.truncf %93 : vector<2x16x16xf32> to vector<2x16x16xbf16>
    "tpu.trace_start"() <{level = 10 : i32, message = "bqk,bkd->bqd"}> : () -> ()
    %cst_33 = arith.constant dense<0.000000e+00> : vector<2x16x128xf32>
    %95 = tpu.matmul %94, %80, %cst_33 {dimension_numbers = #tpu.dot_dimension_numbers<[2], [1], [1], [2], [0, 0, 0, 1, 1, 2], [0], [0]>} : vector<2x16x16xbf16>, vector<2x16x128xbf16>, vector<2x16x128xf32> -> vector<2x16x128xf32>
    "tpu.trace_stop"() : () -> ()
    %96 = vector.shape_cast %95 : vector<2x16x128xf32> to vector<32x128xf32>
    %97 = arith.truncf %96 : vector<32x128xf32> to vector<32x128xbf16>
    %98 = vector.extract_strided_slice %49 {offsets = [128, 0], sizes = [128, 256], strides = [1, 1]} : vector<256x256xbf16> to vector<128x256xbf16>
    %cst_34 = arith.constant dense<0.000000e+00> : vector<32x256xf32>
    %99 = tpu.matmul %97, %98, %cst_34 {dimension_numbers = #tpu.dot_dimension_numbers<[1], [0], [0], [1], [0, 0, 1, 1], [], []>} : vector<32x128xbf16>, vector<128x256xbf16>, vector<32x256xf32> -> vector<32x256xf32>
    %100 = arith.addf %74, %99 : vector<32x256xf32>
    %101 = arith.addf %3, %100 : vector<32x256xf32>
    %c0_35 = arith.constant 0 : index
    %c0_36 = arith.constant 0 : index
    %c0_37 = arith.constant 0 : index
    %102 = vector.load %arg6[%c0_35, %c0_36, %c0_37] : memref<1x1x256xf32, #tpu.memory_space<vmem>>, vector<1x1x256xf32>
    %103 = vector.shape_cast %102 : vector<1x1x256xf32> to vector<1x256xf32>
    %104 = vector.broadcast %103 : vector<1x256xf32> to vector<32x256xf32>
    %105 = arith.addf %101, %104 : vector<32x256xf32>
    %c0_38 = arith.constant 0 : index
    %c0_39 = arith.constant 0 : index
    %c0_40 = arith.constant 0 : index
    %106 = vector.load %arg13[%c0_38, %c0_39, %c0_40] : memref<1x1x256xf32, #tpu.memory_space<vmem>>, vector<1x1x256xf32>
    %107 = vector.shape_cast %106 : vector<1x1x256xf32> to vector<1x256xf32>
    %c0_41 = arith.constant 0 : index
    %c0_42 = arith.constant 0 : index
    %c0_43 = arith.constant 0 : index
    %108 = vector.load %arg14[%c0_41, %c0_42, %c0_43] : memref<1x1x256xf32, #tpu.memory_space<vmem>>, vector<1x1x256xf32>
    %109 = vector.shape_cast %108 : vector<1x1x256xf32> to vector<1x256xf32>
    %cst_44 = arith.constant dense<0.000000e+00> : vector<32xf32>
    %110 = vector.multi_reduction <add>, %105, %cst_44 [1] : vector<32x256xf32> to vector<32xf32>
    %111 = vector.shape_cast %110 : vector<32xf32> to vector<32x1xf32>
    %cst_45 = arith.constant 2.560000e+02 : f32
    %112 = vector.broadcast %cst_45 : f32 to vector<32x1xf32>
    %113 = arith.divf %111, %112 : vector<32x1xf32>
    %114 = vector.broadcast %113 : vector<32x1xf32> to vector<32x256xf32>
    %115 = arith.subf %105, %114 : vector<32x256xf32>
    %116 = arith.mulf %115, %115 : vector<32x256xf32>
    %cst_46 = arith.constant dense<0.000000e+00> : vector<32xf32>
    %117 = vector.multi_reduction <add>, %116, %cst_46 [1] : vector<32x256xf32> to vector<32xf32>
    %118 = vector.shape_cast %117 : vector<32xf32> to vector<32x1xf32>
    %cst_47 = arith.constant 2.560000e+02 : f32
    %119 = vector.broadcast %cst_47 : f32 to vector<32x1xf32>
    %120 = arith.divf %118, %119 : vector<32x1xf32>
    %121 = vector.broadcast %113 : vector<32x1xf32> to vector<32x256xf32>
    %122 = arith.subf %105, %121 : vector<32x256xf32>
    %cst_48 = arith.constant 9.99999974E-6 : f32
    %123 = vector.broadcast %cst_48 : f32 to vector<32x1xf32>
    %124 = arith.addf %120, %123 : vector<32x1xf32>
    %125 = math.rsqrt %124 : vector<32x1xf32>
    %126 = vector.broadcast %125 : vector<32x1xf32> to vector<32x256xf32>
    %127 = arith.mulf %122, %126 : vector<32x256xf32>
    %128 = vector.broadcast %107 : vector<1x256xf32> to vector<32x256xf32>
    %129 = arith.mulf %127, %128 : vector<32x256xf32>
    %130 = vector.broadcast %109 : vector<1x256xf32> to vector<32x256xf32>
    %131 = arith.addf %129, %130 : vector<32x256xf32>
    %132 = arith.truncf %131 : vector<32x256xf32> to vector<32x256xbf16>
    %c0_49 = arith.constant 0 : index
    %c0_50 = arith.constant 0 : index
    %c0_51 = arith.constant 0 : index
    %133 = vector.load %arg7[%c0_49, %c0_50, %c0_51] : memref<1x256x512xbf16, #tpu.memory_space<vmem>>, vector<1x256x512xbf16>
    %134 = vector.shape_cast %133 : vector<1x256x512xbf16> to vector<256x512xbf16>
    %cst_52 = arith.constant dense<0.000000e+00> : vector<32x512xf32>
    %135 = tpu.matmul %132, %134, %cst_52 {dimension_numbers = #tpu.dot_dimension_numbers<[1], [0], [0], [1], [0, 0, 1, 1], [], []>} : vector<32x256xbf16>, vector<256x512xbf16>, vector<32x512xf32> -> vector<32x512xf32>
    %c0_53 = arith.constant 0 : index
    %c0_54 = arith.constant 0 : index
    %c0_55 = arith.constant 0 : index
    %136 = vector.load %arg8[%c0_53, %c0_54, %c0_55] : memref<1x1x512xf32, #tpu.memory_space<vmem>>, vector<1x1x512xf32>
    %137 = vector.shape_cast %136 : vector<1x1x512xf32> to vector<1x512xf32>
    %138 = vector.broadcast %137 : vector<1x512xf32> to vector<32x512xf32>
    %139 = arith.addf %135, %138 : vector<32x512xf32>
    %cst_56 = arith.constant 0.000000e+00 : f32
    %140 = vector.broadcast %cst_56 : f32 to vector<32x512xf32>
    %141 = arith.maximumf %139, %140 : vector<32x512xf32>
    %142 = arith.truncf %141 : vector<32x512xf32> to vector<32x512xbf16>
    %c0_57 = arith.constant 0 : index
    %c0_58 = arith.constant 0 : index
    %c0_59 = arith.constant 0 : index
    %143 = vector.load %arg9[%c0_57, %c0_58, %c0_59] : memref<1x512x256xbf16, #tpu.memory_space<vmem>>, vector<1x512x256xbf16>
    %144 = vector.shape_cast %143 : vector<1x512x256xbf16> to vector<512x256xbf16>
    %cst_60 = arith.constant dense<0.000000e+00> : vector<32x256xf32>
    %145 = tpu.matmul %142, %144, %cst_60 {dimension_numbers = #tpu.dot_dimension_numbers<[1], [0], [0], [1], [0, 0, 1, 1], [], []>} : vector<32x512xbf16>, vector<512x256xbf16>, vector<32x256xf32> -> vector<32x256xf32>
    %c0_61 = arith.constant 0 : index
    %c0_62 = arith.constant 0 : index
    %c0_63 = arith.constant 0 : index
    %146 = vector.load %arg10[%c0_61, %c0_62, %c0_63] : memref<1x1x256xf32, #tpu.memory_space<vmem>>, vector<1x1x256xf32>
    %147 = vector.shape_cast %146 : vector<1x1x256xf32> to vector<1x256xf32>
    %148 = vector.broadcast %147 : vector<1x256xf32> to vector<32x256xf32>
    %149 = arith.addf %145, %148 : vector<32x256xf32>
    %150 = arith.addf %105, %149 : vector<32x256xf32>
    %c0_64 = arith.constant 0 : index
    %c0_65 = arith.constant 0 : index
    %151 = vector.load %arg20[%c0_64, %c0_65] : memref<32x256xf32, #tpu.memory_space<vmem>>, vector<32x256xf32>
    tpu.vector_store %arg20[%c0_64, %c0_65], %150 {strides = array<i32>} : memref<32x256xf32, #tpu.memory_space<vmem>>, vector<32x256xf32>,
    %c1_i32 = arith.constant 1 : i32
    %152 = arith.cmpi eq, %arg0, %c1_i32 : i32
    %153 = arith.extui %152 : i1 to i32
    %c0_i32_66 = arith.constant 0 : i32
    %154 = arith.cmpi ne, %153, %c0_i32_66 : i32
    scf.if %154 {
      %c0_67 = arith.constant 0 : index
      %c0_68 = arith.constant 0 : index
      %155 = vector.load %arg15[%c0_67, %c0_68] : memref<1x256xf32, #tpu.memory_space<vmem>>, vector<1x256xf32>
      %c0_69 = arith.constant 0 : index
      %c0_70 = arith.constant 0 : index
      %156 = vector.load %arg16[%c0_69, %c0_70] : memref<1x256xf32, #tpu.memory_space<vmem>>, vector<1x256xf32>
      %cst_71 = arith.constant dense<0.000000e+00> : vector<32xf32>
      %157 = vector.multi_reduction <add>, %150, %cst_71 [1] : vector<32x256xf32> to vector<32xf32>
      %158 = vector.shape_cast %157 : vector<32xf32> to vector<32x1xf32>
      %cst_72 = arith.constant 2.560000e+02 : f32
      %159 = vector.broadcast %cst_72 : f32 to vector<32x1xf32>
      %160 = arith.divf %158, %159 : vector<32x1xf32>
      %161 = vector.broadcast %160 : vector<32x1xf32> to vector<32x256xf32>
      %162 = arith.subf %150, %161 : vector<32x256xf32>
      %163 = arith.mulf %162, %162 : vector<32x256xf32>
      %cst_73 = arith.constant dense<0.000000e+00> : vector<32xf32>
      %164 = vector.multi_reduction <add>, %163, %cst_73 [1] : vector<32x256xf32> to vector<32xf32>
      %165 = vector.shape_cast %164 : vector<32xf32> to vector<32x1xf32>
      %cst_74 = arith.constant 2.560000e+02 : f32
      %166 = vector.broadcast %cst_74 : f32 to vector<32x1xf32>
      %167 = arith.divf %165, %166 : vector<32x1xf32>
      %168 = vector.broadcast %160 : vector<32x1xf32> to vector<32x256xf32>
      %169 = arith.subf %150, %168 : vector<32x256xf32>
      %cst_75 = arith.constant 9.99999974E-6 : f32
      %170 = vector.broadcast %cst_75 : f32 to vector<32x1xf32>
      %171 = arith.addf %167, %170 : vector<32x1xf32>
      %172 = math.rsqrt %171 : vector<32x1xf32>
      %173 = vector.broadcast %172 : vector<32x1xf32> to vector<32x256xf32>
      %174 = arith.mulf %169, %173 : vector<32x256xf32>
      %175 = vector.broadcast %155 : vector<1x256xf32> to vector<32x256xf32>
      %176 = arith.mulf %174, %175 : vector<32x256xf32>
      %177 = vector.broadcast %156 : vector<1x256xf32> to vector<32x256xf32>
      %178 = arith.addf %176, %177 : vector<32x256xf32>
      %179 = arith.truncf %178 : vector<32x256xf32> to vector<32x256xbf16>
      %c0_76 = arith.constant 0 : index
      %c0_77 = arith.constant 0 : index
      %180 = vector.load %arg17[%c0_76, %c0_77] : memref<256x128xbf16, #tpu.memory_space<vmem>>, vector<256x128xbf16>
      %cst_78 = arith.constant dense<0.000000e+00> : vector<32x128xf32>
      %181 = tpu.matmul %179, %180, %cst_78 {dimension_numbers = #tpu.dot_dimension_numbers<[1], [0], [0], [1], [0, 0, 1, 1], [], []>} : vector<32x256xbf16>, vector<256x128xbf16>, vector<32x128xf32> -> vector<32x128xf32>
      %c0_79 = arith.constant 0 : index
      %c0_80 = arith.constant 0 : index
      %182 = vector.load %arg18[%c0_79, %c0_80] : memref<1x128xf32, #tpu.memory_space<vmem>>, vector<1x128xf32>
      %183 = vector.broadcast %182 : vector<1x128xf32> to vector<32x128xf32>
      %184 = arith.addf %181, %183 : vector<32x128xf32>
      %c0_81 = arith.constant 0 : index
      %c0_82 = arith.constant 0 : index
      %185 = vector.load %arg19[%c0_81, %c0_82] : memref<32x128xf32, #tpu.memory_space<vmem>>, vector<32x128xf32>
      tpu.vector_store %arg19[%c0_81, %c0_82], %184 {strides = array<i32>} : memref<32x128xf32, #tpu.memory_space<vmem>>, vector<32x128xf32>,
    } else {
    }
    return
  }
  func.func @transform_0(%arg0: i32) -> (i32, i32) {
    %c0_i32 = arith.constant 0 : i32
    %c0_i32_0 = arith.constant 0 : i32
    %c0_i32_1 = arith.constant 0 : i32
    return %c0_i32, %c0_i32_0 : i32, i32
  }
  func.func @transform_1(%arg0: i32) -> (i32, i32) {
    %c0_i32 = arith.constant 0 : i32
    %c0_i32_0 = arith.constant 0 : i32
    %c0_i32_1 = arith.constant 0 : i32
    return %c0_i32, %c0_i32_0 : i32, i32
  }
  func.func @transform_2(%arg0: i32) -> (i32, i32, i32) {
    %c0_i32 = arith.constant 0 : i32
    %c0_i32_0 = arith.constant 0 : i32
    %c0_i32_1 = arith.constant 0 : i32
    return %arg0, %c0_i32, %c0_i32_0 : i32, i32, i32
  }
  func.func @transform_3(%arg0: i32) -> (i32, i32, i32) {
    %c0_i32 = arith.constant 0 : i32
    %c0_i32_0 = arith.constant 0 : i32
    %c0_i32_1 = arith.constant 0 : i32
    return %arg0, %c0_i32, %c0_i32_0 : i32, i32, i32
  }
  func.func @transform_4(%arg0: i32) -> (i32, i32, i32) {
    %c0_i32 = arith.constant 0 : i32
    %c0_i32_0 = arith.constant 0 : i32
    %c0_i32_1 = arith.constant 0 : i32
    return %arg0, %c0_i32, %c0_i32_0 : i32, i32, i32
  }
  func.func @transform_5(%arg0: i32) -> (i32, i32, i32) {
    %c0_i32 = arith.constant 0 : i32
    %c0_i32_0 = arith.constant 0 : i32
    %c0_i32_1 = arith.constant 0 : i32
    return %arg0, %c0_i32, %c0_i32_0 : i32, i32, i32
  }
  func.func @transform_6(%arg0: i32) -> (i32, i32, i32) {
    %c0_i32 = arith.constant 0 : i32
    %c0_i32_0 = arith.constant 0 : i32
    %c0_i32_1 = arith.constant 0 : i32
    return %arg0, %c0_i32, %c0_i32_0 : i32, i32, i32
  }
  func.func @transform_7(%arg0: i32) -> (i32, i32, i32) {
    %c0_i32 = arith.constant 0 : i32
    %c0_i32_0 = arith.constant 0 : i32
    %c0_i32_1 = arith.constant 0 : i32
    return %arg0, %c0_i32, %c0_i32_0 : i32, i32, i32
  }
  func.func @transform_8(%arg0: i32) -> (i32, i32, i32) {
    %c0_i32 = arith.constant 0 : i32
    %c0_i32_0 = arith.constant 0 : i32
    %c0_i32_1 = arith.constant 0 : i32
    return %arg0, %c0_i32, %c0_i32_0 : i32, i32, i32
  }
  func.func @transform_9(%arg0: i32) -> (i32, i32, i32) {
    %c0_i32 = arith.constant 0 : i32
    %c0_i32_0 = arith.constant 0 : i32
    %c0_i32_1 = arith.constant 0 : i32
    return %arg0, %c0_i32, %c0_i32_0 : i32, i32, i32
  }
  func.func @transform_10(%arg0: i32) -> (i32, i32, i32) {
    %c0_i32 = arith.constant 0 : i32
    %c0_i32_0 = arith.constant 0 : i32
    %c0_i32_1 = arith.constant 0 : i32
    return %arg0, %c0_i32, %c0_i32_0 : i32, i32, i32
  }
  func.func @transform_11(%arg0: i32) -> (i32, i32, i32) {
    %c0_i32 = arith.constant 0 : i32
    %c0_i32_0 = arith.constant 0 : i32
    %c0_i32_1 = arith.constant 0 : i32
    return %arg0, %c0_i32, %c0_i32_0 : i32, i32, i32
  }
  func.func @transform_12(%arg0: i32) -> (i32, i32, i32) {
    %c0_i32 = arith.constant 0 : i32
    %c0_i32_0 = arith.constant 0 : i32
    %c0_i32_1 = arith.constant 0 : i32
    return %arg0, %c0_i32, %c0_i32_0 : i32, i32, i32
  }
  func.func @transform_13(%arg0: i32) -> (i32, i32, i32) {
    %c0_i32 = arith.constant 0 : i32
    %c0_i32_0 = arith.constant 0 : i32
    %c0_i32_1 = arith.constant 0 : i32
    return %arg0, %c0_i32, %c0_i32_0 : i32, i32, i32
  }
  func.func @transform_14(%arg0: i32) -> (i32, i32) {
    %c0_i32 = arith.constant 0 : i32
    %c0_i32_0 = arith.constant 0 : i32
    %c0_i32_1 = arith.constant 0 : i32
    return %c0_i32, %c0_i32_0 : i32, i32
  }
  func.func @transform_15(%arg0: i32) -> (i32, i32) {
    %c0_i32 = arith.constant 0 : i32
    %c0_i32_0 = arith.constant 0 : i32
    %c0_i32_1 = arith.constant 0 : i32
    return %c0_i32, %c0_i32_0 : i32, i32
  }
  func.func @transform_16(%arg0: i32) -> (i32, i32) {
    %c0_i32 = arith.constant 0 : i32
    %c0_i32_0 = arith.constant 0 : i32
    %c0_i32_1 = arith.constant 0 : i32
    return %c0_i32, %c0_i32_0 : i32, i32
  }
  func.func @transform_17(%arg0: i32) -> (i32, i32) {
    %c0_i32 = arith.constant 0 : i32
    %c0_i32_0 = arith.constant 0 : i32
    %c0_i32_1 = arith.constant 0 : i32
    return %c0_i32, %c0_i32_0 : i32, i32
  }
  func.func @transform_18(%arg0: i32) -> (i32, i32) {
    %c0_i32 = arith.constant 0 : i32
    %c0_i32_0 = arith.constant 0 : i32
    %c0_i32_1 = arith.constant 0 : i32
    return %c0_i32, %c0_i32_0 : i32, i32
  }
}

</mosaic_0001>

<bundles_post_ra>
// kernel: transformer_forward.1
= control target key start
LH: loop header
LB: loop body
LE: loop exit
PB: predicated region body
PF: predicated region fallthrough
CT: control target
= control target key end

     0   :  { %s7649_s0 = inlined_call_operand.vmem [shape: f32[32,256], index: 0, kind: input, shape index: {}]   ;;  %s7650_s1 = inlined_call_operand.vmem [shape: f32[16,16], index: 1, kind: input, shape index: {}]   ;;  %s7651_s2 = inlined_call_operand.hbm [shape: bf16[2,256,768], index: 2, kind: input, shape index: {}]   ;;  %s7652_s3 = inlined_call_operand.vmem [shape: f32[2,1,768], index: 3, kind: input, shape index: {}]   ;;  %s7653_s4 = inlined_call_operand.vmem [shape: bf16[2,256,256], index: 4, kind: input, shape index: {}]   ;;  %s7654_s5 = inlined_call_operand.vmem [shape: f32[2,1,256], index: 5, kind: input, shape index: {}]   ;;  %s7655_s6 = inlined_call_operand.vmem [shape: bf16[2,256,512], index: 6, kind: input, shape index: {}]   ;;  %s7656_s7 = inlined_call_operand.vmem [shape: f32[2,1,512], index: 7, kind: input, shape index: {}]   ;;  %s7657_s8 = inlined_call_operand.hbm [shape: bf16[2,512,256], index: 8, kind: input, shape index: {}]   ;;  %s7658_s9 = inlined_call_operand.vmem [shape: f32[2,1,256], index: 9, kind: input, shape index: {}]   ;;  %s7659_s10 = inlined_call_operand.vmem [shape: f32[2,1,256], index: 10, kind: input, shape index: {}]   ;;  %s7660_s11 = inlined_call_operand.vmem [shape: f32[2,1,256], index: 11, kind: input, shape index: {}]   ;;  %s7661_s12 = inlined_call_operand.hbm [shape: f32[2,1,256], index: 12, kind: input, shape index: {}]   ;;  %s7662_s13 = inlined_call_operand.hbm [shape: f32[2,1,256], index: 13, kind: input, shape index: {}]   ;;  %s7663_s14 = inlined_call_operand.hbm [shape: f32[1,256], index: 14, kind: input, shape index: {}]   ;;  %s7664_s15 = inlined_call_operand.hbm [shape: f32[1,256], index: 15, kind: input, shape index: {}]   ;;  %s7665_s16 = inlined_call_operand.vmem [shape: bf16[256,128], index: 16, kind: input, shape index: {}]   ;;  %s7666_s17 = inlined_call_operand.vmem [shape: f32[1,128], index: 17, kind: input, shape index: {}]   ;;  %s7667_s18 = inlined_call_operand.hbm [shape: f32[32,128], index: 18, kind: output, shape index: {}]  }
   0x1   :  { %7678 = sst [smem:[#allocation25_spill]] %s7649_s0 }
   0x2   :  { %7679 = sst [smem:[#allocation26_spill]] %s7650_s1 }
   0x3   :  { %7680 = sst [smem:[#allocation27_spill]] %s7651_s2 }
   0x4   :  { %7681 = sst [smem:[#allocation28_spill]] %s7652_s3 }
   0x5   :  { %7682 = sst [smem:[#allocation29_spill]] %s7653_s4 }
   0x6   :  { %7683 = sst [smem:[#allocation30_spill]] %s7655_s6 }
   0x7   :  { %7684 = sst [smem:[#allocation31_spill]] %s7656_s7 }
   0x8   :  { %7685 = sst [smem:[#allocation32_spill]] %s7657_s8 }
   0x9   :  { %7686 = sst [smem:[#allocation33_spill]] %s7658_s9 }
   0xa   :  { %7687 = sst [smem:[#allocation34_spill]] %s7659_s10 }
   0xb   :  { %7688 = sst [smem:[#allocation35_spill]] %s7660_s11 }
   0xc   :  { %7689 = sst [smem:[#allocation36_spill]] %s7661_s12 }
   0xd   :  { %7690 = sst [smem:[#allocation37_spill]] %s7662_s13 }
   0xe   :  { %7691 = sst [smem:[#allocation38_spill]] %s7663_s14 }
   0xf   :  { %7692 = sst [smem:[#allocation39_spill]] %s7664_s15 }
  0x10   :  { %7693 = sst [smem:[#allocation40_spill]] %s7665_s16 }
  0x11   :  { %7694 = sst [smem:[#allocation41_spill]] %s7666_s17 }
  0x12   :  { %7695 = sst [smem:[#allocation42_spill]] %s7667_s18 }
  0x13   :  { %23 = vsyncpa [#allocation4], 0 }
  0x14   :  { %25 = vsyncpa [#allocation4 + $0x1], 0 }
  0x15   :  { %26 = vsyncpa [#allocation7], 0 }
  0x16   :  { %28 = vsyncpa [#allocation7 + $0x1], 0 }
  0x17   :  { %29 = vsyncpa [#allocation10], 0 }
  0x18   :  { %31 = vsyncpa [#allocation10 + $0x1], 0 }
  0x19   :  { %32 = vsyncpa [#allocation13], 0 }
  0x1a   :  { %33 = vsyncpa [#allocation5], 0  ;;  %s6245_s27 = smov 0   ;;  %s6247_s28 = smov 0  }
  0x1b   :  { %s6249_s29 = smov 0   ;;  %s6251_s30 = smov 0  }
  0x1c LB: > { %7696 = sst [smem:[#allocation21_spill]] %s6130_s28  ;;  %s6264_s0 = sadd.s32 4294967295, %s6138_s30   ;;  %s6138_s30 = sphi %s6251_s30, %s7730_s30   ;;  %s6134_s29 = sphi %s6249_s29, %s7733_s29   ;;  %s6130_s28 = sphi %s6247_s28, %s7732_s28   ;;  %s6126_s27 = sphi %s6245_s27, %s7731_s27  }
  0x1d   : > { %7697 = sst [smem:[#allocation22_spill]] %s6134_s29  ;;  %s6267_s19 = sadd.s32 1, %s6138_s30  }
  0x1e   : > { %7698 = sst [smem:[#allocation23_spill]] %s6267_s19  ;;  %s85_s1 = ssub.s32 %s6138_s30, %s6267_s19 }
  0x1f   : > { %s88_s20 = sadd.s32 1, %s6134_s29  ;;  %p86_p0 = scmp.eq.s32.totalorder %s85_s1, 0 }
  0x20   : > { %p95_p1 = scmp.ne.s32.totalorder %s6134_s29, %s6130_s28  ;;  %p96_p2 = scmp.eq.s32.totalorder %s6138_s30, 0 }
  0x21   : > { %p101_p3 = scmp.ne.s32.totalorder %s6130_s28, %s6126_s27  ;;  %p102_p5 = scmp.eq.s32.totalorder %s6264_s0, 0 }
  0x22   : > { %s6277_s21 = scalar_select %p86_p0, %s6134_s29, %s88_s20  }
  0x23   : > { %p6279_p4 = por %p96_p2, %p95_p1  ;;  %p4300_p6 = scmp.ge.s32.totalorder %s6138_s30, 1 }
  0x24   : > { %7699 = sst [smem:[#allocation24_spill]] %s6277_s21  ;;  %p503_p7 = scmp.lt.s32.totalorder %s6138_s30, 3 }
  0x25   : > { %p6288_p8 = por %p102_p5, %p101_p3  ;;  %p4301_p9 = scmp.ne.s32.totalorder %s6264_s0, 0 }
  0x26   : > { %p6293_p10 = pnand %p4300_p6, %p503_p7  ;;  %s7703_s14 = sld [smem:[#allocation38_spill]] }
  0x27   : > { %s6140_s27 = smov [#allocation11]   ;;  %p5762_p13 = scmp.lt.s32.totalorder %s6138_s30, 2 }
  0x28   : > { %p5740_p11 = pneg %p6293_p10  ;;  %s523_s1 = sshll.u32 %s6140_s27, 4  ;;  %s524_s1 = int_to_ptr.vmem [resolvable:$true] %s523_s1 }
  0x29   : > { %s6310_s21 = sand.u32 1, %s6134_s29   ;;  %s7675_s24 = sand.u32 1, %s6138_s30  }
  0x2a   : > { %p6304_p12 = pnand %p5740_p11, %p102_p5  ;;  %p6315_p0 = pnand %p5762_p13, %p6279_p4 }
  0x2b   : > { %s4305_s27 = sshll.u32 %s6310_s21, 9  ;;  %s7706_s8 = sld [smem:[#allocation32_spill]] }
  0x2c   : > { %s521_s26 = sshll.u32 %s7703_s14, 4  ;;  %s5425_s14 = sshll.u32 %s6138_s30, 9  ;;  %s522_s26 = int_to_ptr.hbm [resolvable:$true] %s521_s26 }
  0x2d   : > { %5743 = dma.hbm_to_vmem [thread:$0]  (!%p6304_p12), %s522_s26, 32, %s524_s1, [#allocation10]  }
  0x2e   : > { %s615_s29 = scalar_lea.vmem [#allocation6], %s4305_s27  ;;  %s6328_s22 = scalar_lea.sflag [#allocation7], %s7675_s24 }
  0x2f   : > { %s623_s11 = sshll.u32 %s615_s29, 4  ;;  %p5910_p2 = pneg %p6315_p0  ;;  %s624_s11 = int_to_ptr.vmem [resolvable:$true] %s623_s11 }
  0x31   : > { %s620_s17 = scalar_lea.hbm %s7706_s8, %s5425_s14 }
  0x32   : > { %s621_s16 = sshll.u32 %s620_s17, 4  ;;  %s5913_s17 = scalar_lea.hbm %s7706_s8, 1024  ;;  %s622_s16 = int_to_ptr.hbm [resolvable:$true] %s621_s16 }
  0x33   : > { %s5906_s10 = sshra.s32 %s622_s16, 4  ;;  %s5907_s10 = int_to_ptr.hbm [resolvable:$true] %s5906_s10 }
  0x34   : > { %s5908_s9 = scalar_lea.hbm %s5907_s10, 512  ;;  %p5914_p6 = scmp.lt.s32.totalorder %s5907_s10, %s7706_s8 }
  0x35   : > { %p5909_p1 = scmp.ne.s32.totalorder %s5907_s10, %s5908_s9  ;;  %p5915_p7 = scmp.lt.s32.totalorder %s5913_s17, %s5908_s9 }
  0x37   : > { %p5911_p3 = pnand %p5910_p2, %p5909_p1  ;;  %p5916_p11 = por %p5915_p7, %p5914_p6 }
  0x39   : > { %p5912_p4 = pneg %p5911_p3 }
  0x3b   : > { %p5917_p13 = pnand %p5916_p11, %p5912_p4 }
  0x3d   : > { %5920 = shalt.err (!%p5917_p13)
}
  0x3e   : > { %s6141_s26 = smov 128   ;;  %s6142_s1 = smov 8  }
  0x3f   : > { %5753 = dma.hbm_to_vmem [thread:$0]  (!%p6315_p0), %s622_s16, 8192, %s624_s11, %s6328_s22, %s6141_s26, %s6141_s26, %s6142_s1  }
  0x40   : > { %s7707_s15 = sld [smem:[#allocation39_spill]]  ;;  %s6143_s9 = smov [#allocation12]  }
  0x41   : > { %s535_s10 = sshll.u32 %s6143_s9, 4  ;;  %s5716_s17 = smul.u32 768, %s6310_s21  ;;  %s536_s10 = int_to_ptr.vmem [resolvable:$true] %s535_s10 }
  0x42   : > { %s5717_s29 = smul.u32 768, %s6138_s30  ;;  %s4308_s19 = sshll.u32 %s6310_s21, 1 }
  0x43   : > { %s7708_s7 = sld [smem:[#allocation27_spill]]  ;;  %s556_s11 = scalar_lea.vmem [#allocation3], %s5716_s17 }
  0x44   : > { %s564_s16 = sshll.u32 %s556_s11, 4  ;;  %s553_s1 = scalar_lea.sflag [#allocation4], %s6310_s21  ;;  %s565_s16 = int_to_ptr.vmem [resolvable:$true] %s564_s16 }
  0x46   : > { %s533_s14 = sshll.u32 %s7707_s15, 4  ;;  %s534_s14 = int_to_ptr.hbm [resolvable:$true] %s533_s14 }
  0x47   : > { %5746 = dma.hbm_to_vmem [thread:$0]  (!%p6304_p12), %s534_s14, 32, %s536_s10, [#allocation13]  }
  0x49   : > { %s561_s6 = scalar_lea.hbm %s7708_s7, %s5717_s29  ;;  %s5973_s9 = scalar_lea.hbm %s7708_s7, 1536 }
  0x4a   : > { %s562_s26 = sshll.u32 %s561_s6, 4  ;;  %s563_s26 = int_to_ptr.hbm [resolvable:$true] %s562_s26 }
  0x4b   : > { %s5966_s27 = sshra.s32 %s563_s26, 4  ;;  %s5967_s27 = int_to_ptr.hbm [resolvable:$true] %s5966_s27 }
  0x4c   : > { %s5968_s18 = scalar_lea.hbm %s5967_s27, 768  ;;  %p5974_p4 = scmp.lt.s32.totalorder %s5967_s27, %s7708_s7 }
  0x4d   : > { %p5969_p1 = scmp.ne.s32.totalorder %s5967_s27, %s5968_s18  ;;  %p5975_p6 = scmp.lt.s32.totalorder %s5973_s9, %s5968_s18 }
  0x4f   : > { %p5971_p12 = pnand %p5969_p1, %p5910_p2  ;;  %p5976_p7 = por %p5975_p6, %p5974_p4 }
  0x51   : > { %p5972_p3 = pneg %p5971_p12 }
  0x53   : > { %p5977_p11 = pnand %p5976_p7, %p5972_p3 }
  0x55   : > { %5980 = shalt.err (!%p5977_p11)
}
  0x56   : > { %s6144_s6 = smov 384   ;;  %s6145_s10 = smov 24  }
  0x57   : > { %5750 = dma.hbm_to_vmem [thread:$0]  (!%p6315_p0), %s563_s26, 12288, %s565_s16, %s553_s1, %s6144_s6, %s6144_s6, %s6145_s10  }
  0x58   : > { %s4309_s17 = sshll.u32 %s6138_s30, 1  ;;  %s658_s29 = scalar_lea.vmem [#allocation8], %s4308_s19 }
  0x59   : > { %s666_s11 = sshll.u32 %s658_s29, 4  ;;  %s7709_s12 = sld [smem:[#allocation36_spill]]  ;;  %s667_s11 = int_to_ptr.vmem [resolvable:$true] %s666_s11 }
  0x5f   : > { %s662_s27 = scalar_lea.hbm %s7709_s12, %s4309_s17  ;;  %s6003_s1 = scalar_lea.hbm %s7709_s12, 4 }
  0x60   : > { %s664_s18 = sshll.u32 %s662_s27, 4  ;;  %s665_s18 = int_to_ptr.hbm [resolvable:$true] %s664_s18 }
  0x61   : > { %s5996_s9 = sshra.s32 %s665_s18, 4  ;;  %s5997_s9 = int_to_ptr.hbm [resolvable:$true] %s5996_s9 }
  0x62   : > { %s5998_s8 = scalar_lea.hbm %s5997_s9, 2  ;;  %p6004_p3 = scmp.lt.s32.totalorder %s5997_s9, %s7709_s12 }
  0x63   : > { %p5999_p13 = scmp.ne.s32.totalorder %s5997_s9, %s5998_s8  ;;  %p6005_p4 = scmp.lt.s32.totalorder %s6003_s1, %s5998_s8 }
  0x65   : > { %p6001_p1 = pnand %p5999_p13, %p5910_p2  ;;  %p6006_p6 = por %p6005_p4, %p6004_p3 }
  0x67   : > { %p6002_p12 = pneg %p6001_p1 }
  0x69   : > { %p6007_p7 = pnand %p6006_p6, %p6002_p12 }
  0x6b   : > { %6010 = shalt.err (!%p6007_p7)
}
  0x6c   : > { %5756 = dma.hbm_to_vmem [thread:$0]  (!%p6315_p0), %s665_s18, 32, %s667_s11, %s6328_s22  }
  0x6d   : > { %s7710_s13 = sld [smem:[#allocation37_spill]]  ;;  %s677_s14 = scalar_lea.vmem [#allocation9], %s4308_s19 }
  0x6e   : > { %s685_s27 = sshll.u32 %s677_s14, 4  ;;  %s7711_s9 = sand.u32 1, %s6138_s30   ;;  %s686_s27 = int_to_ptr.vmem [resolvable:$true] %s685_s27 }
  0x6f   : > { %s674_s8 = scalar_lea.sflag [#allocation10], %s7711_s9 }
  0x73   : > { %s681_s20 = scalar_lea.hbm %s7710_s13, %s4309_s17  ;;  %s6033_s17 = scalar_lea.hbm %s7710_s13, 4 }
  0x74   : > { %s683_s16 = sshll.u32 %s681_s20, 4  ;;  %s684_s16 = int_to_ptr.hbm [resolvable:$true] %s683_s16 }
  0x75   : > { %s6026_s26 = sshra.s32 %s684_s16, 4  ;;  %s6027_s26 = int_to_ptr.hbm [resolvable:$true] %s6026_s26 }
  0x76   : > { %s6028_s1 = scalar_lea.hbm %s6027_s26, 2  ;;  %p6034_p12 = scmp.lt.s32.totalorder %s6027_s26, %s7710_s13 }
  0x77   : > { %p6029_p11 = scmp.ne.s32.totalorder %s6027_s26, %s6028_s1  ;;  %p6035_p3 = scmp.lt.s32.totalorder %s6033_s17, %s6028_s1 }
  0x79   : > { %p6031_p13 = pnand %p6029_p11, %p5910_p2  ;;  %p6036_p4 = por %p6035_p3, %p6034_p12 }
  0x7b   : > { %p6032_p1 = pneg %p6031_p13 }
  0x7d   : > { %p6037_p6 = pnand %p6036_p4, %p6032_p1 }
  0x7f   : > { %6040 = shalt.err (!%p6037_p6)
}
  0x80   : > { %5759 = dma.hbm_to_vmem [thread:$0]  (!%p6315_p0), %s684_s16, 32, %s686_s27, %s674_s8  }
  0x81   : > { %694 = sbr.rel (%p6293_p10) target bundleno = 2424 (0x978), region = 92  ;;  %s696_s30 = sand.u32 (!%p6293_p10), 1, %s6130_s28  }
  0x82   : > { %s5718_s18 = smul.u32 (!%p6293_p10), 768, %s696_s30  ;;  %s697_s24 = scalar_lea.sflag (!%p6293_p10), [#allocation4], %s696_s30 }
  0x84   : > { %s6406_s6 = scalar_lea.vmem (!%p6293_p10), [#allocation3], %s5718_s18 }
  0x86   : > { %6101 = dma.done.wait (%p6288_p8), %s697_s24, 12288  }
  0x87   : > { %6103 = vsyncadd (%p6288_p8), %s697_s24, 4294955008  ;;  %s706_s10 = sand.u32 1, %s6264_s0   ;;  %s4313_s25 = sshll.u32 %s696_s30, 9 }
  0x88   : > { %s707_s29 = scalar_lea.sflag [#allocation7], %s706_s10  ;;  %s6413_s20 = scalar_lea.vmem [#allocation6], %s4313_s25 }
  0x89   : > { %6105 = dma.done.wait (%p6288_p8), %s707_s29, 8224  }
  0x8a   : > { %6107 = vsyncadd (%p6288_p8), %s707_s29, 4294959072  ;;  %s4314_s23 = sshll.u32 %s696_s30, 1  ;;  %s727_s27 = scalar_lea.sflag [#allocation10], %s706_s10 }
  0x8b   : > { %s6419_s14 = scalar_lea.vmem [#allocation8], %s4314_s23  ;;  %s6421_s16 = scalar_lea.vmem [#allocation9], %s4314_s23 }
  0x8c   : > { %6109 = dma.done.wait (%p6288_p8), %s727_s27, 32  }
  0x8d   : > { %6111 = vsyncadd (%p6288_p8), %s727_s27, 4294967264 }
  0x8e   : > { %6113 = dma.done.wait (%p102_p5), [#allocation10], 32  }
  0x8f   : > { %6115 = vsyncadd (%p102_p5), [#allocation10], 4294967264 }
  0x90   : > { %6117 = dma.done.wait (%p102_p5), [#allocation13], 32  }
  0x91   : > { %6119 = vsyncadd (%p102_p5), [#allocation13], 4294967264  ;;  %p838_p10 = scmp.lt.s32.totalorder %s6264_s0, 1  ;;  %s7712_s4 = sld [smem:[#allocation29_spill]] }
  0x92   : > { %s7713_s3 = sld [smem:[#allocation28_spill]] }
  0x93   : > { %s839_s9 = scalar_select %p838_p10, %s6264_s0, 1 }
  0x94   : > { %s7714_s27 = sld [smem:[#allocation30_spill]] }
  0x95   : > { %s5719_s8 = smul.u32 6, %s839_s9  ;;  %s5426_s26 = sshll.u32 %s839_s9, 8 }
  0x96   : > { %s6442_s11 = sshll.u32 %s839_s9, 1  ;;  %s5427_s10 = sshll.u32 %s839_s9, 9 }
  0x97   : > { %s6440_s22 = scalar_lea.vmem %s7712_s4, %s5426_s26  ;;  %s4323_s25 = sshll.u32 %s839_s9, 2 }
  0x98   : > { %s6447_s19 = scalar_lea.vmem %s7713_s3, %s5719_s8  ;;  %s7715_s17 = sld [smem:[#allocation31_spill]] }
  0x99   : > { %s7716_s8 = sld [smem:[#allocation33_spill]] }
  0x9a   : > { %s6456_s26 = scalar_lea.vmem %s7714_s27, %s5427_s10  ;;  %s7717_s30 = sld [smem:[#allocation34_spill]] }
  0x9b   : > { %s7718_s15 = sld [smem:[#allocation35_spill]] }
  0x9c   : > { %s7719_s23 = sld [smem:[#allocation25_spill]] (!%p4301_p9) }
  0x9d   : > { %876 = sbr.rel (%p4301_p9) target bundleno = 171 (0xab), region = 120 }
  0x9e   : > { %s6461_s21 = scalar_lea.vmem %s7715_s17, %s4323_s25 }
  0x9f   : > { %s863_s3 = scalar_lea.vmem %s7716_s8, %s6442_s11 }
  0xa0   : > { %s867_s18 = scalar_lea.vmem %s7717_s30, %s6442_s11 }
  0xa1   : > { %s871_s28 = scalar_lea.vmem %s7718_s15, %s6442_s11 }
  0xa2   : > { %v877_v0 = vld [vmem:[%s7719_s23] sm:$0xff]  ;;  %v878_v1 = vld [vmem:[%s7719_s23 + $0x8] sm:$0xff]  ;;  %v879_v2 = vld [vmem:[%s7719_s23 + $0x10] sm:$0xff] }
  0xa3   : > { %885 = vst [vmem:[#allocation2 + $0x30] sm:$0xff] %v877_v0  ;;  %v880_v3 = vld [vmem:[%s7719_s23 + $0x18] sm:$0xff]  ;;  %v881_v4 = vld [vmem:[%s7719_s23 + $0x20] sm:$0xff]  ;;  %v882_v5 = vld [vmem:[%s7719_s23 + $0x28] sm:$0xff] }
  0xa4   : > { %886 = vst [vmem:[#allocation2] sm:$0xff] %v878_v1  ;;  %v883_v6 = vld [vmem:[%s7719_s23 + $0x30] sm:$0xff]  ;;  %v884_v7 = vld [vmem:[%s7719_s23 + $0x38] sm:$0xff] }
  0xa5   : > { %887 = vst [vmem:[#allocation2 + $0x18] sm:$0xff] %v879_v2 }
  0xa6   : > { %888 = vst [vmem:[#allocation2 + $0x10] sm:$0xff] %v880_v3 }
  0xa7   : > { %889 = vst [vmem:[#allocation2 + $0x8] sm:$0xff] %v881_v4 }
  0xa8   : > { %890 = vst [vmem:[#allocation2 + $0x20] sm:$0xff] %v882_v5 }
  0xa9   : > { %891 = vst [vmem:[#allocation2 + $0x28] sm:$0xff] %v883_v6 }
  0xaa   : > { %892 = vst [vmem:[#allocation2 + $0x38] sm:$0xff] %v884_v7 }
  0xab PF: > { %v893_v10 = vld [vmem:[#allocation2 + $0x30] sm:$0xff]  ;;  %v894_v12 = vld [vmem:[#allocation2] sm:$0xff]  ;;  %v6146_v20 = vmov 256.0   ;;  %v5473_v56 = vld [vmem:[%s6406_s6 + $0x164] sm:$0xf0]  ;;  %vm1964_vm13 = vcmask 130048   ;;  %s7725_s15 = scalar_lea.vmem %s7654_s5, %s6442_s11 }
  0xac   : > { %v903_v13 = vadd.f32 %v894_v12, %v893_v10  ;;  %v895_v16 = vld [vmem:[#allocation2 + $0x18] sm:$0xff]  ;;  %5809 = vrcp.f32 %v6146_v20  ;;  %v4498_v55 = vld [vmem:[%s6406_s6 + $0x150] sm:$0xf]  ;;  %v5521_v59 = vld [vmem:[%s6406_s6 + $0x2e4] sm:$0xf0]  ;;  %p5356_p5 = scmp.ne.s32.totalorder %s6264_s0, 1 }
  0xad   : > { %v896_v17 = vld [vmem:[#allocation2 + $0x10] sm:$0xff]  ;;  %v4499_v58 = vor.u32 %v5473_v56, %v4498_v55  ;;  %v4500_v61 = vld [vmem:[%s6406_s6 + $0x168] sm:$0xf0]  ;;  %v4474_v3 = vld [vmem:[%s6406_s6 + $0x120] sm:$0xf]  ;;  %s7728_s30 = sld [smem:[#allocation41_spill]] (!%p5356_p5) }
  0xae   : > { %v897_v8 = vld [vmem:[#allocation2 + $0x8] sm:$0xff]  ;;  %904 = vadd.xlane.f32.xlu0 %v903_v13  ;;  %v906_v19 = vadd.f32 %v896_v17, %v895_v16  ;;  %v4690_v57 = vld [vmem:[%s6406_s6 + $0x2d0] sm:$0xf]  ;;  %v5470_v60 = vld [vmem:[%s6406_s6 + $0x154] sm:$0xf] }
  0xaf   : > { %v898_v9 = vld [vmem:[#allocation2 + $0x20] sm:$0xff]  ;;  %v4691_v62 = vor.u32 %v5521_v59, %v4690_v57  ;;  %v4503_v63 = vor.u32 %v5470_v60, %v4500_v61  ;;  %v5518_v0 = vld [vmem:[%s6406_s6 + $0x2d4] sm:$0xf]  ;;  %v4692_v1 = vld [vmem:[%s6406_s6 + $0x2e8] sm:$0xf0]  ;;  %1630 = vmatpush.bf16.msra.mxu0 %v4499_v58 }
  0xb0   : > { %v909_v11 = vadd.f32 %v898_v9, %v897_v8  ;;  %v899_v14 = vld [vmem:[#allocation2 + $0x28] sm:$0xff]  ;;  %v4695_v2 = vor.u32 %v5518_v0, %v4692_v1  ;;  %v5467_v4 = vld [vmem:[%s6406_s6 + $0x134] sm:$0xf0]  ;;  %v4666_v5 = vld [vmem:[%s6406_s6 + $0x2a0] sm:$0xf] }
  0xb1   : > { %v900_v15 = vld [vmem:[#allocation2 + $0x38] sm:$0xff]  ;;  %1649 = vmatpush.bf16.msra.mxu1 %v4691_v62  ;;  %1668 = vmatpush.bf16.msra.mxu2 %v4503_v63  ;;  %v4475_v6 = vor.u32 %v5467_v4, %v4474_v3  ;;  %v5458_v20 = vld [vmem:[%s6406_s6 + $0xf4] sm:$0xf]  ;;  %v4596_v58 = vld [vmem:[%s6406_s6 + $0x228] sm:$0xf0] }
  0xb2   : > { %910 = vadd.xlane.f32.xlu1 %v909_v11  ;;  %v912_v18 = vadd.f32 %v900_v15, %v899_v14  ;;  %v5810_v21 = vpop.eup %5809  ;;  %1687 = vmatpush.bf16.msra.mxu3 %v4695_v2  ;;  %v5515_v7 = vld [vmem:[%s6406_s6 + $0x2b4] sm:$0xf0]  ;;  %v4668_v13 = vld [vmem:[%s6406_s6 + $0x2b8] sm:$0xf0]  ;;  %v5494_v57 = vld [vmem:[%s6406_s6 + $0x214] sm:$0xf] }
  0xb3   : > { %v916_v22 = vmul.f32 256.0, %v5810_v21  ;;  %vm920_vm0 = vweird.f32 %v5810_v21  ;;  %1631 = vmatpush.bf16.msra.mxu0 %v4475_v6  ;;  %v4599_v59 = vor.u32 %v5494_v57, %v4596_v58  ;;  %v4378_v60 = vld [vmem:[%s6406_s6 + $0x60] sm:$0xf]  ;;  %v5443_v61 = vld [vmem:[%s6406_s6 + $0x74] sm:$0xf0] }
  0xb4   : > { %v4570_v62 = vld [vmem:[%s6406_s6 + $0x1e0] sm:$0xf]  ;;  %v4379_v63 = vor.u32 %v5443_v61, %v4378_v60  ;;  %v5491_v0 = vld [vmem:[%s6406_s6 + $0x1f4] sm:$0xf0]  ;;  %v5440_v1 = vld [vmem:[%s6406_s6 + $0x64] sm:$0xf] }
  0xb5   : > { %v917_v23 = vsub.f32 1.0, %v916_v22  ;;  %v4380_v2 = vld [vmem:[%s6406_s6 + $0x78] sm:$0xf0]  ;;  %v4571_v3 = vor.u32 %v5491_v0, %v4570_v62  ;;  %v4700_v60 = vld [vmem:[%s6406_s6 + $0x2f0] sm:$0xf0] }
  0xb6   : > { %907 = vadd.xlane.f32.xlu0 %v906_v19  ;;  %v5509_v19 = vld [vmem:[%s6406_s6 + $0x284] sm:$0xf0]  ;;  %v4383_v4 = vor.u32 %v5440_v1, %v4380_v2  ;;  %v4572_v6 = vld [vmem:[%s6406_s6 + $0x1f8] sm:$0xf0]  ;;  %v5468_v0 = vld [vmem:[%s6406_s6 + $0x13c] sm:$0xf0] }
  0xb7   : > { %v918_v24 = vmul.f32 %v5810_v21, %v917_v23  ;;  %v4482_v61 = vld [vmem:[%s6406_s6 + $0x128] sm:$0xf]  ;;  %v5516_v2 = vld [vmem:[%s6406_s6 + $0x2bc] sm:$0xf0] }
  0xb8   : > { %v4674_v1 = vld [vmem:[%s6406_s6 + $0x2a8] sm:$0xf] }
  0xb9   : > { %v919_v25 = vadd.f32 %v5810_v21, %v918_v24  ;;  %v5506_v24 = vld [vmem:[%s6406_s6 + $0x274] sm:$0xf] }
  0xba   : > { %913 = vadd.xlane.f32.xlu1 %v912_v18 }
  0xbb   : > { %v6501_v26 = vsel %vm920_vm0, %v5810_v21, %v919_v25  ;;  %v4452_v21 = vld [vmem:[%s6406_s6 + $0x108] sm:$0xf0] }
  0xbc   : > { %v4455_v23 = vor.u32 %v5458_v20, %v4452_v21  ;;  %v4644_v25 = vld [vmem:[%s6406_s6 + $0x288] sm:$0xf0] }
 0x121   : > { %v905_v29 = vpop.xlane.xlu0 %904 }
 0x122   : > { %v922_v30 = vmul.f32 %v6501_v26, %v905_v29  ;;  %v5455_v29 = vld [vmem:[%s6406_s6 + $0xd4] sm:$0xf0] }
 0x124   : > { %v6509_v33 = vsub.f32 %v893_v10, %v922_v30  ;;  %v6511_v34 = vsub.f32 %v894_v12, %v922_v30  ;;  %v4667_v10 = vor.u32 %v5515_v7, %v4666_v5  ;;  %v5512_v12 = vld [vmem:[%s6406_s6 + $0x2a4] sm:$0xf]  ;;  %v4618_v30 = vld [vmem:[%s6406_s6 + $0x240] sm:$0xf] }
 0x125   : > { %v911_v27 = vpop.xlane.xlu1 %910  ;;  %v5488_v5 = vld [vmem:[%s6406_s6 + $0x1e4] sm:$0xf] }
 0x126   : > { %v924_v28 = vmul.f32 %v6501_v26, %v911_v27  ;;  %v934_v37 = vmul.f32 %v6509_v33, %v6509_v33  ;;  %v935_v38 = vmul.f32 %v6511_v34, %v6511_v34  ;;  %1650 = vmatpush.bf16.msra.mxu1 %v4667_v10  ;;  %v4647_v27 = vor.u32 %v5506_v24, %v4644_v25  ;;  %v4546_v10 = vld [vmem:[%s6406_s6 + $0x1b0] sm:$0xf]  ;;  %v4330_v24 = vld [vmem:[%s6406_s6] sm:$0xf]  ;;  %v5431_v25 = vld [vmem:[%s6406_s6 + $0x14] sm:$0xf0] }
 0x127   : > { %v4575_v7 = vor.u32 %v5488_v5, %v4572_v6  ;;  %v4483_v5 = vor.u32 %v5468_v0, %v4482_v61  ;;  %v4675_v6 = vor.u32 %v5516_v2, %v4674_v1 }
 0x128   : > { %v6505_v31 = vsub.f32 %v897_v8, %v924_v28  ;;  %v6507_v32 = vsub.f32 %v898_v9, %v924_v28  ;;  %v942_v41 = vadd.f32 %v935_v38, %v934_v37  ;;  %v5464_v8 = vld [vmem:[%s6406_s6 + $0x124] sm:$0xf]  ;;  %v4476_v9 = vld [vmem:[%s6406_s6 + $0x138] sm:$0xf0]  ;;  %v4426_v28 = vld [vmem:[%s6406_s6 + $0xc0] sm:$0xf] }
 0x129   : > { %v908_v43 = vpop.xlane.xlu0 %907  ;;  %v4479_v11 = vor.u32 %v5464_v8, %v4476_v9  ;;  %v5452_v37 = vld [vmem:[%s6406_s6 + $0xc4] sm:$0xf]  ;;  %v4428_v38 = vld [vmem:[%s6406_s6 + $0xd8] sm:$0xf0]  ;;  %v4354_v8 = vld [vmem:[%s6406_s6 + $0x30] sm:$0xf] }
 0x12a   : > { %v938_v35 = vmul.f32 %v6505_v31, %v6505_v31  ;;  %v939_v36 = vmul.f32 %v6507_v32, %v6507_v32  ;;  %v923_v44 = vmul.f32 %v6501_v26, %v908_v43  ;;  %943 = vadd.xlane.f32.xlu2 %v942_v41  ;;  %v5500_v41 = vld [vmem:[%s6406_s6 + $0x244] sm:$0xf]  ;;  %v5437_v9 = vld [vmem:[%s6406_s6 + $0x44] sm:$0xf0] }
 0x12b   : > { %1669 = vmatpush.bf16.msra.mxu2 %v4479_v11  ;;  %v4355_v11 = vor.u32 %v5437_v9, %v4354_v8  ;;  %v4484_v8 = vld [vmem:[%s6406_s6 + $0x140] sm:$0xf0] }
 0x12c   : > { %v948_v39 = vadd.f32 %v939_v36, %v938_v35  ;;  %v6527_v47 = vsub.f32 %v895_v16, %v923_v44  ;;  %v6529_v48 = vsub.f32 %v896_v17, %v923_v44  ;;  %v5461_v16 = vld [vmem:[%s6406_s6 + $0x104] sm:$0xf0]  ;;  %v4642_v17 = vld [vmem:[%s6406_s6 + $0x270] sm:$0xf]  ;;  %v4427_v35 = vor.u32 %v5455_v29, %v4426_v28  ;;  %v5503_v36 = vld [vmem:[%s6406_s6 + $0x254] sm:$0xf0] }
 0x12d   : > { %v914_v40 = vpop.xlane.xlu1 %913  ;;  %v4643_v22 = vor.u32 %v5509_v19, %v4642_v17  ;;  %v4402_v44 = vld [vmem:[%s6406_s6 + $0x90] sm:$0xf]  ;;  %v4548_v19 = vld [vmem:[%s6406_s6 + $0x1c8] sm:$0xf0]  ;;  %v4331_v29 = vor.u32 %v5431_v25, %v4330_v24  ;;  %v5459_v24 = vld [vmem:[%s6406_s6 + $0xfc] sm:$0xf] }
 0x12e   : > { %v925_v42 = vmul.f32 %v6501_v26, %v914_v40  ;;  %949 = vadd.xlane.f32.xlu0 %v948_v39  ;;  %v936_v51 = vmul.f32 %v6527_v47, %v6527_v47  ;;  %v937_v52 = vmul.f32 %v6529_v48, %v6529_v48  ;;  %v4619_v39 = vor.u32 %v5503_v36, %v4618_v30  ;;  %v5479_v30 = vld [vmem:[%s6406_s6 + $0x194] sm:$0xf0]  ;;  %v4460_v25 = vld [vmem:[%s6406_s6 + $0x110] sm:$0xf0] }
 0x12f   : > { %1651 = vmatpush.bf16.msra.mxu1 %v4643_v22  ;;  %1670 = vmatpush.bf16.msra.mxu2 %v4455_v23  ;;  %v4431_v40 = vor.u32 %v5452_v37, %v4428_v38  ;;  %v4332_v38 = vld [vmem:[%s6406_s6 + $0x18] sm:$0xf0] }
 0x130   : > { %v6523_v45 = vsub.f32 %v899_v14, %v925_v42  ;;  %v6525_v46 = vsub.f32 %v900_v15, %v925_v42  ;;  %v945_v54 = vadd.f32 %v937_v52, %v936_v51  ;;  %v4671_v14 = vor.u32 %v5512_v12, %v4668_v13  ;;  %v4450_v15 = vld [vmem:[%s6406_s6 + $0xf0] sm:$0xf]  ;;  %v4620_v42 = vld [vmem:[%s6406_s6 + $0x258] sm:$0xf0]  ;;  %v5497_v52 = vld [vmem:[%s6406_s6 + $0x224] sm:$0xf0] }
 0x131   : > { %v4451_v18 = vor.u32 %v5461_v16, %v4450_v15  ;;  %v4623_v43 = vor.u32 %v5500_v41, %v4620_v42  ;;  %v5485_v12 = vld [vmem:[%s6406_s6 + $0x1c4] sm:$0xf0]  ;;  %v5434_v13 = vld [vmem:[%s6406_s6 + $0x34] sm:$0xf]  ;;  %v4524_v41 = vld [vmem:[%s6406_s6 + $0x198] sm:$0xf0] }
 0x132   : > { %v940_v49 = vmul.f32 %v6523_v45, %v6523_v45  ;;  %v941_v50 = vmul.f32 %v6525_v46, %v6525_v46  ;;  %946 = vadd.xlane.f32.xlu2 %v945_v54  ;;  %1688 = vmatpush.bf16.msra.mxu3 %v4671_v14  ;;  %v4404_v54 = vld [vmem:[%s6406_s6 + $0xa8] sm:$0xf0]  ;;  %v4547_v16 = vor.u32 %v5485_v12, %v4546_v10 }
 0x133   : > { %1632 = vmatpush.bf16.msra.mxu0 %v4451_v18  ;;  %1652 = vmatpush.bf16.msra.mxu1 %v4619_v39  ;;  %v4356_v14 = vld [vmem:[%s6406_s6 + $0x48] sm:$0xf0]  ;;  %v5482_v18 = vld [vmem:[%s6406_s6 + $0x1b4] sm:$0xf]  ;;  %v5476_v39 = vld [vmem:[%s6406_s6 + $0x184] sm:$0xf] }
 0x134   : > { %v951_v53 = vadd.f32 %v941_v50, %v940_v49  ;;  %1671 = vmatpush.bf16.msra.mxu2 %v4431_v40  ;;  %v5449_v49 = vld [vmem:[%s6406_s6 + $0xa4] sm:$0xf0]  ;;  %v4594_v50 = vld [vmem:[%s6406_s6 + $0x210] sm:$0xf]  ;;  %v4359_v17 = vor.u32 %v5434_v13, %v4356_v14  ;;  %v4551_v22 = vor.u32 %v5482_v18, %v4548_v19  ;;  %v4527_v42 = vor.u32 %v5476_v39, %v4524_v41  ;;  %v5513_v12 = vld [vmem:[%s6406_s6 + $0x2ac] sm:$0xf] }
 0x135   : > { %v4403_v51 = vor.u32 %v5449_v49, %v4402_v44  ;;  %v4595_v55 = vor.u32 %v5497_v52, %v4594_v50  ;;  %v5474_v44 = vld [vmem:[%s6406_s6 + $0x16c] sm:$0xf0]  ;;  %v4698_v49 = vld [vmem:[%s6406_s6 + $0x2d8] sm:$0xf]  ;;  %v4676_v13 = vld [vmem:[%s6406_s6 + $0x2c0] sm:$0xf0] }
 0x136   : > { %952 = vadd.xlane.f32.xlu1 %v951_v53  ;;  %1689 = vmatpush.bf16.msra.mxu3 %v4647_v27  ;;  %v5446_v53 = vld [vmem:[%s6406_s6 + $0x94] sm:$0xf]  ;;  %v4522_v27 = vld [vmem:[%s6406_s6 + $0x180] sm:$0xf]  ;;  %v5522_v52 = vld [vmem:[%s6406_s6 + $0x2ec] sm:$0xf0]  ;;  %v4679_v18 = vor.u32 %v5513_v12, %v4676_v13 }
 0x137   : > { %1633 = vmatpush.bf16.msra.mxu0 %v4427_v35  ;;  %v4407_v56 = vor.u32 %v5446_v53, %v4404_v54  ;;  %1653 = vmatpush.bf16.msra.mxu1 %v4595_v55  ;;  %v5428_v35 = vld [vmem:[%s6406_s6 + $0x4] sm:$0xf]  ;;  %v4523_v37 = vor.u32 %v5479_v30, %v4522_v27  ;;  %v5471_v53 = vld [vmem:[%s6406_s6 + $0x15c] sm:$0xf]  ;;  %v4508_v54 = vld [vmem:[%s6406_s6 + $0x170] sm:$0xf0]  ;;  %v4699_v57 = vor.u32 %v5522_v52, %v4698_v49 }
 0x138   : > { %v4335_v40 = vor.u32 %v5428_v35, %v4332_v38  ;;  %v4511_v58 = vor.u32 %v5471_v53, %v4508_v54  ;;  %v4650_v19 = vld [vmem:[%s6406_s6 + $0x278] sm:$0xf]  ;;  %v5507_v27 = vld [vmem:[%s6406_s6 + $0x27c] sm:$0xf]  ;;  %v4652_v30 = vld [vmem:[%s6406_s6 + $0x290] sm:$0xf0] }
 0x139   : > { %1672 = vmatpush.bf16.msra.mxu2 %v4407_v56  ;;  %v4434_v35 = vld [vmem:[%s6406_s6 + $0xc8] sm:$0xf]  ;;  %v4655_v38 = vor.u32 %v5507_v27, %v4652_v30  ;;  %v5456_v39 = vld [vmem:[%s6406_s6 + $0xdc] sm:$0xf0]  ;;  %v5453_v49 = vld [vmem:[%s6406_s6 + $0xcc] sm:$0xf] }
 0x13a   : > { %1690 = vmatpush.bf16.msra.mxu3 %v4623_v43  ;;  %v4506_v43 = vld [vmem:[%s6406_s6 + $0x158] sm:$0xf]  ;;  %v901_v41 = vld [vmem:[%s867_s18] sm:$0x3]  ;;  %v4436_v53 = vld [vmem:[%s6406_s6 + $0xe0] sm:$0xf0] }
 0x13b   : > { %1634 = vmatpush.bf16.msra.mxu0 %v4403_v51  ;;  %1654 = vmatpush.bf16.msra.mxu1 %v4571_v3  ;;  %v4507_v51 = vor.u32 %v5474_v44, %v4506_v43  ;;  %v4435_v43 = vor.u32 %v5456_v39, %v4434_v35  ;;  %v5504_v44 = vld [vmem:[%s6406_s6 + $0x25c] sm:$0xf0]  ;;  %v5501_v54 = vld [vmem:[%s6406_s6 + $0x24c] sm:$0xf]  ;;  %v6684_v0 = vperm.slane %v901_v41, 1 }
 0x13c   : > { %v5444_v30 = vld [vmem:[%s6406_s6 + $0x7c] sm:$0xf0]  ;;  %v4578_v35 = vld [vmem:[%s6406_s6 + $0x1e8] sm:$0xf]  ;;  %v4388_v39 = vld [vmem:[%s6406_s6 + $0x80] sm:$0xf0] }
 0x13d   : > { %1673 = vmatpush.bf16.msra.mxu2 %v4383_v4 }
 0x13e   : > { %1691 = vmatpush.bf16.msra.mxu3 %v4599_v59  ;;  %v5519_v59 = vld [vmem:[%s6406_s6 + $0x2dc] sm:$0xf] }
 0x13f   : > { %1635 = vmatpush.bf16.msra.mxu0 %v4379_v63  ;;  %1655 = vmatpush.bf16.msra.mxu1 %v4547_v16  ;;  %v4703_v63 = vor.u32 %v5519_v59, %v4700_v60  ;;  %v5462_v16 = vld [vmem:[%s6406_s6 + $0x10c] sm:$0xf0]  ;;  %v902_v59 = vld [vmem:[%s871_s28] sm:$0x3] }
 0x141   : > { %1674 = vmatpush.bf16.msra.mxu2 %v4359_v17 }
 0x142   : > { %1692 = vmatpush.bf16.msra.mxu3 %v4575_v7  ;;  %v5465_v7 = vld [vmem:[%s6406_s6 + $0x12c] sm:$0xf] }
 0x143   : > { %1636 = vmatpush.bf16.msra.mxu0 %v4355_v11  ;;  %1656 = vmatpush.bf16.msra.mxu1 %v4523_v37  ;;  %v4487_v11 = vor.u32 %v5465_v7, %v4484_v8  ;;  %v5450_v7 = vld [vmem:[%s6406_s6 + $0xac] sm:$0xf0]  ;;  %v4602_v8 = vld [vmem:[%s6406_s6 + $0x218] sm:$0xf] }
 0x145   : > { %1675 = vmatpush.bf16.msra.mxu2 %v4335_v40  ;;  %v4626_v40 = vld [vmem:[%s6406_s6 + $0x248] sm:$0xf] }
 0x146   : > { %1693 = vmatpush.bf16.msra.mxu3 %v4551_v22  ;;  %v4627_v52 = vor.u32 %v5504_v44, %v4626_v40  ;;  %v4580_v44 = vld [vmem:[%s6406_s6 + $0x200] sm:$0xf0] }
 0x147   : > { %1637 = vmatpush.bf16.msra.mxu0 %v4331_v29  ;;  %1725 = vmatpush.bf16.msrb.mxu1 %v4699_v57  ;;  %v4463_v29 = vor.u32 %v5459_v24, %v4460_v25  ;;  %v4439_v57 = vor.u32 %v5453_v49, %v4436_v53  ;;  %v4386_v24 = vld [vmem:[%s6406_s6 + $0x68] sm:$0xf]  ;;  %v4362_v49 = vld [vmem:[%s6406_s6 + $0x38] sm:$0xf] }
 0x148   : > { %v4554_v53 = vld [vmem:[%s6406_s6 + $0x1b8] sm:$0xf] }
 0x149   : > { %1744 = vmatpush.bf16.msrb.mxu2 %v4511_v58  ;;  %v4628_v58 = vld [vmem:[%s6406_s6 + $0x260] sm:$0xf0] }
 0x14a   : > { %1694 = vmatpush.bf16.msra.mxu3 %v4527_v42 }
 0x14b   : > { %1706 = vmatpush.bf16.msrb.mxu0 %v4507_v51  ;;  %1726 = vmatpush.bf16.msrb.mxu1 %v4675_v6  ;;  %v4410_v6 = vld [vmem:[%s6406_s6 + $0x98] sm:$0xf] }
 0x14c   : > { %v4411_v13 = vor.u32 %v5450_v7, %v4410_v6  ;;  %v4556_v6 = vld [vmem:[%s6406_s6 + $0x1d0] sm:$0xf0]  ;;  %v4338_v7 = vld [vmem:[%s6406_s6 + $0x8] sm:$0xf] }
 0x14d   : > { %1745 = vmatpush.bf16.msrb.mxu2 %v4487_v11  ;;  %v6696_v11 = vperm.slane %v902_v59, 0 }
 0x14e   : > { %1763 = vmatpush.bf16.msrb.mxu3 %v4703_v63  ;;  %v6682_v63 = vperm.slane %v901_v41, 0 }
 0x14f   : > { %1707 = vmatpush.bf16.msrb.mxu0 %v4483_v5 }
 0x151   : > { %1746 = vmatpush.bf16.msrb.mxu2 %v4463_v29 }
 0x152   : > { %1764 = vmatpush.bf16.msrb.mxu3 %v4679_v18  ;;  %v4412_v18 = vld [vmem:[%s6406_s6 + $0xb0] sm:$0xf0] }
 0x155   : > { %1747 = vmatpush.bf16.msrb.mxu2 %v4439_v57 }
 0x156   : > { %1765 = vmatpush.bf16.msrb.mxu3 %v4655_v38  ;;  %v5441_v38 = vld [vmem:[%s6406_s6 + $0x6c] sm:$0xf] }
 0x19d   : > { %v944_v20 = vpop.xlane.xlu2 %943 }
 0x19e   : > { %v954_v23 = vmul.f32 %v944_v20, %v6501_v26  ;;  %v5510_v20 = vld [vmem:[%s6406_s6 + $0x28c] sm:$0xf0] }
 0x1a0   : > { %v6604_v36 = vadd.f32 1e-05, %v954_v23  ;;  %v4651_v23 = vor.u32 %v5510_v20, %v4650_v19  ;;  %v5495_v19 = vld [vmem:[%s6406_s6 + $0x21c] sm:$0xf] }
 0x1a1   : > { %v950_v15 = vpop.xlane.xlu0 %949 }
 0x1a2   : > { %v956_v21 = vmul.f32 %v950_v15, %v6501_v26  ;;  %v4458_v15 = vld [vmem:[%s6406_s6 + $0xf8] sm:$0xf]  ;;  %1727 = vmatpush.bf16.msrb.mxu1 %v4651_v23  ;;  %vm968_vm2 = vweird.f32 %v6604_v36  ;;  %v4604_v23 = vld [vmem:[%s6406_s6 + $0x230] sm:$0xf0] }
 0x1a3   : > { %v4459_v22 = vor.u32 %v5462_v16, %v4458_v15  ;;  %v6703_v15 = vperm.slane %v902_v59, 1 }
 0x1a4   : > { %v6600_v28 = vadd.f32 1e-05, %v956_v21 }
 0x1a5   : > { %v947_v56 = vpop.xlane.xlu2 %946  ;;  %1708 = vmatpush.bf16.msrb.mxu0 %v4459_v22 }
 0x1a6   : > { %5811 = vrsqrt.f32 %v6600_v28  ;;  %v955_v62 = vmul.f32 %v947_v56, %v6501_v26  ;;  %1728 = vmatpush.bf16.msrb.mxu1 %v4627_v52  ;;  %v5438_v52 = vld [vmem:[%s6406_s6 + $0x4c] sm:$0xf0]  ;;  %vm988_vm7 = vweird.f32 %v6600_v28 }
 0x1a7   : > { %5813 = vrsqrt.f32 %v6604_v36  ;;  %v4363_v59 = vor.u32 %v5438_v52, %v4362_v49  ;;  %v5469_v52 = vld [vmem:[%s6406_s6 + $0x144] sm:$0xf0] }
 0x1a8   : > { %v6633_v10 = vadd.f32 1e-05, %v955_v62  ;;  %v4631_v62 = vor.u32 %v5501_v54, %v4628_v58  ;;  %v5486_v54 = vld [vmem:[%s6406_s6 + $0x1cc] sm:$0xf0] }
 0x1a9   : > { %v953_v50 = vpop.xlane.xlu1 %952  ;;  %1709 = vmatpush.bf16.msrb.mxu0 %v4435_v43  ;;  %v5489_v43 = vld [vmem:[%s6406_s6 + $0x1ec] sm:$0xf] }
 0x1aa   : > { %v957_v55 = vmul.f32 %v953_v50, %v6501_v26  ;;  %1766 = vmatpush.bf16.msrb.mxu3 %v4631_v62  ;;  %vm978_vm5 = vweird.f32 %v6633_v10  ;;  %v5483_v62 = vld [vmem:[%s6406_s6 + $0x1bc] sm:$0xf] }
 0x1ac   : > { %v6625_v3 = vpop.eup %5811  ;;  %v6627_v4 = vadd.f32 1e-05, %v957_v55 }
 0x1ad   : > { %v6631_v9 = vpop.eup %5813  ;;  %v983_v17 = vmul.f32 %v6625_v3, %v6600_v28  ;;  %1710 = vmatpush.bf16.msrb.mxu0 %v4411_v13  ;;  %vm989_vm10 = vweird.f32 %v6625_v3  ;;  %v5475_v28 = vld [vmem:[%s6406_s6 + $0x174] sm:$0xf0] }
 0x1ae   : > { %v963_v14 = vmul.f32 %v6631_v9, %v6604_v36  ;;  %5815 = vrsqrt.f32 %v6627_v4  ;;  %vm969_vm1 = vweird.f32 %v6631_v9  ;;  %vm998_vm8 = vweird.f32 %v6627_v4  ;;  %vm990_vm12 = vmor %vm988_vm7, %vm989_vm10 }
 0x1af   : > { %5817 = vrsqrt.f32 %v6633_v10  ;;  %v984_v42 = vmul.f32 %v6625_v3, %v983_v17  ;;  %vm970_vm3 = vmor %vm968_vm2, %vm969_vm1 }
 0x1b0   : > { %v964_v21 = vmul.f32 %v6631_v9, %v963_v14  ;;  %v5447_v14 = vld [vmem:[%s6406_s6 + $0x9c] sm:$0xf] }
 0x1b1   : > { %v6688_v1 = vmul.f32 0.5, %v984_v42  ;;  %v4415_v22 = vor.u32 %v5447_v14, %v4412_v18  ;;  %v4391_v42 = vor.u32 %v5441_v38, %v4388_v39  ;;  %v5429_v14 = vld [vmem:[%s6406_s6 + $0xc] sm:$0xf]  ;;  %v5523_v38 = vld [vmem:[%s6406_s6 + $0x2f4] sm:$0xf0] }
 0x1b2   : > { %v965_v37 = vmul.f32 0.5, %v964_v21  ;;  %v5472_v39 = vld [vmem:[%s6406_s6 + $0x164] sm:$0xf] }
 0x1b3   : > { %v986_v21 = vsub.f32 1.5, %v6688_v1  ;;  %1748 = vmatpush.bf16.msrb.mxu2 %v4415_v22  ;;  %v4532_v22 = vld [vmem:[%s6406_s6 + $0x1a0] sm:$0xf0] }
 0x1b4   : > { %v6663_v50 = vpop.eup %5815  ;;  %v966_v51 = vsub.f32 1.5, %v965_v37  ;;  %v5492_v37 = vld [vmem:[%s6406_s6 + $0x1fc] sm:$0xf0] }
 0x1b5   : > { %v6668_v55 = vpop.eup %5817  ;;  %v993_v56 = vmul.f32 %v6663_v50, %v6627_v4  ;;  %v4579_v41 = vor.u32 %v5492_v37, %v4578_v35  ;;  %vm999_vm9 = vweird.f32 %v6663_v50  ;;  %v4706_v35 = vld [vmem:[%s6406_s6 + $0x2e0] sm:$0xf] }
 0x1b6   : > { %v967_v60 = vmul.f32 %v6631_v9, %v966_v51  ;;  %v973_v61 = vmul.f32 %v6668_v55, %v6633_v10  ;;  %vm979_vm4 = vweird.f32 %v6668_v55  ;;  %v4607_v10 = vor.u32 %v5495_v19, %v4604_v23  ;;  %v4340_v19 = vld [vmem:[%s6406_s6 + $0x20] sm:$0xf0]  ;;  %vm1000_vm11 = vmor %vm998_vm8, %vm999_vm9 }
 0x1b7   : > { %v994_v2 = vmul.f32 %v6663_v50, %v993_v56  ;;  %vm6716_vm6 = vmor %vm978_vm5, %vm979_vm4  ;;  %v4583_v51 = vor.u32 %v5489_v43, %v4580_v44  ;;  %1749 = vmatpush.bf16.msrb.mxu2 %v4391_v42  ;;  %v4343_v4 = vor.u32 %v5429_v14, %v4340_v19  ;;  %v5520_v42 = vld [vmem:[%s6406_s6 + $0x2e4] sm:$0xf]  ;;  %v4490_v43 = vld [vmem:[%s6406_s6 + $0x130] sm:$0xf] }
 0x1b8   : > { %v971_v36 = vsel %vm970_vm3, %v6631_v9, %v967_v60  ;;  %v974_v5 = vmul.f32 %v6668_v55, %v973_v61  ;;  %v5498_v9 = vld [vmem:[%s6406_s6 + $0x22c] sm:$0xf0]  ;;  %1767 = vmatpush.bf16.msrb.mxu3 %v4607_v10  ;;  %v5435_v60 = vld [vmem:[%s6406_s6 + $0x3c] sm:$0xf]  ;;  %v4364_v61 = vld [vmem:[%s6406_s6 + $0x50] sm:$0xf0] }
 0x1b9   : > { %v6698_v12 = vmul.f32 0.5, %v994_v2  ;;  %v4603_v17 = vor.u32 %v5498_v9, %v4602_v8  ;;  %v1002_v20 = vmul.f32 %v971_v36, %v6509_v33  ;;  %v1003_v25 = vmul.f32 %v971_v36, %v6511_v34  ;;  %v5432_v8 = vld [vmem:[%s6406_s6 + $0x1c] sm:$0xf0]  ;;  %v4634_v19 = vld [vmem:[%s6406_s6 + $0x250] sm:$0xf] }
 0x1ba   : > { %v975_v16 = vmul.f32 0.5, %v974_v5  ;;  %v4387_v34 = vor.u32 %v5444_v30, %v4386_v24  ;;  %v4555_v36 = vor.u32 %v5486_v54, %v4554_v53  ;;  %v4367_v5 = vor.u32 %v5435_v60, %v4364_v61  ;;  %v4514_v30 = vld [vmem:[%s6406_s6 + $0x160] sm:$0xf]  ;;  %v4682_v53 = vld [vmem:[%s6406_s6 + $0x2b0] sm:$0xf] }
 0x1bb   : > { %v996_v27 = vsub.f32 1.5, %v6698_v12  ;;  %1729 = vmatpush.bf16.msrb.mxu1 %v4603_v17  ;;  %v1015_v56 = vmul.f32 %v6682_v63, %v1002_v20  ;;  %v1016_v57 = vmul.f32 %v6684_v0, %v1003_v25  ;;  %v4339_v9 = vor.u32 %v5432_v8, %v4338_v7  ;;  %v5477_v20 = vld [vmem:[%s6406_s6 + $0x18c] sm:$0xf]  ;;  %v5517_v54 = vld [vmem:[%s6406_s6 + $0x2c4] sm:$0xf0] }
 0x1bc   : > { %v976_v29 = vsub.f32 1.5, %v975_v16  ;;  %1711 = vmatpush.bf16.msrb.mxu0 %v4387_v34  ;;  %1768 = vmatpush.bf16.msrb.mxu3 %v4583_v51  ;;  %v987_v16 = vmul.f32 %v6625_v3, %v986_v21  ;;  %v4535_v33 = vor.u32 %v5477_v20, %v4532_v22  ;;  %v4515_v37 = vor.u32 %v5475_v28, %v4514_v30  ;;  %v5505_v20 = vld [vmem:[%s6406_s6 + $0x264] sm:$0xf0] }
 0x1bd   : > { %v997_v17 = vmul.f32 %v6663_v50, %v996_v27  ;;  %v1028_v23 = vadd.f32 %v6696_v11, %v1015_v56  ;;  %v1029_v24 = vadd.f32 %v6703_v15, %v1016_v57  ;;  %1750 = vmatpush.bf16.msrb.mxu2 %v4367_v5  ;;  %v4491_v57 = vor.u32 %v5469_v52, %v4490_v43  ;;  %v5511_v5 = vld [vmem:[%s6406_s6 + $0x294] sm:$0xf0]  ;;  %v4394_v43 = vld [vmem:[%s6406_s6 + $0x70] sm:$0xf] }
 0x1be   : > { %v977_v40 = vmul.f32 %v6668_v55, %v976_v29  ;;  %v991_v34 = vsel %vm990_vm12, %v6625_v3, %v987_v16  ;;  %v4708_v3 = vld [vmem:[%s6406_s6 + $0x2f8] sm:$0xf0]  ;;  %v4586_v52 = vld [vmem:[%s6406_s6 + $0x1f0] sm:$0xf] }
 0x1bf   : > { %1730 = vmatpush.bf16.msrb.mxu1 %v4579_v41  ;;  %v1001_v10 = vsel %vm1000_vm11, %v6663_v50, %v997_v17  ;;  %v4516_v50 = vld [vmem:[%s6406_s6 + $0x178] sm:$0xf0]  ;;  %v4711_v51 = vor.u32 %v5520_v42, %v4708_v3  ;;  %v1006_v56 = vmul.f32 %v991_v34, %v6505_v31  ;;  %v1007_v60 = vmul.f32 %v991_v34, %v6507_v32  ;;  %v4466_v31 = vld [vmem:[%s6406_s6 + $0x100] sm:$0xf]  ;;  %v5508_v32 = vld [vmem:[%s6406_s6 + $0x284] sm:$0xf] }
 0x1c0   : > { %v981_v58 = vsel %vm6716_vm6, %v6668_v55, %v977_v40  ;;  %v4530_v55 = vld [vmem:[%s6406_s6 + $0x188] sm:$0xf]  ;;  %1712 = vmatpush.bf16.msrb.mxu0 %v4363_v59  ;;  %v4707_v40 = vor.u32 %v5523_v38, %v4706_v35  ;;  %v4519_v41 = vor.u32 %v5472_v39, %v4516_v50  ;;  %v1008_v44 = vmul.f32 %v1001_v10, %v6523_v45  ;;  %v5514_v59 = vld [vmem:[%s6406_s6 + $0x2b4] sm:$0xf]  ;;  %v4610_v38 = vld [vmem:[%s6406_s6 + $0x220] sm:$0xf] }
 0x1c1   : > { %v1004_v1 = vmul.f32 %v981_v58, %v6527_v47  ;;  %v1005_v2 = vmul.f32 %v981_v58, %v6529_v48  ;;  %v4559_v47 = vor.u32 %v5483_v62, %v4556_v6  ;;  %v5480_v48 = vld [vmem:[%s6406_s6 + $0x19c] sm:$0xf0]  ;;  %v1009_v49 = vmul.f32 %v1001_v10, %v6525_v46  ;;  %1751 = vmatpush.bf16.msrb.mxu2 %v4343_v4  ;;  %v5466_v58 = vld [vmem:[%s6406_s6 + $0x134] sm:$0xf]  ;;  %v4492_v46 = vld [vmem:[%s6406_s6 + $0x148] sm:$0xf0] }
 0x1c2   : > { %v4531_v18 = vor.u32 %v5480_v48, %v4530_v55  ;;  %v4683_v45 = vor.u32 %v5517_v54, %v4682_v53  ;;  %v4495_v61 = vor.u32 %v5466_v58, %v4492_v46  ;;  %v4684_v62 = vld [vmem:[%s6406_s6 + $0x2c8] sm:$0xf0]  ;;  %v5460_v6 = vld [vmem:[%s6406_s6 + $0x104] sm:$0xf]  ;;  %v1021_v7 = vmul.f32 %v6682_v63, %v1008_v44  ;;  %v4660_v55 = vld [vmem:[%s6406_s6 + $0x298] sm:$0xf0] }
 0x1c3   : > { %v1017_v12 = vmul.f32 %v6682_v63, %v1004_v1  ;;  %v1018_v13 = vmul.f32 %v6684_v0, %v1005_v2  ;;  %1731 = vmatpush.bf16.msrb.mxu1 %v4555_v36  ;;  %1769 = vmatpush.bf16.msrb.mxu3 %v4559_v47  ;;  %v5463_v1 = vld [vmem:[%s6406_s6 + $0x114] sm:$0xf0]  ;;  %v4687_v2 = vor.u32 %v5514_v59, %v4684_v62  ;;  %v4658_v36 = vld [vmem:[%s6406_s6 + $0x280] sm:$0xf]  ;;  %v4468_v47 = vld [vmem:[%s6406_s6 + $0x118] sm:$0xf0] }
 0x1c4   : > { %1713 = vmatpush.bf16.msrb.mxu0 %v4339_v9  ;;  %v1022_v8 = vmul.f32 %v6684_v0, %v1009_v49  ;;  %v1019_v48 = vmul.f32 %v6682_v63, %v1006_v56  ;;  %v4442_v9 = vld [vmem:[%s6406_s6 + $0xd0] sm:$0xf]  ;;  %v1020_v14 = vmul.f32 %v6684_v0, %v1007_v60  ;;  %v4471_v16 = vor.u32 %v5460_v6, %v4468_v47  ;;  %v4636_v4 = vld [vmem:[%s6406_s6 + $0x268] sm:$0xf0]  ;;  %v5499_v39 = vld [vmem:[%s6406_s6 + $0x234] sm:$0xf0] }
 0x1c5   : > { %v1030_v21 = vadd.f32 %v6696_v11, %v1017_v12  ;;  %v1031_v25 = vadd.f32 %v6703_v15, %v1018_v13  ;;  %v4467_v12 = vor.u32 %v5463_v1, %v4466_v31  ;;  %v4659_v13 = vor.u32 %v5511_v5, %v4658_v36  ;;  %v5448_v50 = vld [vmem:[%s6406_s6 + $0xa4] sm:$0xf]  ;;  %v4612_v3 = vld [vmem:[%s6406_s6 + $0x238] sm:$0xf0]  ;;  %v5493_v53 = vld [vmem:[%s6406_s6 + $0x204] sm:$0xf0] }
 0x1c6   : > { %v4663_v17 = vor.u32 %v5508_v32, %v4660_v55  ;;  %v1034_v63 = vadd.f32 %v6696_v11, %v1021_v7  ;;  %v1035_v22 = vadd.f32 %v6703_v15, %v1022_v8  ;;  %v4635_v0 = vor.u32 %v5505_v20, %v4634_v19  ;;  %v5496_v42 = vld [vmem:[%s6406_s6 + $0x224] sm:$0xf]  ;;  %v5490_v58 = vld [vmem:[%s6406_s6 + $0x1f4] sm:$0xf]  ;;  %v4588_v46 = vld [vmem:[%s6406_s6 + $0x208] sm:$0xf0] }
 0x1c7   : > { %v6771_v27 = vpack.c.bf16 %v1030_v21, %v1028_v23  ;;  %v6773_v29 = vpack.c.bf16 %v1031_v25, %v1029_v24  ;;  %1732 = vmatpush.bf16.msrb.mxu1 %v4531_v18  ;;  %1770 = vmatpush.bf16.msrb.mxu3 %v4535_v33  ;;  %v5457_v18 = vld [vmem:[%s6406_s6 + $0xe4] sm:$0xf0]  ;;  %v5454_v23 = vld [vmem:[%s6406_s6 + $0xd4] sm:$0xf]  ;;  %v4444_v21 = vld [vmem:[%s6406_s6 + $0xe8] sm:$0xf0]  ;;  %v1032_v33 = vadd.f32 %v6696_v11, %v1019_v48 }
 0x1c8   : > { %v4443_v24 = vor.u32 %v5457_v18, %v4442_v9  ;;  %v5502_v25 = vld [vmem:[%s6406_s6 + $0x254] sm:$0xf]  ;;  %v1033_v10 = vadd.f32 %v6703_v15, %v1020_v14  ;;  %v4447_v35 = vor.u32 %v5454_v23, %v4444_v21  ;;  %v5451_v11 = vld [vmem:[%s6406_s6 + $0xb4] sm:$0xf0]  ;;  %v4615_v49 = vor.u32 %v5496_v42, %v4612_v3  ;;  %v4370_v59 = vld [vmem:[%s6406_s6 + $0x40] sm:$0xf] }
 0x1c9   : > { %1638 = vmatmul.bf16.vlgmr.msra.gmra.mxu0 %v6771_v27  ;;  %1657 = vmatmul.bf16.vlgmr.msra.gmra.mxu1 %v6773_v29  ;;  %v6825_v30 = vpack.c.bf16 %v1034_v63, %v1032_v33  ;;  %v4639_v34 = vor.u32 %v5502_v25, %v4636_v4  ;;  %v4587_v56 = vor.u32 %v5493_v53, %v4586_v52  ;;  %v5439_v60 = vld [vmem:[%s6406_s6 + $0x54] sm:$0xf0]  ;;  %v4372_v36 = vld [vmem:[%s6406_s6 + $0x58] sm:$0xf0]  ;;  %v5484_v7 = vld [vmem:[%s6406_s6 + $0x1c4] sm:$0xf] }
 0x1ca   : > { %1676 = vmatmul.bf16.vlgmr.msra.gmra.mxu2 %v6771_v27  ;;  %1695 = vmatmul.bf16.vlgmr.msra.gmra.mxu3 %v6773_v29  ;;  %v6827_v28 = vpack.c.bf16 %v1035_v22, %v1033_v10  ;;  %v5487_v62 = vld [vmem:[%s6406_s6 + $0x1d4] sm:$0xf0]  ;;  %v4591_v1 = vor.u32 %v5490_v58, %v4588_v46  ;;  %v4371_v5 = vor.u32 %v5439_v60, %v4370_v59  ;;  %v4564_v8 = vld [vmem:[%s6406_s6 + $0x1d8] sm:$0xf0]  ;;  %v4346_v47 = vld [vmem:[%s6406_s6 + $0x10] sm:$0xf] }
 0x1cb   : > { %1782 = vmatpush.bf16.msra.mxu0 %v4515_v37  ;;  %1801 = vmatpush.bf16.msra.mxu1 %v4707_v40  ;;  %v4418_v37 = vld [vmem:[%s6406_s6 + $0xa0] sm:$0xf]  ;;  %v4420_v40 = vld [vmem:[%s6406_s6 + $0xb8] sm:$0xf0]  ;;  %v5433_v32 = vld [vmem:[%s6406_s6 + $0x24] sm:$0xf0] }
 0x1cc   : > { %1820 = vmatpush.bf16.msra.mxu2 %v4519_v41  ;;  %1839 = vmatpush.bf16.msra.mxu3 %v4711_v51  ;;  %v4419_v15 = vor.u32 %v5451_v11, %v4418_v37  ;;  %v4611_v41 = vor.u32 %v5499_v39, %v4610_v38  ;;  %v4423_v44 = vor.u32 %v5448_v50, %v4420_v40  ;;  %v5445_v51 = vld [vmem:[%s6406_s6 + $0x84] sm:$0xf0]  ;;  %v4538_v55 = vld [vmem:[%s6406_s6 + $0x190] sm:$0xf]  ;;  %v5430_v9 = vld [vmem:[%s6406_s6 + $0x14] sm:$0xf] }
 0x1cd   : > { %v4395_v54 = vor.u32 %v5445_v51, %v4394_v43  ;;  %v5481_v48 = vld [vmem:[%s6406_s6 + $0x1a4] sm:$0xf0]  ;;  %v4347_v14 = vor.u32 %v5433_v32, %v4346_v47  ;;  %v5478_v18 = vld [vmem:[%s6406_s6 + $0x194] sm:$0xf]  ;;  %v4540_v19 = vld [vmem:[%s6406_s6 + $0x1a8] sm:$0xf0] }
 0x1ce   : > { %v4543_v63 = vor.u32 %v5478_v18, %v4540_v19 }
 0x1cf   : > { %1783 = vmatpush.bf16.msra.mxu0 %v4491_v57  ;;  %1802 = vmatpush.bf16.msra.mxu1 %v4683_v45  ;;  %v5442_v57 = vld [vmem:[%s6406_s6 + $0x74] sm:$0xf]  ;;  %v4396_v45 = vld [vmem:[%s6406_s6 + $0x88] sm:$0xf0] }
 0x1d0   : > { %1821 = vmatpush.bf16.msra.mxu2 %v4495_v61  ;;  %1840 = vmatpush.bf16.msra.mxu3 %v4687_v2  ;;  %v4562_v61 = vld [vmem:[%s6406_s6 + $0x1c0] sm:$0xf]  ;;  %v4399_v31 = vor.u32 %v5442_v57, %v4396_v45  ;;  %v5436_v2 = vld [vmem:[%s6406_s6 + $0x44] sm:$0xf] }
 0x1d1   : > { %v4563_v6 = vor.u32 %v5487_v62, %v4562_v61 }
 0x1d3   : > { %1784 = vmatpush.bf16.msra.mxu0 %v4467_v12  ;;  %1803 = vmatpush.bf16.msra.mxu1 %v4659_v13  ;;  %v4375_v12 = vor.u32 %v5436_v2, %v4372_v36  ;;  %v4567_v13 = vor.u32 %v5484_v7, %v4564_v8 }
 0x1d4   : > { %1822 = vmatpush.bf16.msra.mxu2 %v4471_v16  ;;  %1841 = vmatpush.bf16.msra.mxu3 %v4663_v17  ;;  %v4539_v16 = vor.u32 %v5481_v48, %v4538_v55  ;;  %v4348_v17 = vld [vmem:[%s6406_s6 + $0x28] sm:$0xf0] }
 0x1d5   : > { %v4351_v20 = vor.u32 %v5430_v9, %v4348_v17 }
 0x1d7   : > { %1785 = vmatpush.bf16.msra.mxu0 %v4443_v24  ;;  %1804 = vmatpush.bf16.msra.mxu1 %v4635_v0 }
 0x1d8   : > { %1823 = vmatpush.bf16.msra.mxu2 %v4447_v35  ;;  %1842 = vmatpush.bf16.msra.mxu3 %v4639_v34 }
 0x1d9   : > { %1643 = vmatmul.bf16.gmra.mxu0 %v6825_v30  ;;  %1662 = vmatmul.bf16.gmra.mxu1 %v6827_v28 }
 0x1da   : > { %1681 = vmatmul.bf16.gmra.mxu2 %v6825_v30  ;;  %1700 = vmatmul.bf16.gmra.mxu3 %v6827_v28 }
 0x1db   : > { %1786 = vmatpush.bf16.msra.mxu0 %v4419_v15  ;;  %1805 = vmatpush.bf16.msra.mxu1 %v4611_v41  ;;  %v6896_v15 = vld [vmem:[%s6447_s19] sm:$0x3f]  ;;  %s7724_s19 = sld [smem:[#allocation26_spill]] }
 0x1dc   : > { %1824 = vmatpush.bf16.msra.mxu2 %v4423_v44  ;;  %1843 = vmatpush.bf16.msra.mxu3 %v4615_v49  ;;  %v6899_v39 = vperm.slane %v6896_v15, 3  ;;  %v1140_v50 = vperm.slane %v6896_v15, 2  ;;  %v1139_v44 = vperm.slane %v6896_v15, 1  ;;  %v1138_v51 = vperm.slane %v6896_v15, 0 }
 0x1df   : > { %1787 = vmatpush.bf16.msra.mxu0 %v4395_v54  ;;  %1806 = vmatpush.bf16.msra.mxu1 %v4587_v56 }
 0x1e0   : > { %1825 = vmatpush.bf16.msra.mxu2 %v4399_v31  ;;  %1844 = vmatpush.bf16.msra.mxu3 %v4591_v1 }
 0x1e3   : > { %1788 = vmatpush.bf16.msra.mxu0 %v4371_v5  ;;  %1807 = vmatpush.bf16.msra.mxu1 %v4563_v6 }
 0x1e4   : > { %1826 = vmatpush.bf16.msra.mxu2 %v4375_v12  ;;  %1845 = vmatpush.bf16.msra.mxu3 %v4567_v13 }
 0x1e7   : > { %1789 = vmatpush.bf16.msra.mxu0 %v4347_v14  ;;  %1808 = vmatpush.bf16.msra.mxu1 %v4539_v16 }
 0x1e8   : > { %1827 = vmatpush.bf16.msra.mxu2 %v4351_v20  ;;  %1846 = vmatpush.bf16.msra.mxu3 %v4543_v63 }
 0x1e9   : > { %1714 = vmatmul.bf16.vlgmr.msrb.gmra.mxu0 %v6771_v27  ;;  %1733 = vmatmul.bf16.vlgmr.msrb.gmra.mxu1 %v6773_v29 }
 0x1ea   : > { %1752 = vmatmul.bf16.vlgmr.msrb.gmra.mxu2 %v6771_v27  ;;  %1771 = vmatmul.bf16.vlgmr.msrb.gmra.mxu3 %v6773_v29 }
 0x1f9   : > { %1719 = vmatmul.bf16.gmra.mxu0 %v6825_v30  ;;  %1738 = vmatmul.bf16.gmra.mxu1 %v6827_v28 }
 0x1fa   : > { %1757 = vmatmul.bf16.gmra.mxu2 %v6825_v30  ;;  %1776 = vmatmul.bf16.gmra.mxu3 %v6827_v28 }
 0x209   : > { %1790 = vmatmul.bf16.vlgmr.msra.gmra.mxu0 %v6771_v27  ;;  %1809 = vmatmul.bf16.vlgmr.msra.gmra.mxu1 %v6773_v29 }
 0x20a   : > { %1828 = vmatmul.bf16.vlgmr.msra.gmra.mxu2 %v6771_v27  ;;  %1847 = vmatmul.bf16.vlgmr.msra.gmra.mxu3 %v6773_v29 }
 0x219   : > { %1795 = vmatmul.bf16.gmra.mxu0 %v6825_v30  ;;  %1814 = vmatmul.bf16.gmra.mxu1 %v6827_v28 }
 0x21a   : > { %1833 = vmatmul.bf16.gmra.mxu2 %v6825_v30  ;;  %1852 = vmatmul.bf16.gmra.mxu3 %v6827_v28 }
 0x246   : > { %v1639_v22 = vpop.f32.mrf.mxu0  ;;  %v1658_v23 = vpop.f32.mrf.mxu1 }
 0x247   : > { %v1640_v58 = vadd.f32 %v1639_v22, %v1138_v51 }
 0x249   : > { %v1659_v7 = vadd.f32 %v1658_v23, %v1640_v58 }
 0x24b   : > { %v1858_v14 = vmul.f32 0.088388346, %v1659_v7 }
 0x24d   : > { %v1677_v24 = vpop.f32.mrf.mxu2  ;;  %v1696_v0 = vpop.f32.mrf.mxu3 }
 0x24e   : > { %v1641_v21 = vpop.f32.mrf.mxu0  ;;  %v1660_v25 = vpop.f32.mrf.mxu1  ;;  %v1678_v54 = vadd.f32 %v1677_v24, %v1139_v44 }
 0x24f   : > { %v1642_v56 = vadd.f32 %v1641_v21, %v1138_v51 }
 0x250   : > { %v1697_v2 = vadd.f32 %v1696_v0, %v1678_v54 }
 0x251   : > { %v1661_v36 = vadd.f32 %v1660_v25, %v1642_v56 }
 0x252   : > { %v1859_v55 = vmul.f32 0.088388346, %v1697_v2 }
 0x253   : > { %v1860_v48 = vmul.f32 0.088388346, %v1661_v36 }
 0x254   : > { %v1866_v23 = vpack.c.bf16 %v1859_v55, %v1858_v14 }
 0x255   : > { %v1679_v4 = vpop.f32.mrf.mxu2  ;;  %v1698_v33 = vpop.f32.mrf.mxu3 }
 0x256   : > { %v6881_v27 = vpop.f32.mrf.mxu0  ;;  %v6883_v29 = vpop.f32.mrf.mxu1  ;;  %v1680_v52 = vadd.f32 %v1679_v4, %v1139_v44 }
 0x258   : > { %v1699_v46 = vadd.f32 %v1698_v33, %v1680_v52 }
 0x25a   : > { %v1861_v8 = vmul.f32 0.088388346, %v1699_v46  ;;  %v6916_v46 = vperm.slane %v6896_v15, 5 }
 0x25c   : > { %v1867_v16 = vpack.c.bf16 %v1861_v8, %v1860_v48 }
 0x25d   : > { %v6885_v10 = vpop.f32.mrf.mxu2  ;;  %v6887_v35 = vpop.f32.mrf.mxu3 }
 0x25e   : > { %v6889_v30 = vpop.f32.mrf.mxu0  ;;  %v6891_v28 = vpop.f32.mrf.mxu1  ;;  %v1915_v4 = vunpack.c.l.b16 %v1867_v16 }
 0x265   : > { %v1684_v34 = vpop.f32.mrf.mxu2  ;;  %v6893_v37 = vpop.f32.mrf.mxu3 }
 0x266   : > { %v1715_v11 = vpop.f32.mrf.mxu0  ;;  %v1734_v38 = vpop.f32.mrf.mxu1  ;;  %v1685_v33 = vadd.f32 %v1684_v34, %v1139_v44 }
 0x267   : > { %v1716_v49 = vadd.f32 %v1715_v11, %v1140_v50 }
 0x269   : > { %v1735_v57 = vadd.f32 %v1734_v38, %v1716_v49  ;;  %v1914_v38 = vunpack.c.l.b16 %v1866_v23  ;;  %v1704_v49 = vadd.f32 %v6893_v37, %v1685_v33 }
 0x26b   : > { %v1916_v54 = vpack.c.b16 %v1915_v4, %v1914_v38 }
 0x26d   : > { %v1753_v40 = vpop.f32.mrf.mxu2  ;;  %v1772_v41 = vpop.f32.mrf.mxu3 }
 0x26e   : > { %v1754_v42 = vadd.f32 %v1753_v40, %v6899_v39  ;;  %v1717_v3 = vpop.f32.mrf.mxu0  ;;  %v1736_v43 = vpop.f32.mrf.mxu1  ;;  %v1683_v40 = vadd.f32 %v6885_v10, %v1139_v44 }
 0x26f   : > { %v1718_v45 = vadd.f32 %v1717_v3, %v1140_v50 }
 0x270   : > { %v1773_v53 = vadd.f32 %v1772_v41, %v1754_v42  ;;  %v1647_v41 = vadd.f32 %v6889_v30, %v1138_v51 }
 0x271   : > { %v1737_v5 = vadd.f32 %v1736_v43, %v1718_v45  ;;  %v1645_v43 = vadd.f32 %v6881_v27, %v1138_v51  ;;  %v1702_v45 = vadd.f32 %v6887_v35, %v1683_v40  ;;  %v1865_v27 = vmul.f32 0.088388346, %v1704_v49 }
 0x272   : > { %v1870_v61 = vpack.c.bf16 %v1773_v53, %v1735_v57  ;;  %v1666_v58 = vadd.f32 %v6891_v28, %v1647_v41  ;;  %v1142_v35 = vperm.slane %v6896_v15, 4  ;;  %v2072_v28 = vrot.slane %v1867_v16, 4 }
 0x274   : > { %v2075_v47 = vrot.slane %v1870_v61, 4  ;;  %v1920_v12 = vunpack.c.l.b16 %v1870_v61 }
 0x275   : > { %v1755_v59 = vpop.f32.mrf.mxu2  ;;  %v1774_v60 = vpop.f32.mrf.mxu3 }
 0x276   : > { %v1756_v62 = vadd.f32 %v1755_v59, %v6899_v39  ;;  %v1720_v31 = vpop.f32.mrf.mxu0  ;;  %v1739_v1 = vpop.f32.mrf.mxu1  ;;  %v2087_v19 = vunpack.c.l.b16 %v2075_v47  ;;  %v1863_v59 = vmul.f32 0.088388346, %v1702_v45  ;;  %v2071_v47 = vrot.slane %v1866_v23, 4 }
 0x277   : > { %v1721_v21 = vadd.f32 %v1720_v31, %v1140_v50 }
 0x278   : > { %v1775_v6 = vadd.f32 %v1774_v60, %v1756_v62  ;;  %v1864_v60 = vmul.f32 0.088388346, %v1666_v58  ;;  %v2083_v14 = vunpack.c.l.b16 %v2071_v47 }
 0x279   : > { %v1740_v42 = vadd.f32 %v1739_v1, %v1721_v21 }
 0x27a   : > { %v1871_v32 = vpack.c.bf16 %v1775_v6, %v1737_v5  ;;  %v1869_v1 = vpack.c.bf16 %v1865_v27, %v1864_v60 }
 0x27c   : > { %v1921_v13 = vunpack.c.l.b16 %v1871_v32  ;;  %v2076_v9 = vrot.slane %v1871_v32, 4 }
 0x27d   : > { %v1758_v17 = vpop.f32.mrf.mxu2  ;;  %v1777_v18 = vpop.f32.mrf.mxu3 }
 0x27e   : > { %v2088_v20 = vunpack.c.l.b16 %v2076_v9  ;;  %v1759_v63 = vadd.f32 %v1758_v17, %v6899_v39  ;;  %v1722_v22 = vpop.f32.mrf.mxu0  ;;  %v1741_v24 = vpop.f32.mrf.mxu1  ;;  %v1922_v0 = vpack.c.b16 %v1921_v13, %v1920_v12  ;;  %v2084_v12 = vunpack.c.l.b16 %v2072_v28 }
 0x27f   : > { %v1723_v3 = vadd.f32 %v1722_v22, %v1140_v50  ;;  %v1664_v50 = vadd.f32 %v6883_v29, %v1645_v43  ;;  %v1941_v13 = vunpack.c.l.b16 %v1869_v1 }
 0x280   : > { %1931 = vmatpush.bf16.xpose.msrb.mxu0 %v1922_v0  ;;  %v2089_v25 = vpack.c.b16 %v2088_v20, %v2087_v19  ;;  %v1778_v11 = vadd.f32 %v1777_v18, %v1759_v63  ;;  %v2085_v22 = vpack.c.b16 %v2084_v12, %v2083_v14 }
 0x281   : > { %v1742_v10 = vadd.f32 %v1741_v24, %v1723_v3  ;;  %v1862_v31 = vmul.f32 0.088388346, %v1664_v50 }
 0x282   : > { %v1872_v56 = vpack.c.bf16 %v1778_v11, %v1740_v42  ;;  %v2074_v42 = vrot.slane %v1869_v1, 4 }
 0x283   : > { %v1868_v32 = vpack.c.bf16 %v1863_v59, %v1862_v31 }
 0x284   : > { %v2077_v51 = vrot.slane %v1872_v56, 4  ;;  %v2106_v45 = vunpack.c.l.b16 %v2074_v42 }
 0x285   : > { %v1760_v52 = vpop.f32.mrf.mxu2  ;;  %v1779_v53 = vpop.f32.mrf.mxu3  ;;  %v1940_v16 = vunpack.c.l.b16 %v1868_v32 }
 0x286   : > { %v1761_v57 = vadd.f32 %v1760_v52, %v6899_v39  ;;  %v1791_v34 = vpop.f32.mrf.mxu0  ;;  %v1810_v44 = vpop.f32.mrf.mxu1  ;;  %v1946_v39 = vunpack.c.l.b16 %v1872_v56  ;;  %v2109_v5 = vunpack.c.l.b16 %v2077_v51  ;;  %v2073_v56 = vrot.slane %v1868_v32, 4  ;;  %v1879_v32 = vld [vmem:[%s7724_s19 + $0x8] sm:$0xff] }
 0x287   : > { %1932 = vmatmul.bf16.vlgmr.msrb.gmra.mxu0 %v1916_v54  ;;  %v1792_v55 = vadd.f32 %v1791_v34, %v1142_v35  ;;  %v1942_v63 = vpack.c.b16 %v1941_v13, %v1940_v16 }
 0x288   : > { %2098 = vmatpush.bf16.xpose.msra.mxu0 %v2089_v25  ;;  %v1780_v30 = vadd.f32 %v1779_v53, %v1761_v57 }
 0x289   : > { %v1811_v17 = vadd.f32 %v1810_v44, %v1792_v55 }
 0x28a   : > { %v1873_v37 = vpack.c.bf16 %v1780_v30, %v1742_v10  ;;  %v2105_v30 = vunpack.c.l.b16 %v2073_v56 }
 0x28c   : > { %v1947_v61 = vunpack.c.l.b16 %v1873_v37  ;;  %v2078_v62 = vrot.slane %v1873_v37, 4  ;;  %v2107_v51 = vpack.c.b16 %v2106_v45, %v2105_v30 }
 0x28d   : > { %v1829_v2 = vpop.f32.mrf.mxu2  ;;  %v1848_v36 = vpop.f32.mrf.mxu3 }
 0x28e   : > { %v2110_v29 = vunpack.c.l.b16 %v2078_v62  ;;  %v1830_v6 = vadd.f32 %v1829_v2, %v6916_v46  ;;  %v1793_v7 = vpop.f32.mrf.mxu0  ;;  %v1948_v8 = vpack.c.b16 %v1947_v61, %v1946_v39  ;;  %v1812_v15 = vpop.f32.mrf.mxu1 }
 0x28f   : > { %v1794_v18 = vadd.f32 %v1793_v7, %v1142_v35 }
 0x290   : > { %1957 = vmatpush.bf16.xpose.msrb.mxu1 %v1948_v8  ;;  %v2111_v48 = vpack.c.b16 %v2110_v29, %v2109_v5  ;;  %v1849_v9 = vadd.f32 %v1848_v36, %v1830_v6 }
 0x291   : > { %v1813_v21 = vadd.f32 %v1812_v15, %v1794_v18 }
 0x292   : > { %v1874_v24 = vpack.c.bf16 %v1849_v9, %v1811_v17 }
 0x294   : > { %v2079_v4 = vrot.slane %v1874_v24, 4  ;;  %v2020_v11 = vunpack.c.l.b16 %v1874_v24 }
 0x295   : > { %v1831_v19 = vpop.f32.mrf.mxu2  ;;  %v1850_v20 = vpop.f32.mrf.mxu3 }
 0x296   : > { %v1832_v0 = vadd.f32 %v1831_v19, %v6916_v46  ;;  %v1796_v23 = vpop.f32.mrf.mxu0  ;;  %v1815_v41 = vpop.f32.mrf.mxu1  ;;  %v2180_v49 = vunpack.c.l.b16 %v2079_v4 }
 0x297   : > { %1958 = vmatmul.bf16.vlgmr.msrb.gmra.mxu1 %v1942_v63  ;;  %2099 = vmatmul.bf16.vlgmr.msra.gmra.mxu0 %v2085_v22  ;;  %v1797_v57 = vadd.f32 %v1796_v23, %v1142_v35 }
 0x298   : > { %2120 = vmatpush.bf16.xpose.msra.mxu1 %v2111_v48  ;;  %v1851_v25 = vadd.f32 %v1850_v20, %v1832_v0 }
 0x299   : > { %v1816_v44 = vadd.f32 %v1815_v41, %v1797_v57 }
 0x29a   : > { %v1875_v33 = vpack.c.bf16 %v1851_v25, %v1813_v21 }
 0x29c   : > { %v2021_v38 = vunpack.c.l.b16 %v1875_v33  ;;  %v2080_v40 = vrot.slane %v1875_v33, 4 }
 0x29d   : > { %v1834_v3 = vpop.f32.mrf.mxu2  ;;  %v1853_v43 = vpop.f32.mrf.mxu3 }
 0x29e   : > { %v2181_v52 = vunpack.c.l.b16 %v2080_v40  ;;  %v1835_v53 = vadd.f32 %v1834_v3, %v6916_v46  ;;  %v2022_v54 = vpack.c.b16 %v2021_v38, %v2020_v11  ;;  %v1798_v58 = vpop.f32.mrf.mxu0  ;;  %v1817_v60 = vpop.f32.mrf.mxu1 }
 0x29f   : > { %v1799_v50 = vadd.f32 %v1798_v58, %v1142_v35 }
 0x2a0   : > { %2034 = vmatpush.bf16.msrb.mxu2 %v2022_v54  ;;  %v2182_v34 = vpack.c.b16 %v2181_v52, %v2180_v49  ;;  %v1854_v10 = vadd.f32 %v1853_v43, %v1835_v53 }
 0x2a1   : > { %v1818_v61 = vadd.f32 %v1817_v60, %v1799_v50 }
 0x2a2   : > { %v1876_v37 = vpack.c.bf16 %v1854_v10, %v1816_v44 }
 0x2a4   : > { %2194 = vmatpush.bf16.msra.mxu2 %v2182_v34  ;;  %v2081_v28 = vrot.slane %v1876_v37, 4  ;;  %v2048_v1 = vunpack.c.l.b16 %v1876_v37 }
 0x2a5   : > { %v1836_v27 = vpop.f32.mrf.mxu2  ;;  %v1855_v39 = vpop.f32.mrf.mxu3 }
 0x2a6   : > { %v1837_v59 = vadd.f32 %v1836_v27, %v6916_v46  ;;  %v2206_v5 = vunpack.c.l.b16 %v2081_v28  ;;  %v1878_v46 = vld [vmem:[%s7724_s19] sm:$0xff] }
 0x2a7   : > { %2121 = vmatmul.bf16.vlgmr.msra.gmra.mxu1 %v2107_v51 }
 0x2a8   : > { %v1856_v62 = vadd.f32 %v1855_v39, %v1837_v59 }
 0x2aa   : > { %v1877_v31 = vpack.c.bf16 %v1856_v62, %v1818_v61 }
 0x2ac   : > { %v2049_v2 = vunpack.c.l.b16 %v1877_v31  ;;  %v2082_v36 = vrot.slane %v1877_v31, 4 }
 0x2ae   : > { %v2207_v29 = vunpack.c.l.b16 %v2082_v36  ;;  %v2050_v6 = vpack.c.b16 %v2049_v2, %v2048_v1 }
 0x2b0   : > { %2062 = vmatpush.bf16.msrb.mxu3 %v2050_v6  ;;  %v2208_v35 = vpack.c.b16 %v2207_v29, %v2206_v5 }
 0x2b4   : > { %2220 = vmatpush.bf16.msra.mxu3 %v2208_v35 }
 0x304   : > { %v1933_v7 = vpop.f32.mrf.mxu0 }
 0x305   : > { %v1934_v8 = vadd.f32 %v1933_v7, %v1878_v46 }
 0x307   : > { %v1965_v47 = vsel %vm1964_vm13, %v1934_v8, -inf }
 0x308   : > { %1966 = vmax.xlane.f32.xlu2 %v1965_v47 }
 0x30c   : > { %v1935_v55 = vpop.f32.mrf.mxu0 }
 0x30d   : > { %v1936_v48 = vadd.f32 %v1935_v55, %v1879_v32 }
 0x30f   : > { %v1968_v12 = vsel %vm1964_vm13, %v1936_v48, -inf }
 0x310   : > { %1969 = vmax.xlane.f32.xlu0 %v1968_v12 }
 0x314   : > { %v1959_v13 = vpop.f32.mrf.mxu1  ;;  %v2100_v9 = vpop.f32.mrf.mxu0 }
 0x315   : > { %v1960_v15 = vadd.f32 %v1959_v13, %v1878_v46  ;;  %v2101_v14 = vadd.f32 %v2100_v9, %v1878_v46 }
 0x317   : > { %v2127_v16 = vsel %vm1964_vm13, %v2101_v14, -inf  ;;  %v1971_v17 = vsel %vm1964_vm13, %v1960_v15, -inf }
 0x318   : > { %2128 = vmax.xlane.f32.xlu0 %v2127_v16  ;;  %1972 = vmax.xlane.f32.xlu1 %v1971_v17 }
 0x31c   : > { %v1961_v18 = vpop.f32.mrf.mxu1  ;;  %v2102_v19 = vpop.f32.mrf.mxu0 }
 0x31d   : > { %v1962_v20 = vadd.f32 %v1961_v18, %v1879_v32  ;;  %v2103_v63 = vadd.f32 %v2102_v19, %v1879_v32 }
 0x31f   : > { %v1974_v22 = vsel %vm1964_vm13, %v1962_v20, -inf  ;;  %v2130_v24 = vsel %vm1964_vm13, %v2103_v63, -inf }
 0x320   : > { %1975 = vmax.xlane.f32.xlu2 %v1974_v22  ;;  %2131 = vmax.xlane.f32.xlu1 %v2130_v24  ;;  %v5539_v22 = vld [vmem:[%s6440_s22 + $0x74] sm:$0xf0] }
 0x324   : > { %v2122_v0 = vpop.f32.mrf.mxu1 }
 0x325   : > { %v2123_v23 = vadd.f32 %v2122_v0, %v1878_v46 }
 0x327   : > { %v2133_v21 = vsel %vm1964_vm13, %v2123_v23, -inf }
 0x328   : > { %2134 = vmax.xlane.f32.xlu2 %v2133_v21  ;;  %v4830_v21 = vld [vmem:[%s6440_s22 + $0x60] sm:$0xf] }
 0x32c   : > { %v2124_v25 = vpop.f32.mrf.mxu1 }
 0x32d   : > { %v2125_v4 = vadd.f32 %v2124_v25, %v1879_v32  ;;  %v5537_v25 = vld [vmem:[%s6440_s22 + $0x64] sm:$0xf0] }
 0x32f   : > { %v2136_v33 = vsel %vm1964_vm13, %v2125_v4, -inf }
 0x330   : > { %2137 = vmax.xlane.f32.xlu0 %v2136_v33  ;;  %v4831_v33 = vor.u32 %v5537_v25, %v4830_v21  ;;  %v5552_v21 = vld [vmem:[%s6440_s22 + $0xe4] sm:$0xf] }
 0x37b   : > { %v1967_v11 = vpop.xlane.xlu2 %1966 }
 0x37c   : > { %v1977_v38 = vsub.f32 %v1934_v8, %v1967_v11 }
 0x37e   : > { %v1981_v40 = vmul.f32 1.442695, %v1977_v38  ;;  %v4822_v38 = vld [vmem:[%s6440_s22 + $0x50] sm:$0xf] }
 0x380   : > { %5819 = vpow2.f32 %v1981_v40  ;;  %v5535_v40 = vld [vmem:[%s6440_s22 + $0x54] sm:$0xf0] }
 0x383   : > { %v1970_v41 = vpop.xlane.xlu0 %1969 }
 0x384   : > { %v1978_v42 = vsub.f32 %v1936_v48, %v1970_v41 }
 0x386   : > { %v5820_v3 = vpop.eup %5819  ;;  %v1983_v43 = vmul.f32 1.442695, %v1978_v42  ;;  %v4774_v42 = vld [vmem:[%s6440_s22 + $0xf0] sm:$0xf] }
 0x387   : > { %v1989_v49 = vsel %vm1964_vm13, %v5820_v3, 0.0 }
 0x388   : > { %5821 = vpow2.f32 %v1983_v43  ;;  %1990 = vadd.xlane.f32.xlu1 %v1989_v49  ;;  %v5554_v49 = vld [vmem:[%s6440_s22 + $0xf4] sm:$0xf] }
 0x38b   : > { %v2129_v52 = vpop.xlane.xlu0 %2128  ;;  %v1973_v53 = vpop.xlane.xlu1 %1972 }
 0x38c   : > { %v2139_v54 = vsub.f32 %v2101_v14, %v2129_v52  ;;  %v1979_v56 = vsub.f32 %v1960_v15, %v1973_v53  ;;  %v4776_v52 = vld [vmem:[%s6440_s22 + $0xf8] sm:$0xf0] }
 0x38e   : > { %v5822_v57 = vpop.eup %5821  ;;  %v2143_v34 = vmul.f32 1.442695, %v2139_v54  ;;  %v1985_v45 = vmul.f32 1.442695, %v1979_v56  ;;  %v4823_v54 = vor.u32 %v5535_v40, %v4822_v38  ;;  %v4779_v56 = vor.u32 %v5554_v49, %v4776_v52  ;;  %v5551_v49 = vld [vmem:[%s6440_s22 + $0xd4] sm:$0xf0] }
 0x38f   : > { %v1992_v58 = vsel %vm1964_vm13, %v5822_v57, 0.0  ;;  %v5550_v52 = vld [vmem:[%s6440_s22 + $0xd4] sm:$0xf] }
 0x390   : > { %5823 = vpow2.f32 %v2143_v34  ;;  %1993 = vadd.xlane.f32.xlu2 %v1992_v58  ;;  %2328 = vmatpush.bf16.msrb.mxu1 %v4779_v56 }
 0x391   : > { %5825 = vpow2.f32 %v1985_v45 }
 0x393   : > { %v1976_v10 = vpop.xlane.xlu2 %1975  ;;  %v2132_v30 = vpop.xlane.xlu1 %2131 }
 0x394   : > { %v1980_v44 = vsub.f32 %v1962_v20, %v1976_v10  ;;  %v2140_v50 = vsub.f32 %v2103_v63, %v2132_v30  ;;  %v4838_v63 = vld [vmem:[%s6440_s22 + $0x70] sm:$0xf]  ;;  %v4814_v10 = vld [vmem:[%s6440_s22 + $0x40] sm:$0xf]  ;;  %v5533_v30 = vld [vmem:[%s6440_s22 + $0x44] sm:$0xf0] }
 0x396   : > { %v6939_v27 = vpop.eup %5823  ;;  %v1987_v51 = vmul.f32 1.442695, %v1980_v44  ;;  %v2145_v37 = vmul.f32 1.442695, %v2140_v50 }
 0x397   : > { %v5826_v59 = vpop.eup %5825  ;;  %v2151_v60 = vsel %vm1964_vm13, %v6939_v27, 0.0 }
 0x398   : > { %5827 = vpow2.f32 %v1987_v51  ;;  %2152 = vadd.xlane.f32.xlu2 %v2151_v60  ;;  %v1995_v39 = vsel %vm1964_vm13, %v5826_v59, 0.0  ;;  %v5538_v51 = vld [vmem:[%s6440_s22 + $0x74] sm:$0xf]  ;;  %v4815_v60 = vor.u32 %v5533_v30, %v4814_v10  ;;  %v4792_v10 = vld [vmem:[%s6440_s22 + $0x18] sm:$0xf0] }
 0x399   : > { %5829 = vpow2.f32 %v2145_v37  ;;  %1996 = vadd.xlane.f32.xlu0 %v1995_v39  ;;  %v4840_v37 = vld [vmem:[%s6440_s22 + $0x78] sm:$0xf0] }
 0x39b   : > { %v2135_v61 = vpop.xlane.xlu2 %2134 }
 0x39c   : > { %v2141_v62 = vsub.f32 %v2123_v23, %v2135_v61  ;;  %v4839_v23 = vor.u32 %v5539_v22, %v4838_v63  ;;  %v4808_v63 = vld [vmem:[%s6440_s22 + $0x38] sm:$0xf0] }
 0x39e   : > { %v6944_v28 = vpop.eup %5827  ;;  %v2147_v31 = vmul.f32 1.442695, %v2141_v62  ;;  %v4806_v62 = vld [vmem:[%s6440_s22 + $0x30] sm:$0xf] }
 0x39f   : > { %v6946_v1 = vpop.eup %5829  ;;  %v1998_v2 = vsel %vm1964_vm13, %v6944_v28, 0.0 }
 0x3a0   : > { %5831 = vpow2.f32 %v2147_v31  ;;  %1999 = vadd.xlane.f32.xlu1 %v1998_v2  ;;  %v2154_v36 = vsel %vm1964_vm13, %v6946_v1, 0.0 }
 0x3a1   : > { %2155 = vadd.xlane.f32.xlu0 %v2154_v36  ;;  %v4843_v36 = vor.u32 %v5538_v51, %v4840_v37  ;;  %v4752_v37 = vld [vmem:[%s6440_s22 + $0xc8] sm:$0xf0] }
 0x3a3   : > { %v2138_v5 = vpop.xlane.xlu0 %2137 }
 0x3a4   : > { %v2142_v29 = vsub.f32 %v2125_v4, %v2138_v5  ;;  %v5536_v5 = vld [vmem:[%s6440_s22 + $0x64] sm:$0xf] }
 0x3a6   : > { %v6952_v6 = vpop.eup %5831  ;;  %v2149_v35 = vmul.f32 1.442695, %v2142_v29  ;;  %v4832_v29 = vld [vmem:[%s6440_s22 + $0x68] sm:$0xf0] }
 0x3a7   : > { %v2157_v46 = vsel %vm1964_vm13, %v6952_v6, 0.0 }
 0x3a8   : > { %5833 = vpow2.f32 %v2149_v35  ;;  %2158 = vadd.xlane.f32.xlu1 %v2157_v46 }
 0x3ae   : > { %v6956_v7 = vpop.eup %5833 }
 0x3af   : > { %v2160_v8 = vsel %vm1964_vm13, %v6956_v7, 0.0 }
 0x3b0   : > { %2161 = vadd.xlane.f32.xlu2 %v2160_v8 }
 0x3fb   : > { %v1991_v47 = vpop.xlane.xlu1 %1990 }
 0x3fc   : > { %5835 = vrcp.f32 %v1991_v47 }
 0x402   : > { %v5836_v55 = vpop.eup %5835 }
 0x403   : > { %v1994_v32 = vpop.xlane.xlu2 %1993  ;;  %v2005_v48 = vmul.f32 %v5836_v55, %v5820_v3  ;;  %v5555_v3 = vld [vmem:[%s6440_s22 + $0xf4] sm:$0xf0]  ;;  %v5534_v55 = vld [vmem:[%s6440_s22 + $0x54] sm:$0xf] }
 0x404   : > { %5837 = vrcp.f32 %v1994_v32  ;;  %v4775_v43 = vor.u32 %v5555_v3, %v4774_v42  ;;  %v4835_v32 = vor.u32 %v5536_v5, %v4832_v29  ;;  %v4800_v42 = vld [vmem:[%s6440_s22 + $0x28] sm:$0xf0]  ;;  %v4758_v3 = vld [vmem:[%s6440_s22 + $0xd0] sm:$0xf]  ;;  %v4744_v29 = vld [vmem:[%s6440_s22 + $0xb8] sm:$0xf0] }
 0x405   : > { %v2009_v13 = vpack.c.bf16 %v2005_v48, %v2005_v48  ;;  %v4824_v48 = vld [vmem:[%s6440_s22 + $0x58] sm:$0xf0] }
 0x406   : > { %2309 = vmatpush.bf16.msrb.mxu0 %v4775_v43 }
 0x407   : > { %v2015_v17 = vunpack.c.l.b16 %v2009_v13  ;;  %v4827_v13 = vor.u32 %v5534_v55, %v4824_v48  ;;  %v4736_v55 = vld [vmem:[%s6440_s22 + $0xa8] sm:$0xf0] }
 0x40a   : > { %v5838_v12 = vpop.eup %5837 }
 0x40b   : > { %v2006_v9 = vmul.f32 %v5838_v12, %v5822_v57  ;;  %v2153_v15 = vpop.xlane.xlu2 %2152 }
 0x40c   : > { %v1997_v14 = vpop.xlane.xlu0 %1996 }
 0x40d   : > { %v2010_v16 = vpack.c.bf16 %v2006_v9, %v2006_v9  ;;  %5839 = vrcp.f32 %v1997_v14  ;;  %v5532_v9 = vld [vmem:[%s6440_s22 + $0x44] sm:$0xf] }
 0x40e   : > { %5841 = vrcp.f32 %v2153_v15  ;;  %v4816_v15 = vld [vmem:[%s6440_s22 + $0x48] sm:$0xf0] }
 0x40f   : > { %v2016_v18 = vunpack.c.l.b16 %v2010_v16 }
 0x411   : > { %v2017_v19 = vpack.c.b16 %v2016_v18, %v2015_v17  ;;  %v4819_v18 = vor.u32 %v5532_v9, %v4816_v15  ;;  %v5542_v9 = vld [vmem:[%s6440_s22 + $0x94] sm:$0xf] }
 0x413   : > { %4712 = vmatmul.msk.bf16.vlgmr.msrb.gmra.mxu2 %vm1964_vm13, %v2017_v19  ;;  %v2000_v20 = vpop.xlane.xlu1 %1999  ;;  %v5840_v24 = vpop.eup %5839 }
 0x414   : > { %v2156_v0 = vpop.xlane.xlu0 %2155  ;;  %5843 = vrcp.f32 %v2000_v20  ;;  %v5842_v4 = vpop.eup %5841  ;;  %2427 = vmatpush.bf16.msrb.mxu2 %v4839_v23  ;;  %v2007_v11 = vmul.f32 %v5840_v24, %v5826_v59  ;;  %v5530_v20 = vld [vmem:[%s6440_s22 + $0x34] sm:$0xf]  ;;  %v5553_v23 = vld [vmem:[%s6440_s22 + $0xe4] sm:$0xf0] }
 0x415   : > { %5845 = vrcp.f32 %v2156_v0  ;;  %v2167_v41 = vmul.f32 %v5842_v4, %v6939_v27  ;;  %v4811_v24 = vor.u32 %v5530_v20, %v4808_v63  ;;  %v4768_v4 = vld [vmem:[%s6440_s22 + $0xe8] sm:$0xf0] }
 0x416   : > { %v2011_v34 = vpack.c.bf16 %v2007_v11, %v2007_v11  ;;  %v5529_v11 = vld [vmem:[%s6440_s22 + $0x24] sm:$0xf0]  ;;  %v4771_v38 = vor.u32 %v5552_v21, %v4768_v4  ;;  %v4720_v63 = vld [vmem:[%s6440_s22 + $0x88] sm:$0xf0] }
 0x417   : > { %v2171_v44 = vpack.c.bf16 %v2167_v41, %v2167_v41  ;;  %v5528_v41 = vld [vmem:[%s6440_s22 + $0x24] sm:$0xf] }
 0x418   : > { %2428 = vmatpush.bf16.msrb.mxu2 %v4831_v33  ;;  %v2043_v39 = vunpack.c.l.b16 %v2011_v34  ;;  %v4798_v33 = vld [vmem:[%s6440_s22 + $0x20] sm:$0xf]  ;;  %v4803_v43 = vor.u32 %v5528_v41, %v4800_v42  ;;  %2329 = vmatpush.bf16.msrb.mxu1 %v4771_v38  ;;  %v5527_v34 = vld [vmem:[%s6440_s22 + $0x14] sm:$0xf0] }
 0x419   : > { %v2177_v31 = vunpack.c.l.b16 %v2171_v44  ;;  %v4799_v40 = vor.u32 %v5529_v11, %v4798_v33  ;;  %v4750_v44 = vld [vmem:[%s6440_s22 + $0xc0] sm:$0xf] }
 0x41a   : > { %v5844_v53 = vpop.eup %5843 }
 0x41b   : > { %v5846_v57 = vpop.eup %5845  ;;  %v2008_v45 = vmul.f32 %v5844_v53, %v6944_v28  ;;  %v2159_v58 = vpop.xlane.xlu1 %2158  ;;  %v5531_v28 = vld [vmem:[%s6440_s22 + $0x34] sm:$0xf0]  ;;  %v4760_v53 = vld [vmem:[%s6440_s22 + $0xd8] sm:$0xf0] }
 0x41c   : > { %v2168_v50 = vmul.f32 %v5846_v57, %v6946_v1  ;;  %5847 = vrcp.f32 %v2159_v58  ;;  %2429 = vmatpush.bf16.msrb.mxu2 %v4823_v54  ;;  %v4807_v46 = vor.u32 %v5531_v28, %v4806_v62  ;;  %v4759_v54 = vor.u32 %v5551_v49, %v4758_v3  ;;  %v4790_v57 = vld [vmem:[%s6440_s22 + $0x10] sm:$0xf]  ;;  %v5524_v62 = vld [vmem:[%s6440_s22 + $0x4] sm:$0xf]  ;;  %v4784_v28 = vld [vmem:[%s6440_s22 + $0x8] sm:$0xf0] }
 0x41d   : > { %v2012_v27 = vpack.c.bf16 %v2008_v45, %v2008_v45  ;;  %v4763_v56 = vor.u32 %v5550_v52, %v4760_v53  ;;  %v5526_v45 = vld [vmem:[%s6440_s22 + $0x14] sm:$0xf]  ;;  %v4791_v58 = vor.u32 %v5527_v34, %v4790_v57  ;;  %v2473_v3 = vld [vmem:[%s7725_s15] sm:$0x3] }
 0x41e   : > { %v2172_v59 = vpack.c.bf16 %v2168_v50, %v2168_v50  ;;  %v4795_v30 = vor.u32 %v5526_v45, %v4792_v10  ;;  %v5549_v50 = vld [vmem:[%s6440_s22 + $0xc4] sm:$0xf0]  ;;  %v2475_v53 = vperm.slane %v2473_v3, 0  ;;  %v5859_v45 = vld [vmem:[#allocation2 + $0x30] sm:$0xff]  ;;  %v5860_v10 = vld [vmem:[#allocation2] sm:$0xff] }
 0x41f   : > { %v2044_v61 = vunpack.c.l.b16 %v2012_v27  ;;  %2330 = vmatpush.bf16.msrb.mxu1 %v4763_v56  ;;  %v5548_v27 = vld [vmem:[%s6440_s22 + $0xc4] sm:$0xf]  ;;  %v4751_v51 = vor.u32 %v5549_v50, %v4750_v44  ;;  %v2476_v56 = vperm.slane %v2473_v3, 1 }
 0x420   : > { %v2178_v2 = vunpack.c.l.b16 %v2172_v59  ;;  %2430 = vmatpush.bf16.msrb.mxu2 %v4815_v60  ;;  %v4782_v59 = vld [vmem:[%s6440_s22] sm:$0xf]  ;;  %v5525_v60 = vld [vmem:[%s6440_s22 + $0x4] sm:$0xf0] }
 0x421   : > { %v2045_v1 = vpack.c.b16 %v2044_v61, %v2043_v39  ;;  %v4755_v39 = vor.u32 %v5548_v27, %v4752_v37  ;;  %v4783_v61 = vor.u32 %v5525_v60, %v4782_v59 }
 0x422   : > { %v2179_v35 = vpack.c.b16 %v2178_v2, %v2177_v31  ;;  %v5848_v47 = vpop.eup %5847  ;;  %v4787_v31 = vor.u32 %v5524_v62, %v4784_v28  ;;  %v4742_v2 = vld [vmem:[%s6440_s22 + $0xb0] sm:$0xf] }
 0x423   : > { %v2162_v8 = vpop.xlane.xlu2 %2161  ;;  %4713 = vmatmul.msk.bf16.vlgmr.msrb.gmra.mxu3 %vm1964_vm13, %v2045_v1  ;;  %v2169_v12 = vmul.f32 %v5848_v47, %v6952_v6  ;;  %2331 = vmatpush.bf16.msrb.mxu1 %v4755_v39  ;;  %v5546_v1 = vld [vmem:[%s6440_s22 + $0xb4] sm:$0xf]  ;;  %v5544_v47 = vld [vmem:[%s6440_s22 + $0xa4] sm:$0xf]  ;;  %v5861_v39 = vld [vmem:[#allocation2 + $0x18] sm:$0xff] }
 0x424   : > { %5849 = vrcp.f32 %v2162_v8  ;;  %4714 = vmatmul.msk.bf16.vlgmr.msra.gmra.mxu2 %vm1964_vm13, %v2179_v35  ;;  %2446 = vmatpush.bf16.msrb.mxu3 %v4843_v36  ;;  %v5547_v36 = vld [vmem:[%s6440_s22 + $0xb4] sm:$0xf0]  ;;  %v4747_v35 = vor.u32 %v5546_v1, %v4744_v29  ;;  %v5545_v8 = vld [vmem:[%s6440_s22 + $0xa4] sm:$0xf0]  ;;  %v4739_v48 = vor.u32 %v5544_v47, %v4736_v55  ;;  %v5862_v62 = vld [vmem:[#allocation2 + $0x10] sm:$0xff] }
 0x425   : > { %2431 = vmatpush.bf16.msrb.mxu2 %v4807_v46  ;;  %v2173_v16 = vpack.c.bf16 %v2169_v12, %v2169_v12  ;;  %v4743_v5 = vor.u32 %v5547_v36, %v4742_v2  ;;  %v4734_v46 = vld [vmem:[%s6440_s22 + $0xa0] sm:$0xf]  ;;  %v4726_v12 = vld [vmem:[%s6440_s22 + $0x90] sm:$0xf]  ;;  %v5863_v47 = vld [vmem:[#allocation2 + $0x8] sm:$0xff] }
 0x426   : > { %v5864_v55 = vld [vmem:[#allocation2 + $0x20] sm:$0xff] }
 0x427   : > { %v2203_v6 = vunpack.c.l.b16 %v2173_v16  ;;  %2332 = vmatpush.bf16.msrb.mxu1 %v4747_v35 }
 0x428   : > { %2447 = vmatpush.bf16.msrb.mxu3 %v4835_v32  ;;  %v4735_v32 = vor.u32 %v5545_v8, %v4734_v46 }
 0x429   : > { %2432 = vmatpush.bf16.msrb.mxu2 %v4799_v40 }
 0x42a   : > { %v5850_v14 = vpop.eup %5849 }
 0x42b   : > { %v2170_v17 = vmul.f32 %v5850_v14, %v6956_v7  ;;  %v4766_v7 = vld [vmem:[%s6440_s22 + $0xe0] sm:$0xf]  ;;  %2333 = vmatpush.bf16.msrb.mxu1 %v4739_v48  ;;  %v4728_v14 = vld [vmem:[%s6440_s22 + $0x98] sm:$0xf0] }
 0x42c   : > { %2448 = vmatpush.bf16.msrb.mxu3 %v4827_v13  ;;  %v4767_v25 = vor.u32 %v5553_v23, %v4766_v7  ;;  %v5543_v13 = vld [vmem:[%s6440_s22 + $0x94] sm:$0xf0]  ;;  %v4731_v16 = vor.u32 %v5542_v9, %v4728_v14 }
 0x42d   : > { %v2174_v19 = vpack.c.bf16 %v2170_v17, %v2170_v17  ;;  %2433 = vmatpush.bf16.msrb.mxu2 %v4791_v58  ;;  %v4727_v15 = vor.u32 %v5543_v13, %v4726_v12  ;;  %v4718_v17 = vld [vmem:[%s6440_s22 + $0x80] sm:$0xf] }
 0x42e   : > { %2310 = vmatpush.bf16.msrb.mxu0 %v4767_v25 }
 0x42f   : > { %v2204_v22 = vunpack.c.l.b16 %v2174_v19  ;;  %2334 = vmatpush.bf16.msrb.mxu1 %v4731_v16  ;;  %v5540_v19 = vld [vmem:[%s6440_s22 + $0x84] sm:$0xf] }
 0x430   : > { %2449 = vmatpush.bf16.msrb.mxu3 %v4819_v18  ;;  %v5541_v18 = vld [vmem:[%s6440_s22 + $0x84] sm:$0xf0] }
 0x431   : > { %v2205_v0 = vpack.c.b16 %v2204_v22, %v2203_v6  ;;  %2434 = vmatpush.bf16.msrb.mxu2 %v4783_v61  ;;  %v4719_v20 = vor.u32 %v5541_v18, %v4718_v17  ;;  %v4723_v6 = vor.u32 %v5540_v19, %v4720_v63 }
 0x432   : > { %2311 = vmatpush.bf16.msrb.mxu0 %v4759_v54 }
 0x433   : > { %4715 = vmatmul.msk.bf16.vlgmr.msra.gmra.mxu3 %vm1964_vm13, %v2205_v0  ;;  %2335 = vmatpush.bf16.msrb.mxu1 %v4723_v6  ;;  %v5866_v6 = vld [vmem:[#allocation2 + $0x38] sm:$0xff] }
 0x434   : > { %2450 = vmatpush.bf16.msrb.mxu3 %v4811_v24 }
 0x436   : > { %2312 = vmatpush.bf16.msrb.mxu0 %v4751_v51 }
 0x438   : > { %2451 = vmatpush.bf16.msrb.mxu3 %v4803_v43 }
 0x43a   : > { %2313 = vmatpush.bf16.msrb.mxu0 %v4743_v5 }
 0x43c   : > { %2452 = vmatpush.bf16.msrb.mxu3 %v4795_v30 }
 0x43e   : > { %2314 = vmatpush.bf16.msrb.mxu0 %v4735_v32 }
 0x440   : > { %2453 = vmatpush.bf16.msrb.mxu3 %v4787_v31 }
 0x442   : > { %2315 = vmatpush.bf16.msrb.mxu0 %v4727_v15 }
 0x446   : > { %2316 = vmatpush.bf16.msrb.mxu0 %v4719_v20  ;;  %v5865_v20 = vld [vmem:[#allocation2 + $0x28] sm:$0xff] }
 0x496   : > { %v2036_v22 = vpop.f32.mrf.mxu2 }
 0x49e   : > { %v2038_v24 = vpop.f32.mrf.mxu2 }
 0x49f   : > { %v2069_v0 = vpack.c.bf16 %v2038_v24, %v2036_v22 }
 0x4a1   : > { %2435 = vmatmul.bf16.vlgmr.msrb.gmra.mxu2 %v2069_v0  ;;  %2454 = vmatmul.bf16.vlgmr.msrb.gmra.mxu3 %v2069_v0 }
 0x4a6   : > { %v2064_v7 = vpop.f32.mrf.mxu3 }
 0x4a7   : > { %v2196_v23 = vpop.f32.mrf.mxu2 }
 0x4ae   : > { %v2066_v21 = vpop.f32.mrf.mxu3 }
 0x4af   : > { %v2070_v25 = vpack.c.bf16 %v2066_v21, %v2064_v7  ;;  %v2198_v4 = vpop.f32.mrf.mxu2 }
 0x4b0   : > { %v2227_v33 = vpack.c.bf16 %v2198_v4, %v2196_v23 }
 0x4b1   : > { %2440 = vmatmul.bf16.gmra.mxu2 %v2070_v25  ;;  %2459 = vmatmul.bf16.gmra.mxu3 %v2070_v25 }
 0x4b2   : > { %2317 = vmatmul.bf16.vlgmr.msrb.gmra.mxu0 %v2227_v33  ;;  %2336 = vmatmul.bf16.vlgmr.msrb.gmra.mxu1 %v2227_v33 }
 0x4b6   : > { %v2222_v11 = vpop.f32.mrf.mxu3 }
 0x4be   : > { %v2224_v38 = vpop.f32.mrf.mxu3 }
 0x4bf   : > { %v2228_v40 = vpack.c.bf16 %v2224_v38, %v2222_v11 }
 0x4c2   : > { %2322 = vmatmul.bf16.gmra.mxu0 %v2228_v40  ;;  %2341 = vmatmul.bf16.gmra.mxu1 %v2228_v40 }
 0x524   : > { %v2436_v41 = vpop.f32.mrf.mxu2  ;;  %v2455_v42 = vpop.f32.mrf.mxu3 }
 0x52c   : > { %v2438_v57 = vpop.f32.mrf.mxu2  ;;  %v2457_v34 = vpop.f32.mrf.mxu3 }
 0x52f   : > { %v2318_v43 = vpop.f32.mrf.mxu0  ;;  %v2337_v49 = vpop.f32.mrf.mxu1 }
 0x530   : > { %v2437_v52 = vadd.f32 %v2436_v41, %v2318_v43  ;;  %v2456_v54 = vadd.f32 %v2455_v42, %v2337_v49 }
 0x532   : > { %v2465_v58 = vadd.f32 %v5859_v45, %v2437_v52  ;;  %v2466_v30 = vadd.f32 %v5860_v10, %v2456_v54 }
 0x534   : > { %v7038_v44 = vadd.f32 %v2475_v53, %v2465_v58  ;;  %v7040_v50 = vadd.f32 %v2476_v56, %v2466_v30  ;;  %v2441_v31 = vpop.f32.mrf.mxu2  ;;  %v2460_v2 = vpop.f32.mrf.mxu3 }
 0x536   : > { %v2489_v27 = vadd.f32 %v7040_v50, %v7038_v44 }
 0x537   : > { %v2320_v51 = vpop.f32.mrf.mxu0  ;;  %v2339_v37 = vpop.f32.mrf.mxu1 }
 0x538   : > { %v2439_v59 = vadd.f32 %v2438_v57, %v2320_v51  ;;  %v2458_v60 = vadd.f32 %v2457_v34, %v2339_v37  ;;  %2490 = vadd.xlane.f32.xlu0 %v2489_v27 }
 0x53a   : > { %v2467_v61 = vadd.f32 %v5861_v39, %v2439_v59  ;;  %v2468_v28 = vadd.f32 %v5862_v62, %v2458_v60  ;;  %v4958_v39 = vld [vmem:[%s6456_s26 + $0xe0] sm:$0xf] }
 0x53b   : > { %v5086_v62 = vld [vmem:[%s6456_s26 + $0x1e0] sm:$0xf] }
 0x53c   : > { %v7044_v36 = vadd.f32 %v2475_v53, %v2467_v61  ;;  %v7046_v1 = vadd.f32 %v2476_v56, %v2468_v28  ;;  %v2443_v9 = vpop.f32.mrf.mxu2  ;;  %v2462_v15 = vpop.f32.mrf.mxu3  ;;  %v5586_v61 = vld [vmem:[%s6456_s26 + $0xec] sm:$0xf0] }
 0x53d   : > { %v4959_v28 = vor.u32 %v5586_v61, %v4958_v39  ;;  %v4894_v61 = vld [vmem:[%s6456_s26 + $0x60] sm:$0xf] }
 0x53e   : > { %v2492_v5 = vadd.f32 %v7046_v1, %v7044_v36 }
 0x53f   : > { %v2323_v29 = vpop.f32.mrf.mxu0  ;;  %v2342_v35 = vpop.f32.mrf.mxu1  ;;  %3013 = vmatpush.bf16.msra.mxu0 %v4959_v28  ;;  %v5022_v28 = vld [vmem:[%s6456_s26 + $0x160] sm:$0xf] }
 0x540   : > { %v2442_v46 = vadd.f32 %v2441_v31, %v2323_v29  ;;  %v2461_v8 = vadd.f32 %v2460_v2, %v2342_v35  ;;  %2493 = vadd.xlane.f32.xlu1 %v2492_v5  ;;  %v5618_v31 = vld [vmem:[%s6456_s26 + $0x1ec] sm:$0xf0]  ;;  %v5584_v2 = vld [vmem:[%s6456_s26 + $0xe4] sm:$0xf]  ;;  %v4960_v5 = vld [vmem:[%s6456_s26 + $0xf0] sm:$0xf0] }
 0x541   : > { %v5087_v29 = vor.u32 %v5618_v31, %v5086_v62  ;;  %v4963_v35 = vor.u32 %v5584_v2, %v4960_v5  ;;  %v5570_v62 = vld [vmem:[%s6456_s26 + $0x6c] sm:$0xf0]  ;;  %v5568_v5 = vld [vmem:[%s6456_s26 + $0x64] sm:$0xf] }
 0x542   : > { %v2469_v32 = vadd.f32 %v5863_v47, %v2442_v46  ;;  %v2470_v48 = vadd.f32 %v5864_v55, %v2461_v8  ;;  %v5616_v46 = vld [vmem:[%s6456_s26 + $0x1e4] sm:$0xf]  ;;  %v5088_v8 = vld [vmem:[%s6456_s26 + $0x1f0] sm:$0xf0]  ;;  %v5582_v55 = vld [vmem:[%s6456_s26 + $0xcc] sm:$0xf0]  ;;  %v4895_v31 = vor.u32 %v5570_v62, %v4894_v61 }
 0x543   : > { %v5091_v47 = vor.u32 %v5616_v46, %v5088_v8  ;;  %3032 = vmatpush.bf16.msra.mxu1 %v5087_v29  ;;  %3051 = vmatpush.bf16.msra.mxu2 %v4963_v35  ;;  %v5602_v2 = vld [vmem:[%s6456_s26 + $0x16c] sm:$0xf0]  ;;  %v4896_v29 = vld [vmem:[%s6456_s26 + $0x70] sm:$0xf0]  ;;  %v5600_v8 = vld [vmem:[%s6456_s26 + $0x164] sm:$0xf] }
 0x544   : > { %v7050_v12 = vadd.f32 %v2475_v53, %v2469_v32  ;;  %v7052_v13 = vadd.f32 %v2476_v56, %v2470_v48  ;;  %v4942_v32 = vld [vmem:[%s6456_s26 + $0xc0] sm:$0xf]  ;;  %v5023_v35 = vor.u32 %v5602_v2, %v5022_v28  ;;  %v4899_v46 = vor.u32 %v5568_v5, %v4896_v29  ;;  %v5588_v62 = vld [vmem:[%s6456_s26 + $0x104] sm:$0xf]  ;;  %v4976_v28 = vld [vmem:[%s6456_s26 + $0x110] sm:$0xf0] }
 0x545   : > { %v5070_v48 = vld [vmem:[%s6456_s26 + $0x1c0] sm:$0xf]  ;;  %3070 = vmatpush.bf16.msra.mxu3 %v5091_v47  ;;  %v5024_v47 = vld [vmem:[%s6456_s26 + $0x170] sm:$0xf0]  ;;  %v4966_v2 = vld [vmem:[%s6456_s26 + $0xe8] sm:$0xf] }
 0x546   : > { %v2495_v14 = vadd.f32 %v7052_v13, %v7050_v12  ;;  %v5587_v5 = vld [vmem:[%s6456_s26 + $0xf4] sm:$0xf0]  ;;  %v5094_v29 = vld [vmem:[%s6456_s26 + $0x1e8] sm:$0xf] }
 0x547   : > { %v2325_v16 = vpop.f32.mrf.mxu0  ;;  %v2344_v17 = vpop.f32.mrf.mxu1 }
 0x548   : > { %v2444_v18 = vadd.f32 %v2443_v9, %v2325_v16  ;;  %v2463_v19 = vadd.f32 %v2462_v15, %v2344_v17  ;;  %2496 = vadd.xlane.f32.xlu2 %v2495_v14  ;;  %v4943_v9 = vor.u32 %v5582_v55, %v4942_v32  ;;  %v5614_v15 = vld [vmem:[%s6456_s26 + $0x1cc] sm:$0xf0]  ;;  %v5580_v14 = vld [vmem:[%s6456_s26 + $0xc4] sm:$0xf]  ;;  %v4944_v16 = vld [vmem:[%s6456_s26 + $0xd0] sm:$0xf0]  ;;  %v5027_v32 = vor.u32 %v5600_v8, %v5024_v47 }
 0x549   : > { %v5071_v17 = vor.u32 %v5614_v15, %v5070_v48  ;;  %v4878_v55 = vld [vmem:[%s6456_s26 + $0x40] sm:$0xf]  ;;  %v5566_v48 = vld [vmem:[%s6456_s26 + $0x4c] sm:$0xf0]  ;;  %v5585_v8 = vld [vmem:[%s6456_s26 + $0xec] sm:$0xf] }
 0x54a   : > { %v2471_v63 = vadd.f32 %v5865_v20, %v2444_v18  ;;  %v2472_v22 = vadd.f32 %v5866_v6, %v2463_v19  ;;  %v4947_v18 = vor.u32 %v5580_v14, %v4944_v16  ;;  %v5612_v19 = vld [vmem:[%s6456_s26 + $0x1c4] sm:$0xf]  ;;  %v5072_v20 = vld [vmem:[%s6456_s26 + $0x1d0] sm:$0xf0]  ;;  %3014 = vmatpush.bf16.msra.mxu0 %v4943_v9  ;;  %v4926_v6 = vld [vmem:[%s6456_s26 + $0xa0] sm:$0xf]  ;;  %v4879_v15 = vor.u32 %v5566_v48, %v4878_v55 }
 0x54b   : > { %3033 = vmatpush.bf16.msra.mxu1 %v5071_v17  ;;  %v5006_v9 = vld [vmem:[%s6456_s26 + $0x140] sm:$0xf]  ;;  %v5598_v14 = vld [vmem:[%s6456_s26 + $0x14c] sm:$0xf0]  ;;  %v5564_v16 = vld [vmem:[%s6456_s26 + $0x44] sm:$0xf] }
 0x54c   : > { %v7056_v24 = vadd.f32 %v2475_v53, %v2471_v63  ;;  %v7058_v0 = vadd.f32 %v2476_v56, %v2472_v22  ;;  %v5075_v63 = vor.u32 %v5612_v19, %v5072_v20  ;;  %3052 = vmatpush.bf16.msra.mxu2 %v4947_v18  ;;  %v5578_v22 = vld [vmem:[%s6456_s26 + $0xac] sm:$0xf0]  ;;  %v4880_v17 = vld [vmem:[%s6456_s26 + $0x50] sm:$0xf0]  ;;  %v5007_v18 = vor.u32 %v5598_v14, %v5006_v9  ;;  %v5596_v20 = vld [vmem:[%s6456_s26 + $0x144] sm:$0xf] }
 0x54d   : > { %v4883_v19 = vor.u32 %v5564_v16, %v4880_v17  ;;  %v4968_v47 = vld [vmem:[%s6456_s26 + $0xf8] sm:$0xf0]  ;;  %v5617_v9 = vld [vmem:[%s6456_s26 + $0x1ec] sm:$0xf]  ;;  %v4950_v17 = vld [vmem:[%s6456_s26 + $0xc8] sm:$0xf] }
 0x54e   : > { %v2498_v7 = vadd.f32 %v7058_v0, %v7056_v24  ;;  %3071 = vmatpush.bf16.msra.mxu3 %v5075_v63  ;;  %v5008_v63 = vld [vmem:[%s6456_s26 + $0x150] sm:$0xf0]  ;;  %v4971_v48 = vor.u32 %v5585_v8, %v4968_v47 }
 0x550   : > { %2499 = vadd.xlane.f32.xlu0 %v2498_v7  ;;  %v5054_v7 = vld [vmem:[%s6456_s26 + $0x1a0] sm:$0xf] }
 0x5ab   : > { %v2491_v23 = vpop.xlane.xlu0 %2490 }
 0x5ac   : > { %v2501_v21 = vmul.f32 %v2491_v23, %v6501_v26  ;;  %v4927_v23 = vor.u32 %v5578_v22, %v4926_v6  ;;  %v5011_v6 = vor.u32 %v5596_v20, %v5008_v63  ;;  %v4862_v22 = vld [vmem:[%s6456_s26 + $0x20] sm:$0xf] }
 0x5ae   : > { %v7064_v25 = vsub.f32 %v7038_v44, %v2501_v21  ;;  %v7067_v4 = vsub.f32 %v7040_v50, %v2501_v21  ;;  %v5610_v21 = vld [vmem:[%s6456_s26 + $0x1ac] sm:$0xf0]  ;;  %3015 = vmatpush.bf16.msra.mxu0 %v4927_v23  ;;  %v4990_v23 = vld [vmem:[%s6456_s26 + $0x120] sm:$0xf] }
 0x5b0   : > { %v2513_v33 = vmul.f32 %v7064_v25, %v7064_v25  ;;  %v2514_v11 = vmul.f32 %v7067_v4, %v7067_v4 }
 0x5b2   : > { %v2521_v38 = vadd.f32 %v2514_v11, %v2513_v33  ;;  %v5576_v33 = vld [vmem:[%s6456_s26 + $0xa4] sm:$0xf]  ;;  %v4928_v11 = vld [vmem:[%s6456_s26 + $0xb0] sm:$0xf0] }
 0x5b3   : > { %v2494_v40 = vpop.xlane.xlu1 %2493 }
 0x5b4   : > { %v2502_v41 = vmul.f32 %v2494_v40, %v6501_v26  ;;  %2522 = vadd.xlane.f32.xlu1 %v2521_v38  ;;  %v5055_v38 = vor.u32 %v5610_v21, %v5054_v7  ;;  %v4931_v40 = vor.u32 %v5576_v33, %v4928_v11  ;;  %v5562_v7 = vld [vmem:[%s6456_s26 + $0x2c] sm:$0xf0]  ;;  %v5560_v11 = vld [vmem:[%s6456_s26 + $0x24] sm:$0xf] }
 0x5b5   : > { %v4863_v21 = vor.u32 %v5562_v7, %v4862_v22  ;;  %v5594_v33 = vld [vmem:[%s6456_s26 + $0x12c] sm:$0xf0]  ;;  %v5615_v22 = vld [vmem:[%s6456_s26 + $0x1d4] sm:$0xf0]  ;;  %v5581_v7 = vld [vmem:[%s6456_s26 + $0xcc] sm:$0xf] }
 0x5b6   : > { %v7075_v42 = vsub.f32 %v7044_v36, %v2502_v41  ;;  %v7078_v3 = vsub.f32 %v7046_v1, %v2502_v41  ;;  %v5608_v41 = vld [vmem:[%s6456_s26 + $0x1a4] sm:$0xf]  ;;  %3034 = vmatpush.bf16.msra.mxu1 %v5055_v38  ;;  %3053 = vmatpush.bf16.msra.mxu2 %v4931_v40  ;;  %v4864_v38 = vld [vmem:[%s6456_s26 + $0x30] sm:$0xf0]  ;;  %v4991_v40 = vor.u32 %v5594_v33, %v4990_v23  ;;  %v4952_v33 = vld [vmem:[%s6456_s26 + $0xd8] sm:$0xf0] }
 0x5b8   : > { %v2515_v43 = vmul.f32 %v7075_v42, %v7075_v42  ;;  %v2516_v49 = vmul.f32 %v7078_v3, %v7078_v3 }
 0x5ba   : > { %v2524_v52 = vadd.f32 %v2516_v49, %v2515_v43  ;;  %v5056_v43 = vld [vmem:[%s6456_s26 + $0x1b0] sm:$0xf0] }
 0x5bb   : > { %v2497_v53 = vpop.xlane.xlu2 %2496  ;;  %v5059_v49 = vor.u32 %v5608_v41, %v5056_v43  ;;  %v4867_v41 = vor.u32 %v5560_v11, %v4864_v38  ;;  %v5592_v43 = vld [vmem:[%s6456_s26 + $0x124] sm:$0xf]  ;;  %v5613_v11 = vld [vmem:[%s6456_s26 + $0x1cc] sm:$0xf]  ;;  %v5080_v38 = vld [vmem:[%s6456_s26 + $0x1d8] sm:$0xf0] }
 0x5bc   : > { %v2503_v54 = vmul.f32 %v2497_v53, %v6501_v26  ;;  %2525 = vadd.xlane.f32.xlu2 %v2524_v52  ;;  %v4910_v52 = vld [vmem:[%s6456_s26 + $0x80] sm:$0xf]  ;;  %v5574_v53 = vld [vmem:[%s6456_s26 + $0x8c] sm:$0xf0] }
 0x5bd   : > { %3072 = vmatpush.bf16.msra.mxu3 %v5059_v49  ;;  %v4992_v49 = vld [vmem:[%s6456_s26 + $0x130] sm:$0xf0] }
 0x5be   : > { %v7086_v56 = vsub.f32 %v7050_v12, %v2503_v54  ;;  %v7089_v57 = vsub.f32 %v7052_v13, %v2503_v54  ;;  %v5038_v54 = vld [vmem:[%s6456_s26 + $0x180] sm:$0xf] }
 0x5c0   : > { %v2517_v34 = vmul.f32 %v7086_v56, %v7086_v56  ;;  %v2518_v45 = vmul.f32 %v7089_v57, %v7089_v57 }
 0x5c2   : > { %v2527_v58 = vadd.f32 %v2518_v45, %v2517_v34  ;;  %v4911_v34 = vor.u32 %v5574_v53, %v4910_v52  ;;  %v5606_v45 = vld [vmem:[%s6456_s26 + $0x18c] sm:$0xf0]  ;;  %v4995_v53 = vor.u32 %v5592_v43, %v4992_v49  ;;  %v5083_v43 = vor.u32 %v5613_v11, %v5080_v38  ;;  %v5571_v11 = vld [vmem:[%s6456_s26 + $0x74] sm:$0xf0]  ;;  %v5030_v38 = vld [vmem:[%s6456_s26 + $0x168] sm:$0xf] }
 0x5c3   : > { %v2500_v10 = vpop.xlane.xlu0 %2499 }
 0x5c4   : > { %v2504_v30 = vmul.f32 %v2500_v10, %v6501_v26  ;;  %2528 = vadd.xlane.f32.xlu0 %v2527_v58  ;;  %v5572_v58 = vld [vmem:[%s6456_s26 + $0x84] sm:$0xf]  ;;  %v4912_v10 = vld [vmem:[%s6456_s26 + $0x90] sm:$0xf0]  ;;  %3016 = vmatpush.bf16.msra.mxu0 %v4911_v34  ;;  %v4846_v34 = vld [vmem:[%s6456_s26] sm:$0xf] }
 0x5c6   : > { %v7097_v27 = vsub.f32 %v7056_v24, %v2504_v30  ;;  %v7100_v51 = vsub.f32 %v7058_v0, %v2504_v30  ;;  %v5039_v30 = vor.u32 %v5606_v45, %v5038_v54  ;;  %v5558_v45 = vld [vmem:[%s6456_s26 + $0xc] sm:$0xf0] }
 0x5c8   : > { %v2519_v37 = vmul.f32 %v7097_v27, %v7097_v27  ;;  %v2520_v59 = vmul.f32 %v7100_v51, %v7100_v51  ;;  %3035 = vmatpush.bf16.msra.mxu1 %v5039_v30  ;;  %3017 = vmatpush.bf16.msra.mxu0 %v4895_v31  ;;  %v5590_v30 = vld [vmem:[%s6456_s26 + $0x10c] sm:$0xf0]  ;;  %v4979_v31 = vor.u32 %v5588_v62, %v4976_v28  ;;  %v5609_v62 = vld [vmem:[%s6456_s26 + $0x1ac] sm:$0xf]  ;;  %v5064_v28 = vld [vmem:[%s6456_s26 + $0x1b8] sm:$0xf0] }
 0x5ca   : > { %v2530_v60 = vadd.f32 %v2520_v59, %v2519_v37  ;;  %v4915_v37 = vor.u32 %v5572_v58, %v4912_v10  ;;  %v5604_v59 = vld [vmem:[%s6456_s26 + $0x184] sm:$0xf]  ;;  %v4974_v58 = vld [vmem:[%s6456_s26 + $0x100] sm:$0xf]  ;;  %v4847_v10 = vor.u32 %v5558_v45, %v4846_v34  ;;  %v5611_v45 = vld [vmem:[%s6456_s26 + $0x1b4] sm:$0xf0] }
 0x5cc   : > { %2531 = vadd.xlane.f32.xlu1 %v2530_v60  ;;  %v5040_v60 = vld [vmem:[%s6456_s26 + $0x190] sm:$0xf0]  ;;  %3054 = vmatpush.bf16.msra.mxu2 %v4915_v37  ;;  %v5556_v37 = vld [vmem:[%s6456_s26 + $0x4] sm:$0xf] }
 0x5cd   : > { %v5043_v39 = vor.u32 %v5604_v59, %v5040_v60  ;;  %3036 = vmatpush.bf16.msra.mxu1 %v5023_v35  ;;  %3018 = vmatpush.bf16.msra.mxu0 %v4879_v15  ;;  %v4848_v59 = vld [vmem:[%s6456_s26 + $0x10] sm:$0xf0]  ;;  %v4967_v35 = vor.u32 %v5587_v5, %v4966_v2  ;;  %v5096_v15 = vld [vmem:[%s6456_s26 + $0x1f8] sm:$0xf0]  ;;  %v5067_v2 = vor.u32 %v5609_v62, %v5064_v28  ;;  %v4918_v5 = vld [vmem:[%s6456_s26 + $0x88] sm:$0xf] }
 0x5ce   : > { %v4851_v61 = vor.u32 %v5556_v37, %v4848_v59  ;;  %v5099_v16 = vor.u32 %v5617_v9, %v5096_v15  ;;  %v2488_v59 = vld [vmem:[%s6421_s16] sm:$0x3]  ;;  %v5014_v62 = vld [vmem:[%s6456_s26 + $0x148] sm:$0xf] }
 0x5cf   : > { %3073 = vmatpush.bf16.msra.mxu3 %v5043_v39  ;;  %v4975_v39 = vor.u32 %v5590_v30, %v4974_v58  ;;  %v5577_v58 = vld [vmem:[%s6456_s26 + $0xac] sm:$0xf] }
 0x5d0   : > { %3055 = vmatpush.bf16.msra.mxu2 %v4899_v46  ;;  %v5619_v46 = vld [vmem:[%s6456_s26 + $0x1f4] sm:$0xf0] }
 0x5d1   : > { %3037 = vmatpush.bf16.msra.mxu1 %v5007_v18  ;;  %3019 = vmatpush.bf16.msra.mxu0 %v4863_v21  ;;  %v5095_v55 = vor.u32 %v5619_v46, %v5094_v29  ;;  %v5583_v18 = vld [vmem:[%s6456_s26 + $0xd4] sm:$0xf0] }
 0x5d2   : > { %v5575_v29 = vld [vmem:[%s6456_s26 + $0x94] sm:$0xf0] }
 0x5d3   : > { %3074 = vmatpush.bf16.msra.mxu3 %v5027_v32  ;;  %v4919_v47 = vor.u32 %v5575_v29, %v4918_v5 }
 0x5d4   : > { %3056 = vmatpush.bf16.msra.mxu2 %v4883_v19  ;;  %v5078_v19 = vld [vmem:[%s6456_s26 + $0x1c8] sm:$0xf] }
 0x5d5   : > { %3038 = vmatpush.bf16.msra.mxu1 %v4991_v40  ;;  %3020 = vmatpush.bf16.msra.mxu0 %v4847_v10  ;;  %v5079_v21 = vor.u32 %v5615_v22, %v5078_v19  ;;  %v2487_v40 = vld [vmem:[%s6419_s14] sm:$0x3]  ;;  %v4936_v10 = vld [vmem:[%s6456_s26 + $0xb8] sm:$0xf0]  ;;  %v7232_v22 = vperm.slane %v2488_v59, 0 }
 0x5d6   : > { %v7214_v8 = vperm.slane %v2487_v40, 0 }
 0x5d7   : > { %3075 = vmatpush.bf16.msra.mxu3 %v5011_v6  ;;  %v4951_v6 = vor.u32 %v5583_v18, %v4950_v17 }
 0x5d8   : > { %3057 = vmatpush.bf16.msra.mxu2 %v4867_v41  ;;  %v4955_v41 = vor.u32 %v5581_v7, %v4952_v33  ;;  %v7234_v7 = vperm.slane %v2487_v40, 1  ;;  %v4902_v33 = vld [vmem:[%s6456_s26 + $0x68] sm:$0xf]  ;;  %v5569_v40 = vld [vmem:[%s6456_s26 + $0x6c] sm:$0xf] }
 0x5d9   : > { %3039 = vmatpush.bf16.msra.mxu1 %v4975_v39  ;;  %3089 = vmatpush.bf16.msrb.mxu0 %v4967_v35  ;;  %v5046_v35 = vld [vmem:[%s6456_s26 + $0x188] sm:$0xf] }
 0x5db   : > { %3076 = vmatpush.bf16.msra.mxu3 %v4995_v53  ;;  %v5579_v53 = vld [vmem:[%s6456_s26 + $0xb4] sm:$0xf0] }
 0x5dc   : > { %3058 = vmatpush.bf16.msra.mxu2 %v4851_v61  ;;  %v4939_v61 = vor.u32 %v5577_v58, %v4936_v10  ;;  %v5032_v58 = vld [vmem:[%s6456_s26 + $0x178] sm:$0xf0] }
 0x5dd   : > { %3108 = vmatpush.bf16.msrb.mxu1 %v5095_v55  ;;  %3090 = vmatpush.bf16.msrb.mxu0 %v4951_v6  ;;  %v5573_v55 = vld [vmem:[%s6456_s26 + $0x8c] sm:$0xf]  ;;  %v5048_v6 = vld [vmem:[%s6456_s26 + $0x198] sm:$0xf0] }
 0x5df   : > { %3077 = vmatpush.bf16.msra.mxu3 %v4979_v31 }
 0x5e0   : > { %3127 = vmatpush.bf16.msrb.mxu2 %v4971_v48 }
 0x5e1   : > { %3109 = vmatpush.bf16.msrb.mxu1 %v5079_v21 }
 0x5e3   : > { %3146 = vmatpush.bf16.msrb.mxu3 %v5099_v16  ;;  %v5605_v16 = vld [vmem:[%s6456_s26 + $0x18c] sm:$0xf] }
 0x5e4   : > { %3128 = vmatpush.bf16.msrb.mxu2 %v4955_v41  ;;  %v4903_v41 = vor.u32 %v5571_v11, %v4902_v33  ;;  %v5561_v11 = vld [vmem:[%s6456_s26 + $0x2c] sm:$0xf] }
 0x5e7   : > { %3147 = vmatpush.bf16.msrb.mxu3 %v5083_v43  ;;  %v5603_v43 = vld [vmem:[%s6456_s26 + $0x174] sm:$0xf0] }
 0x5e8   : > { %3129 = vmatpush.bf16.msrb.mxu2 %v4939_v61  ;;  %v5567_v61 = vld [vmem:[%s6456_s26 + $0x54] sm:$0xf0] }
 0x5eb   : > { %3148 = vmatpush.bf16.msrb.mxu3 %v5067_v2  ;;  %v5565_v2 = vld [vmem:[%s6456_s26 + $0x4c] sm:$0xf] }
 0x627   : > { %v2523_v52 = vpop.xlane.xlu1 %2522 }
 0x628   : > { %v2533_v54 = vmul.f32 %v2523_v52, %v6501_v26  ;;  %v4934_v52 = vld [vmem:[%s6456_s26 + $0xa8] sm:$0xf] }
 0x629   : > { %v4935_v34 = vor.u32 %v5579_v53, %v4934_v52 }
 0x62a   : > { %v7169_v60 = vadd.f32 1e-05, %v2533_v54  ;;  %v5062_v54 = vld [vmem:[%s6456_s26 + $0x1a8] sm:$0xf] }
 0x62b   : > { %v5063_v39 = vor.u32 %v5611_v45, %v5062_v54  ;;  %3091 = vmatpush.bf16.msrb.mxu0 %v4935_v34  ;;  %v5031_v54 = vor.u32 %v5603_v43, %v5030_v38  ;;  %v5601_v45 = vld [vmem:[%s6456_s26 + $0x16c] sm:$0xf]  ;;  %v4872_v38 = vld [vmem:[%s6456_s26 + $0x38] sm:$0xf0] }
 0x62c   : > { %5851 = vrsqrt.f32 %v7169_v60  ;;  %vm2547_vm15 = vweird.f32 %v7169_v60 }
 0x62d   : > { %3110 = vmatpush.bf16.msrb.mxu1 %v5063_v39  ;;  %v4886_v39 = vld [vmem:[%s6456_s26 + $0x48] sm:$0xf] }
 0x62f   : > { %v2526_v32 = vpop.xlane.xlu2 %2525  ;;  %3092 = vmatpush.bf16.msrb.mxu0 %v4919_v47 }
 0x630   : > { %v2534_v14 = vmul.f32 %v2526_v32, %v6501_v26  ;;  %v5607_v32 = vld [vmem:[%s6456_s26 + $0x194] sm:$0xf0] }
 0x631   : > { %v5047_v15 = vor.u32 %v5607_v32, %v5046_v35 }
 0x632   : > { %v7186_v20 = vpop.eup %5851  ;;  %v7188_v63 = vadd.f32 1e-05, %v2534_v14  ;;  %v4920_v14 = vld [vmem:[%s6456_s26 + $0x98] sm:$0xf0] }
 0x633   : > { %v2542_v23 = vmul.f32 %v7186_v20, %v7169_v60  ;;  %vm2548_vm14 = vweird.f32 %v7186_v20  ;;  %v4923_v19 = vor.u32 %v5573_v55, %v4920_v14  ;;  %3111 = vmatpush.bf16.msrb.mxu1 %v5047_v15  ;;  %3093 = vmatpush.bf16.msrb.mxu0 %v4903_v41  ;;  %v5016_v15 = vld [vmem:[%s6456_s26 + $0x158] sm:$0xf0]  ;;  %v4870_v14 = vld [vmem:[%s6456_s26 + $0x28] sm:$0xf]  ;;  %v5593_v41 = vld [vmem:[%s6456_s26 + $0x12c] sm:$0xf] }
 0x634   : > { %5853 = vrsqrt.f32 %v7188_v63  ;;  %vm2549_vm0 = vmor %vm2547_vm15, %vm2548_vm14  ;;  %vm2557_vm2 = vweird.f32 %v7188_v63 }
 0x635   : > { %v2543_v49 = vmul.f32 %v7186_v20, %v2542_v23  ;;  %v5051_v23 = vor.u32 %v5605_v16, %v5048_v6  ;;  %3130 = vmatpush.bf16.msrb.mxu2 %v4923_v19  ;;  %v5563_v16 = vld [vmem:[%s6456_s26 + $0x34] sm:$0xf0]  ;;  %v4998_v19 = vld [vmem:[%s6456_s26 + $0x128] sm:$0xf] }
 0x636   : > { %v5595_v6 = vld [vmem:[%s6456_s26 + $0x134] sm:$0xf0] }
 0x637   : > { %v2544_v30 = vmul.f32 0.5, %v2543_v49  ;;  %v2529_v37 = vpop.xlane.xlu0 %2528  ;;  %3149 = vmatpush.bf16.msrb.mxu3 %v5051_v23  ;;  %v4904_v49 = vld [vmem:[%s6456_s26 + $0x78] sm:$0xf0]  ;;  %3112 = vmatpush.bf16.msrb.mxu1 %v5031_v54  ;;  %v4999_v33 = vor.u32 %v5595_v6, %v4998_v19 }
 0x638   : > { %v2535_v31 = vmul.f32 %v2529_v37, %v6501_v26  ;;  %v4907_v34 = vor.u32 %v5569_v40, %v4904_v49  ;;  %v5035_v37 = vor.u32 %v5601_v45, %v5032_v58  ;;  %v5000_v49 = vld [vmem:[%s6456_s26 + $0x138] sm:$0xf0]  ;;  %v4982_v45 = vld [vmem:[%s6456_s26 + $0x108] sm:$0xf]  ;;  %v5591_v58 = vld [vmem:[%s6456_s26 + $0x114] sm:$0xf0] }
 0x639   : > { %v2545_v46 = vsub.f32 1.5, %v2544_v30 }
 0x63a   : > { %v7218_v48 = vpop.eup %5853  ;;  %v7220_v9 = vadd.f32 1e-05, %v2535_v31  ;;  %v4887_v31 = vor.u32 %v5567_v61, %v4886_v39  ;;  %3131 = vmatpush.bf16.msrb.mxu2 %v4907_v34  ;;  %v5003_v34 = vor.u32 %v5593_v41, %v5000_v49  ;;  %v5150_v41 = vld [vmem:[%s6413_s20 + $0x60] sm:$0xf] }
 0x63b   : > { %v2546_v17 = vmul.f32 %v7186_v20, %v2545_v46  ;;  %v2552_v18 = vmul.f32 %v7218_v48, %v7188_v63  ;;  %vm2558_vm1 = vweird.f32 %v7218_v48  ;;  %3150 = vmatpush.bf16.msrb.mxu3 %v5035_v37  ;;  %v4888_v46 = vld [vmem:[%s6456_s26 + $0x58] sm:$0xf0]  ;;  %v4871_v63 = vor.u32 %v5563_v16, %v4870_v14 }
 0x63c   : > { %5855 = vrsqrt.f32 %v7220_v9  ;;  %v4891_v55 = vor.u32 %v5565_v2, %v4888_v46  ;;  %vm2559_vm3 = vmor %vm2557_vm2, %vm2558_vm1  ;;  %3094 = vmatpush.bf16.msrb.mxu0 %v4887_v31  ;;  %v4856_v37 = vld [vmem:[%s6456_s26 + $0x18] sm:$0xf0]  ;;  %vm2567_vm5 = vweird.f32 %v7220_v9 }
 0x63d   : > { %v2550_v60 = vsel %vm2549_vm0, %v7186_v20, %v2546_v17  ;;  %v2553_v21 = vmul.f32 %v7218_v48, %v2552_v18  ;;  %v7244_v20 = vperm.slane %v2488_v59, 1 }
 0x63e   : > { %v2581_v10 = vmul.f32 %v2550_v60, %v7064_v25  ;;  %v2582_v59 = vmul.f32 %v2550_v60, %v7067_v4  ;;  %v5599_v25 = vld [vmem:[%s6456_s26 + $0x154] sm:$0xf0]  ;;  %v5597_v4 = vld [vmem:[%s6456_s26 + $0x14c] sm:$0xf]  ;;  %3132 = vmatpush.bf16.msrb.mxu2 %v4891_v55 }
 0x63f   : > { %v2554_v52 = vmul.f32 0.5, %v2553_v21  ;;  %v2532_v53 = vpop.xlane.xlu1 %2531  ;;  %v5015_v35 = vor.u32 %v5599_v25, %v5014_v62  ;;  %v5019_v18 = vor.u32 %v5597_v4, %v5016_v15  ;;  %v4983_v62 = vor.u32 %v5591_v58, %v4982_v45 }
 0x640   : > { %v2536_v30 = vmul.f32 %v2532_v53, %v6501_v26  ;;  %v2594_v17 = vmul.f32 %v7214_v8, %v2581_v10  ;;  %v2595_v21 = vmul.f32 %v7234_v7, %v2582_v59  ;;  %v5559_v53 = vld [vmem:[%s6456_s26 + $0x14] sm:$0xf0]  ;;  %3095 = vmatpush.bf16.msrb.mxu0 %v4871_v63  ;;  %v5589_v59 = vld [vmem:[%s6456_s26 + $0x10c] sm:$0xf] }
 0x641   : > { %v2555_v28 = vsub.f32 1.5, %v2554_v52  ;;  %3113 = vmatpush.bf16.msrb.mxu1 %v5015_v35  ;;  %3151 = vmatpush.bf16.msrb.mxu3 %v5019_v18  ;;  %v4854_v52 = vld [vmem:[%s6456_s26 + $0x8] sm:$0xf] }
 0x642   : > { %v7257_v5 = vpop.eup %5855  ;;  %v7259_v29 = vadd.f32 1e-05, %v2536_v30  ;;  %v4855_v30 = vor.u32 %v5559_v53, %v4854_v52  ;;  %v2607_v61 = vadd.f32 %v7232_v22, %v2594_v17  ;;  %v2608_v2 = vadd.f32 %v7244_v20, %v2595_v21  ;;  %v5649_v53 = vld [vmem:[%s6413_s20 + $0xe4] sm:$0xf0] }
 0x643   : > { %v2556_v47 = vmul.f32 %v7218_v48, %v2555_v28  ;;  %v2562_v32 = vmul.f32 %v7257_v5, %v7220_v9  ;;  %v4984_v28 = vld [vmem:[%s6456_s26 + $0x118] sm:$0xf0]  ;;  %vm2568_vm4 = vweird.f32 %v7257_v5 }
 0x644   : > { %5857 = vrsqrt.f32 %v7259_v29  ;;  %3096 = vmatpush.bf16.msrb.mxu0 %v4855_v30  ;;  %v4987_v15 = vor.u32 %v5589_v59, %v4984_v28  ;;  %vm2569_vm6 = vmor %vm2567_vm5, %vm2568_vm4  ;;  %vm2577_vm8 = vweird.f32 %v7259_v29  ;;  %v5198_v28 = vld [vmem:[%s6413_s20 + $0xc0] sm:$0xf] }
 0x645   : > { %v2560_v23 = vsel %vm2559_vm3, %v7218_v48, %v2556_v47  ;;  %v2563_v60 = vmul.f32 %v7257_v5, %v2562_v32  ;;  %v4875_v48 = vor.u32 %v5561_v11, %v4872_v38  ;;  %3114 = vmatpush.bf16.msrb.mxu1 %v4999_v33  ;;  %3152 = vmatpush.bf16.msrb.mxu3 %v5003_v34  ;;  %v5631_v34 = vld [vmem:[%s6413_s20 + $0x54] sm:$0xf0] }
 0x646   : > { %v2583_v43 = vmul.f32 %v2560_v23, %v7075_v42  ;;  %v2584_v40 = vmul.f32 %v2560_v23, %v7078_v3  ;;  %v5557_v3 = vld [vmem:[%s6456_s26 + $0xc] sm:$0xf]  ;;  %s7727_s26 = sld [smem:[#allocation40_spill]] (!%p5356_p5) }
 0x647   : > { %v2564_v54 = vmul.f32 0.5, %v2563_v60  ;;  %3133 = vmatpush.bf16.msrb.mxu2 %v4875_v48  ;;  %v4859_v55 = vor.u32 %v5557_v3, %v4856_v37  ;;  %v5651_v48 = vld [vmem:[%s6413_s20 + $0xf4] sm:$0xf0]  ;;  %v5206_v3 = vld [vmem:[%s6413_s20 + $0xd0] sm:$0xf] }
 0x648   : > { %v2596_v10 = vmul.f32 %v7214_v8, %v2583_v43  ;;  %v2597_v42 = vmul.f32 %v7234_v7, %v2584_v40  ;;  %v5222_v40 = vld [vmem:[%s6413_s20 + $0xf0] sm:$0xf]  ;;  %v5647_v37 = vld [vmem:[%s6413_s20 + $0xd4] sm:$0xf0] }
 0x649   : > { %v2565_v39 = vsub.f32 1.5, %v2564_v54  ;;  %3115 = vmatpush.bf16.msrb.mxu1 %v4983_v62  ;;  %3153 = vmatpush.bf16.msrb.mxu3 %v4987_v15  ;;  %v5223_v49 = vor.u32 %v5651_v48, %v5222_v40  ;;  %v5142_v54 = vld [vmem:[%s6413_s20 + $0x50] sm:$0xf]  ;;  %v5627_v62 = vld [vmem:[%s6413_s20 + $0x34] sm:$0xf0] }
 0x64a   : > { %v5858_v31 = vpop.eup %5857  ;;  %v2609_v25 = vadd.f32 %v7232_v22, %v2596_v10  ;;  %v2610_v35 = vadd.f32 %v7244_v20, %v2597_v42  ;;  %v5143_v58 = vor.u32 %v5631_v34, %v5142_v54  ;;  %v5134_v10 = vld [vmem:[%s6413_s20 + $0x40] sm:$0xf]  ;;  %v5629_v42 = vld [vmem:[%s6413_s20 + $0x44] sm:$0xf0]  ;;  %v5623_v15 = vld [vmem:[%s6413_s20 + $0x14] sm:$0xf0] }
 0x64b   : > { %v2566_v46 = vmul.f32 %v7257_v5, %v2565_v39  ;;  %v2572_v4 = vmul.f32 %v5858_v31, %v7259_v29  ;;  %3134 = vmatpush.bf16.msrb.mxu2 %v4859_v55  ;;  %vm2578_vm7 = vweird.f32 %v5858_v31  ;;  %v5135_v30 = vor.u32 %v5629_v42, %v5134_v10  ;;  %v5110_v55 = vld [vmem:[%s6413_s20 + $0x10] sm:$0xf]  ;;  %v5683_v48 = vld [vmem:[%s6413_s20 + $0x1f4] sm:$0xf0]  ;;  %v5144_v10 = vld [vmem:[%s6413_s20 + $0x58] sm:$0xf0] }
 0x64c   : > { %v7302_v47 = vpack.c.bf16 %v2609_v25, %v2607_v61  ;;  %v7304_v32 = vpack.c.bf16 %v2610_v35, %v2608_v2  ;;  %vm2579_vm9 = vmor %vm2577_vm8, %vm2578_vm7  ;;  %v5207_v39 = vor.u32 %v5647_v37, %v5206_v3  ;;  %v5126_v61 = vld [vmem:[%s6413_s20 + $0x30] sm:$0xf]  ;;  %v5118_v2 = vld [vmem:[%s6413_s20 + $0x20] sm:$0xf] }
 0x64d   : > { %v2573_v14 = vmul.f32 %v5858_v31, %v2572_v4  ;;  %v2570_v16 = vsel %vm2569_vm6, %v7257_v5, %v2566_v46  ;;  %v5127_v59 = vor.u32 %v5627_v62, %v5126_v61  ;;  %v5625_v35 = vld [vmem:[%s6413_s20 + $0x24] sm:$0xf0]  ;;  %v5190_v4 = vld [vmem:[%s6413_s20 + $0xb0] sm:$0xf]  ;;  %v5663_v34 = vld [vmem:[%s6413_s20 + $0x154] sm:$0xf0] }
 0x64e   : > { %3021 = vmatmul.bf16.vlgmr.msra.gmra.mxu0 %v7302_v47  ;;  %3040 = vmatmul.bf16.vlgmr.msra.gmra.mxu1 %v7304_v32  ;;  %v2585_v9 = vmul.f32 %v2570_v16, %v7086_v56  ;;  %v2586_v63 = vmul.f32 %v2570_v16, %v7089_v57  ;;  %v5119_v46 = vor.u32 %v5625_v35, %v5118_v2  ;;  %v5182_v16 = vld [vmem:[%s6413_s20 + $0xa0] sm:$0xf]  ;;  %v5350_v40 = vld [vmem:[%s6413_s20 + $0x1f0] sm:$0xf]  ;;  %v5681_v3 = vld [vmem:[%s6413_s20 + $0x1e4] sm:$0xf0] }
 0x64f   : > { %v2574_v17 = vmul.f32 0.5, %v2573_v14  ;;  %3059 = vmatmul.bf16.vlgmr.msra.gmra.mxu2 %v7302_v47  ;;  %3078 = vmatmul.bf16.vlgmr.msra.gmra.mxu3 %v7304_v32  ;;  %v5111_v14 = vor.u32 %v5623_v15, %v5110_v55  ;;  %v5270_v54 = vld [vmem:[%s6413_s20 + $0x150] sm:$0xf]  ;;  %v5648_v37 = vld [vmem:[%s6413_s20 + $0xe4] sm:$0xf] }
 0x650   : > { %v2598_v60 = vmul.f32 %v7214_v8, %v2585_v9  ;;  %v2599_v21 = vmul.f32 %v7234_v7, %v2586_v63  ;;  %3598 = vmatpush.bf16.msra.mxu1 %v5223_v49  ;;  %v5102_v9 = vld [vmem:[%s6413_s20] sm:$0xf]  ;;  %v5621_v63 = vld [vmem:[%s6413_s20 + $0x4] sm:$0xf0]  ;;  %v5650_v49 = vld [vmem:[%s6413_s20 + $0xf4] sm:$0xf] }
 0x651   : > { %v2575_v18 = vsub.f32 1.5, %v2574_v17  ;;  %v5641_v17 = vld [vmem:[%s6413_s20 + $0xa4] sm:$0xf0]  ;;  %v5216_v61 = vld [vmem:[%s6413_s20 + $0xe8] sm:$0xf0] }
 0x652   : > { %v2611_v29 = vadd.f32 %v7232_v22, %v2598_v60  ;;  %v2612_v33 = vadd.f32 %v7244_v20, %v2599_v21  ;;  %v5286_v60 = vld [vmem:[%s6413_s20 + $0x170] sm:$0xf]  ;;  %v5667_v21 = vld [vmem:[%s6413_s20 + $0x174] sm:$0xf0]  ;;  %v5219_v62 = vor.u32 %v5648_v37, %v5216_v61  ;;  %v5136_v35 = vld [vmem:[%s6413_s20 + $0x48] sm:$0xf0] }
 0x653   : > { %v2576_v19 = vmul.f32 %v5858_v31, %v2575_v18  ;;  %v5183_v18 = vor.u32 %v5641_v17, %v5182_v16  ;;  %v5208_v15 = vld [vmem:[%s6413_s20 + $0xd8] sm:$0xf0] }
 0x655   : > { %v2580_v6 = vsel %vm2579_vm9, %v5858_v31, %v2576_v19  ;;  %v5645_v31 = vld [vmem:[%s6413_s20 + $0xc4] sm:$0xf0]  ;;  %v5103_v19 = vor.u32 %v5621_v63, %v5102_v9  ;;  %v5659_v9 = vld [vmem:[%s6413_s20 + $0x134] sm:$0xf0] }
 0x656   : > { %v2587_v5 = vmul.f32 %v2580_v6, %v7097_v27  ;;  %v2588_v23 = vmul.f32 %v2580_v6, %v7100_v51  ;;  %v5199_v25 = vor.u32 %v5645_v31, %v5198_v28  ;;  %v5174_v6 = vld [vmem:[%s6413_s20 + $0x90] sm:$0xf]  ;;  %v5661_v28 = vld [vmem:[%s6413_s20 + $0x144] sm:$0xf0]  ;;  %v5628_v31 = vld [vmem:[%s6413_s20 + $0x44] sm:$0xf] }
 0x658   : > { %v2600_v56 = vmul.f32 %v7214_v8, %v2587_v5  ;;  %v2601_v57 = vmul.f32 %v7234_v7, %v2588_v23  ;;  %v5158_v8 = vld [vmem:[%s6413_s20 + $0x70] sm:$0xf]  ;;  %v5635_v7 = vld [vmem:[%s6413_s20 + $0x74] sm:$0xf0] }
 0x659   : > { %v5159_v43 = vor.u32 %v5635_v7, %v5158_v8  ;;  %v5639_v5 = vld [vmem:[%s6413_s20 + $0x94] sm:$0xf0]  ;;  %v5665_v8 = vld [vmem:[%s6413_s20 + $0x164] sm:$0xf0]  ;;  %v5632_v7 = vld [vmem:[%s6413_s20 + $0x64] sm:$0xf] }
 0x65a   : > { %v2613_v27 = vadd.f32 %v7232_v22, %v2600_v56  ;;  %v2614_v51 = vadd.f32 %v7244_v20, %v2601_v57  ;;  %v5633_v22 = vld [vmem:[%s6413_s20 + $0x64] sm:$0xf0]  ;;  %v5214_v20 = vld [vmem:[%s6413_s20 + $0xe0] sm:$0xf]  ;;  %v5175_v23 = vor.u32 %v5639_v5, %v5174_v6  ;;  %v5634_v56 = vld [vmem:[%s6413_s20 + $0x74] sm:$0xf]  ;;  %v5287_v57 = vor.u32 %v5667_v21, %v5286_v60 }
 0x65b   : > { %3579 = vmatpush.bf16.msra.mxu0 %v5159_v43  ;;  %v5151_v52 = vor.u32 %v5633_v22, %v5150_v41  ;;  %v5215_v45 = vor.u32 %v5649_v53, %v5214_v20  ;;  %v5152_v43 = vld [vmem:[%s6413_s20 + $0x68] sm:$0xf0]  ;;  %v5351_v20 = vor.u32 %v5683_v48, %v5350_v40  ;;  %v5626_v6 = vld [vmem:[%s6413_s20 + $0x34] sm:$0xf]  ;;  %v5128_v5 = vld [vmem:[%s6413_s20 + $0x38] sm:$0xf0] }
 0x65c   : > { %v2617_v11 = vpack.c.bf16 %v2613_v27, %v2611_v29  ;;  %v2618_v38 = vpack.c.bf16 %v2614_v51, %v2612_v33  ;;  %v5160_v29 = vld [vmem:[%s6413_s20 + $0x78] sm:$0xf0]  ;;  %v5166_v33 = vld [vmem:[%s6413_s20 + $0x80] sm:$0xf]  ;;  %v5637_v51 = vld [vmem:[%s6413_s20 + $0x84] sm:$0xf0]  ;;  %3617 = vmatpush.bf16.msra.mxu2 %v5287_v57  ;;  %v5155_v22 = vor.u32 %v5632_v7, %v5152_v43 }
 0x65d   : > { %3599 = vmatpush.bf16.msra.mxu1 %v5215_v45  ;;  %v5163_v27 = vor.u32 %v5634_v56, %v5160_v29  ;;  %v5630_v45 = vld [vmem:[%s6413_s20 + $0x54] sm:$0xf]  ;;  %3636 = vmatpush.bf16.msra.mxu3 %v5351_v20  ;;  %v5326_v60 = vld [vmem:[%s6413_s20 + $0x1c0] sm:$0xf]  ;;  %v5677_v21 = vld [vmem:[%s6413_s20 + $0x1c4] sm:$0xf0] }
 0x65e   : > { %3026 = vmatmul.bf16.gmra.mxu0 %v2617_v11  ;;  %3045 = vmatmul.bf16.gmra.mxu1 %v2618_v38  ;;  %v5147_v42 = vor.u32 %v5630_v45, %v5144_v10  ;;  %v5644_v56 = vld [vmem:[%s6413_s20 + $0xc4] sm:$0xf]  ;;  %v5327_v57 = vor.u32 %v5677_v21, %v5326_v60  ;;  %v5200_v29 = vld [vmem:[%s6413_s20 + $0xc8] sm:$0xf0]  ;;  %v5318_v43 = vld [vmem:[%s6413_s20 + $0x1b0] sm:$0xf] }
 0x65f   : > { %3064 = vmatmul.bf16.gmra.mxu2 %v2617_v11  ;;  %3083 = vmatmul.bf16.gmra.mxu3 %v2618_v38  ;;  %v5120_v7 = vld [vmem:[%s6413_s20 + $0x28] sm:$0xf0]  ;;  %v5655_v10 = vld [vmem:[%s6413_s20 + $0x114] sm:$0xf0] }
 0x660   : > { %3580 = vmatpush.bf16.msra.mxu0 %v5151_v52  ;;  %v5224_v52 = vld [vmem:[%s6413_s20 + $0xf8] sm:$0xf0] }
 0x661   : > { %3600 = vmatpush.bf16.msra.mxu1 %v5207_v39  ;;  %v5227_v53 = vor.u32 %v5650_v49, %v5224_v52  ;;  %v5642_v52 = vld [vmem:[%s6413_s20 + $0xb4] sm:$0xf] }
 0x664   : > { %3581 = vmatpush.bf16.msra.mxu0 %v5143_v58  ;;  %v5271_v58 = vor.u32 %v5663_v34, %v5270_v54 }
 0x665   : > { %3601 = vmatpush.bf16.msra.mxu1 %v5199_v25  ;;  %v7385_v25 = vld [vmem:[%s6461_s21] sm:$0xf] }
 0x666   : > { %v7395_v63 = vperm.slane %v7385_v25, 0  ;;  %v7411_v40 = vperm.slane %v7385_v25, 1 }
 0x668   : > { %3582 = vmatpush.bf16.msra.mxu0 %v5135_v30  ;;  %v5342_v30 = vld [vmem:[%s6413_s20 + $0x1e0] sm:$0xf] }
 0x669   : > { %v5343_v39 = vor.u32 %v5681_v3, %v5342_v30 }
 0x66b   : > { %3637 = vmatpush.bf16.msra.mxu3 %v5343_v39  ;;  %v5112_v39 = vld [vmem:[%s6413_s20 + $0x18] sm:$0xf0] }
 0x66c   : > { %3583 = vmatpush.bf16.msra.mxu0 %v5127_v59  ;;  %v5262_v59 = vld [vmem:[%s6413_s20 + $0x140] sm:$0xf] }
 0x66d   : > { %v5263_v2 = vor.u32 %v5661_v28, %v5262_v59  ;;  %v5673_v59 = vld [vmem:[%s6413_s20 + $0x1a4] sm:$0xf0]  ;;  %v5640_v28 = vld [vmem:[%s6413_s20 + $0xa4] sm:$0xf] }
 0x66e   : > { %3097 = vmatmul.bf16.vlgmr.msrb.gmra.mxu0 %v7302_v47  ;;  %3116 = vmatmul.bf16.vlgmr.msrb.gmra.mxu1 %v7304_v32 }
 0x66f   : > { %3135 = vmatmul.bf16.vlgmr.msrb.gmra.mxu2 %v7302_v47  ;;  %3154 = vmatmul.bf16.vlgmr.msrb.gmra.mxu3 %v7304_v32  ;;  %v5643_v47 = vld [vmem:[%s6413_s20 + $0xb4] sm:$0xf0] }
 0x670   : > { %3584 = vmatpush.bf16.msra.mxu0 %v5119_v46  ;;  %v5191_v32 = vor.u32 %v5643_v47, %v5190_v4  ;;  %v5139_v46 = vor.u32 %v5628_v31, %v5136_v35  ;;  %v5334_v4 = vld [vmem:[%s6413_s20 + $0x1d0] sm:$0xf]  ;;  %v5679_v47 = vld [vmem:[%s6413_s20 + $0x1d4] sm:$0xf0]  ;;  %v5184_v35 = vld [vmem:[%s6413_s20 + $0xa8] sm:$0xf0] }
 0x671   : > { %v5335_v55 = vor.u32 %v5679_v47, %v5334_v4  ;;  %v5187_v4 = vor.u32 %v5640_v28, %v5184_v35  ;;  %v5230_v47 = vld [vmem:[%s6413_s20 + $0x100] sm:$0xf]  ;;  %v5272_v28 = vld [vmem:[%s6413_s20 + $0x158] sm:$0xf0] }
 0x672   : > { %3602 = vmatpush.bf16.msra.mxu1 %v5191_v32  ;;  %v5646_v32 = vld [vmem:[%s6413_s20 + $0xd4] sm:$0xf] }
 0x673   : > { %v5211_v17 = vor.u32 %v5646_v32, %v5208_v15  ;;  %3638 = vmatpush.bf16.msra.mxu3 %v5335_v55  ;;  %v5653_v32 = vld [vmem:[%s6413_s20 + $0x104] sm:$0xf0] }
 0x674   : > { %3585 = vmatpush.bf16.msra.mxu0 %v5111_v14 }
 0x676   : > { %3603 = vmatpush.bf16.msra.mxu1 %v5183_v18  ;;  %v5254_v18 = vld [vmem:[%s6413_s20 + $0x130] sm:$0xf] }
 0x677   : > { %3639 = vmatpush.bf16.msra.mxu3 %v5327_v57 }
 0x678   : > { %3586 = vmatpush.bf16.msra.mxu0 %v5103_v19  ;;  %v5255_v19 = vor.u32 %v5659_v9, %v5254_v18  ;;  %v5302_v9 = vld [vmem:[%s6413_s20 + $0x190] sm:$0xf] }
 0x67a   : > { %3604 = vmatpush.bf16.msra.mxu1 %v5175_v23  ;;  %v5131_v23 = vor.u32 %v5626_v6, %v5128_v5  ;;  %v5638_v6 = vld [vmem:[%s6413_s20 + $0x94] sm:$0xf] }
 0x67c   : > { %3655 = vmatpush.bf16.msrb.mxu0 %v5163_v27  ;;  %v5203_v27 = vor.u32 %v5644_v56, %v5200_v29  ;;  %v5176_v56 = vld [vmem:[%s6413_s20 + $0x98] sm:$0xf0] }
 0x67e   : > { %3102 = vmatmul.bf16.gmra.mxu0 %v2617_v11  ;;  %3121 = vmatmul.bf16.gmra.mxu1 %v2618_v38 }
 0x67f   : > { %3140 = vmatmul.bf16.gmra.mxu2 %v2617_v11  ;;  %3159 = vmatmul.bf16.gmra.mxu3 %v2618_v38  ;;  %v5167_v11 = vor.u32 %v5637_v51, %v5166_v33  ;;  %v5278_v38 = vld [vmem:[%s6413_s20 + $0x160] sm:$0xf]  ;;  %v5657_v51 = vld [vmem:[%s6413_s20 + $0x124] sm:$0xf0] }
 0x680   : > { %v5279_v41 = vor.u32 %v5665_v8, %v5278_v38  ;;  %3656 = vmatpush.bf16.msrb.mxu0 %v5155_v22  ;;  %v5246_v33 = vld [vmem:[%s6413_s20 + $0x120] sm:$0xf]  ;;  %v5675_v22 = vld [vmem:[%s6413_s20 + $0x1b4] sm:$0xf0] }
 0x681   : > { %3605 = vmatpush.bf16.msra.mxu1 %v5167_v11  ;;  %v5624_v11 = vld [vmem:[%s6413_s20 + $0x24] sm:$0xf]  ;;  %v5247_v8 = vor.u32 %v5657_v51, %v5246_v33  ;;  %v5319_v20 = vor.u32 %v5675_v22, %v5318_v43  ;;  %v5179_v51 = vor.u32 %v5638_v6, %v5176_v56  ;;  %v5669_v43 = vld [vmem:[%s6413_s20 + $0x184] sm:$0xf0] }
 0x682   : > { %3618 = vmatpush.bf16.msra.mxu2 %v5279_v41  ;;  %v5123_v41 = vor.u32 %v5624_v11, %v5120_v7  ;;  %v5666_v11 = vld [vmem:[%s6413_s20 + $0x174] sm:$0xf]  ;;  %v5636_v22 = vld [vmem:[%s6413_s20 + $0x84] sm:$0xf] }
 0x683   : > { %3640 = vmatpush.bf16.msra.mxu3 %v5319_v20 }
 0x684   : > { %3657 = vmatpush.bf16.msrb.mxu0 %v5147_v42  ;;  %v5622_v42 = vld [vmem:[%s6413_s20 + $0x14] sm:$0xf] }
 0x685   : > { %3674 = vmatpush.bf16.msrb.mxu1 %v5227_v53  ;;  %v5192_v53 = vld [vmem:[%s6413_s20 + $0xb8] sm:$0xf0]  ;;  %v5115_v61 = vor.u32 %v5622_v42, %v5112_v39  ;;  %v5682_v42 = vld [vmem:[%s6413_s20 + $0x1f4] sm:$0xf] }
 0x686   : > { %3619 = vmatpush.bf16.msra.mxu2 %v5271_v58  ;;  %v5195_v45 = vor.u32 %v5642_v52, %v5192_v53  ;;  %v5238_v58 = vld [vmem:[%s6413_s20 + $0x110] sm:$0xf] }
 0x687   : > { %v5239_v37 = vor.u32 %v5655_v10, %v5238_v58 }
 0x688   : > { %3658 = vmatpush.bf16.msrb.mxu0 %v5139_v46 }
 0x689   : > { %3675 = vmatpush.bf16.msrb.mxu1 %v5219_v62  ;;  %v5310_v62 = vld [vmem:[%s6413_s20 + $0x1a0] sm:$0xf] }
 0x68a   : > { %3620 = vmatpush.bf16.msra.mxu2 %v5263_v2  ;;  %v5311_v2 = vor.u32 %v5673_v59, %v5310_v62  ;;  %v5662_v59 = vld [vmem:[%s6413_s20 + $0x154] sm:$0xf] }
 0x68b   : > { %v5275_v35 = vor.u32 %v5662_v59, %v5272_v28  ;;  %v5312_v28 = vld [vmem:[%s6413_s20 + $0x1a8] sm:$0xf0] }
 0x68c   : > { %3659 = vmatpush.bf16.msrb.mxu0 %v5131_v23  ;;  %3641 = vmatpush.bf16.msra.mxu3 %v5311_v2 }
 0x68d   : > { %3676 = vmatpush.bf16.msrb.mxu1 %v5211_v17  ;;  %v5104_v17 = vld [vmem:[%s6413_s20 + $0x8] sm:$0xf0] }
 0x68e   : > { %3621 = vmatpush.bf16.msra.mxu2 %v5255_v19  ;;  %v5671_v19 = vld [vmem:[%s6413_s20 + $0x194] sm:$0xf0] }
 0x68f   : > { %v5303_v21 = vor.u32 %v5671_v19, %v5302_v9  ;;  %v5678_v9 = vld [vmem:[%s6413_s20 + $0x1d4] sm:$0xf] }
 0x690   : > { %3660 = vmatpush.bf16.msrb.mxu0 %v5123_v41  ;;  %v5294_v41 = vld [vmem:[%s6413_s20 + $0x180] sm:$0xf] }
 0x691   : > { %3677 = vmatpush.bf16.msrb.mxu1 %v5203_v27  ;;  %3642 = vmatpush.bf16.msra.mxu3 %v5303_v21 }
 0x692   : > { %3622 = vmatpush.bf16.msra.mxu2 %v5247_v8 }
 0x694   : > { %3661 = vmatpush.bf16.msrb.mxu0 %v5115_v61 }
 0x695   : > { %3678 = vmatpush.bf16.msrb.mxu1 %v5195_v45 }
 0x696   : > { %3623 = vmatpush.bf16.msra.mxu2 %v5239_v37 }
 0x699   : > { %3679 = vmatpush.bf16.msrb.mxu1 %v5187_v4  ;;  %v5344_v4 = vld [vmem:[%s6413_s20 + $0x1e8] sm:$0xf0] }
 0x69d   : > { %3680 = vmatpush.bf16.msrb.mxu1 %v5179_v51  ;;  %v7467_v51 = vperm.slane %v7385_v25, 2 }
 0x6cb   : > { %v3022_v14 = vpop.f32.mrf.mxu0  ;;  %v3041_v16 = vpop.f32.mrf.mxu1 }
 0x6cc   : > { %v3023_v38 = vadd.f32 %v3022_v14, %v7395_v63  ;;  %v5231_v14 = vor.u32 %v5653_v32, %v5230_v47 }
 0x6ce   : > { %v3042_v30 = vadd.f32 %v3041_v16, %v3023_v38  ;;  %v5620_v16 = vld [vmem:[%s6413_s20 + $0x4] sm:$0xf]  ;;  %3624 = vmatpush.bf16.msra.mxu2 %v5231_v14  ;;  %v5288_v38 = vld [vmem:[%s6413_s20 + $0x178] sm:$0xf0]  ;;  %v5264_v14 = vld [vmem:[%s6413_s20 + $0x148] sm:$0xf0] }
 0x6cf   : > { %v5107_v18 = vor.u32 %v5620_v16, %v5104_v17  ;;  %v5291_v8 = vor.u32 %v5666_v11, %v5288_v38 }
 0x6d0   : > { %v3165_v55 = vmax.f32 %v3042_v30, 0.0  ;;  %v5352_v30 = vld [vmem:[%s6413_s20 + $0x1f8] sm:$0xf0] }
 0x6d1   : > { %3662 = vmatpush.bf16.msrb.mxu0 %v5107_v18  ;;  %v5355_v39 = vor.u32 %v5682_v42, %v5352_v30 }
 0x6d2   : > { %v3060_v48 = vpop.f32.mrf.mxu2  ;;  %v3079_v49 = vpop.f32.mrf.mxu3  ;;  %3693 = vmatpush.bf16.msrb.mxu2 %v5291_v8  ;;  %v5676_v8 = vld [vmem:[%s6413_s20 + $0x1c4] sm:$0xf] }
 0x6d3   : > { %v3024_v54 = vpop.f32.mrf.mxu0  ;;  %v3043_v34 = vpop.f32.mrf.mxu1  ;;  %v3061_v46 = vadd.f32 %v3060_v48, %v7411_v40  ;;  %v5295_v48 = vor.u32 %v5669_v43, %v5294_v41 }
 0x6d4   : > { %v3025_v3 = vadd.f32 %v3024_v54, %v7395_v63  ;;  %v5664_v54 = vld [vmem:[%s6413_s20 + $0x164] sm:$0xf] }
 0x6d5   : > { %v3080_v57 = vadd.f32 %v3079_v49, %v3061_v46  ;;  %v5168_v49 = vld [vmem:[%s6413_s20 + $0x88] sm:$0xf0]  ;;  %3643 = vmatpush.bf16.msra.mxu3 %v5295_v48  ;;  %v5680_v46 = vld [vmem:[%s6413_s20 + $0x1e4] sm:$0xf] }
 0x6d6   : > { %v3044_v31 = vadd.f32 %v3043_v34, %v3025_v3  ;;  %v5171_v53 = vor.u32 %v5636_v22, %v5168_v49  ;;  %v5280_v34 = vld [vmem:[%s6413_s20 + $0x168] sm:$0xf0]  ;;  %v5347_v32 = vor.u32 %v5680_v46, %v5344_v4  ;;  %v5656_v22 = vld [vmem:[%s6413_s20 + $0x124] sm:$0xf] }
 0x6d7   : > { %v3166_v20 = vmax.f32 %v3080_v57, 0.0  ;;  %v5283_v58 = vor.u32 %v5664_v54, %v5280_v34  ;;  %v5248_v48 = vld [vmem:[%s6413_s20 + $0x128] sm:$0xf0]  ;;  %v5320_v54 = vld [vmem:[%s6413_s20 + $0x1b8] sm:$0xf0]  ;;  %v7480_v34 = vperm.slane %v7385_v25, 3 }
 0x6d8   : > { %v3169_v15 = vmax.f32 %v3044_v31, 0.0  ;;  %3681 = vmatpush.bf16.msrb.mxu1 %v5171_v53  ;;  %v5674_v53 = vld [vmem:[%s6413_s20 + $0x1b4] sm:$0xf] }
 0x6d9   : > { %3694 = vmatpush.bf16.msrb.mxu2 %v5283_v58  ;;  %3712 = vmatpush.bf16.msrb.mxu3 %v5355_v39  ;;  %v5323_v42 = vor.u32 %v5674_v53, %v5320_v54  ;;  %v5240_v39 = vld [vmem:[%s6413_s20 + $0x118] sm:$0xf0] }
 0x6da   : > { %v7432_v5 = vpack.c.bf16 %v3169_v15, %v3165_v55  ;;  %v3062_v23 = vpop.f32.mrf.mxu2  ;;  %v3081_v60 = vpop.f32.mrf.mxu3  ;;  %v5660_v15 = vld [vmem:[%s6413_s20 + $0x144] sm:$0xf] }
 0x6db   : > { %v3063_v29 = vadd.f32 %v3062_v23, %v7411_v40  ;;  %v3027_v27 = vpop.f32.mrf.mxu0  ;;  %v3046_v33 = vpop.f32.mrf.mxu1  ;;  %v5267_v18 = vor.u32 %v5660_v15, %v5264_v14 }
 0x6dc   : > { %3587 = vmatmul.bf16.vlgmr.msra.gmra.mxu0 %v7432_v5  ;;  %v3028_v45 = vadd.f32 %v3027_v27, %v7395_v63  ;;  %v5658_v27 = vld [vmem:[%s6413_s20 + $0x134] sm:$0xf] }
 0x6dd   : > { %v3082_v7 = vadd.f32 %v3081_v60, %v3063_v29  ;;  %3695 = vmatpush.bf16.msrb.mxu2 %v5275_v35  ;;  %3713 = vmatpush.bf16.msrb.mxu3 %v5347_v32  ;;  %v5304_v32 = vld [vmem:[%s6413_s20 + $0x198] sm:$0xf0] }
 0x6de   : > { %v3047_v31 = vadd.f32 %v3046_v33, %v3028_v45  ;;  %v5256_v33 = vld [vmem:[%s6413_s20 + $0x138] sm:$0xf0] }
 0x6df   : > { %v3170_v52 = vmax.f32 %v3082_v7, 0.0  ;;  %v5259_v11 = vor.u32 %v5658_v27, %v5256_v33  ;;  %v5328_v7 = vld [vmem:[%s6413_s20 + $0x1c8] sm:$0xf0] }
 0x6e0   : > { %v3173_v16 = vmax.f32 %v3047_v31, 0.0  ;;  %v5652_v31 = vld [vmem:[%s6413_s20 + $0x104] sm:$0xf] }
 0x6e1   : > { %v7446_v10 = vpack.c.bf16 %v3170_v52, %v3166_v20  ;;  %3696 = vmatpush.bf16.msrb.mxu2 %v5267_v18  ;;  %v5251_v20 = vor.u32 %v5656_v22, %v5248_v48 }
 0x6e2   : > { %v3065_v3 = vpop.f32.mrf.mxu2  ;;  %v3084_v37 = vpop.f32.mrf.mxu3 }
 0x6e3   : > { %3606 = vmatmul.bf16.vlgmr.msra.gmra.mxu1 %v7446_v10  ;;  %v3029_v61 = vpop.f32.mrf.mxu0  ;;  %v3048_v62 = vpop.f32.mrf.mxu1  ;;  %v3066_v55 = vadd.f32 %v3065_v3, %v7411_v40 }
 0x6e4   : > { %v3030_v2 = vadd.f32 %v3029_v61, %v7395_v63  ;;  %v5336_v63 = vld [vmem:[%s6413_s20 + $0x1d8] sm:$0xf0]  ;;  %v5672_v61 = vld [vmem:[%s6413_s20 + $0x1a4] sm:$0xf] }
 0x6e5   : > { %v5339_v60 = vor.u32 %v5678_v9, %v5336_v63  ;;  %v3085_v21 = vadd.f32 %v3084_v37, %v3066_v55  ;;  %3697 = vmatpush.bf16.msrb.mxu2 %v5259_v11  ;;  %v5654_v37 = vld [vmem:[%s6413_s20 + $0x114] sm:$0xf]  ;;  %v5315_v35 = vor.u32 %v5672_v61, %v5312_v28 }
 0x6e6   : > { %v3049_v47 = vadd.f32 %v3048_v62, %v3030_v2  ;;  %v5243_v25 = vor.u32 %v5654_v37, %v5240_v39  ;;  %v5232_v2 = vld [vmem:[%s6413_s20 + $0x108] sm:$0xf0] }
 0x6e7   : > { %3714 = vmatpush.bf16.msrb.mxu3 %v5339_v60  ;;  %v3174_v41 = vmax.f32 %v3085_v21, 0.0  ;;  %v5235_v4 = vor.u32 %v5652_v31, %v5232_v2  ;;  %v5668_v21 = vld [vmem:[%s6413_s20 + $0x184] sm:$0xf] }
 0x6e8   : > { %v3177_v17 = vmax.f32 %v3049_v47, 0.0  ;;  %v5670_v47 = vld [vmem:[%s6413_s20 + $0x194] sm:$0xf] }
 0x6e9   : > { %3698 = vmatpush.bf16.msrb.mxu2 %v5251_v20 }
 0x6ea   : > { %v7461_v19 = vpack.c.bf16 %v3177_v17, %v3173_v16  ;;  %v3067_v6 = vpop.f32.mrf.mxu2  ;;  %v3086_v23 = vpop.f32.mrf.mxu3  ;;  %v5307_v16 = vor.u32 %v5670_v47, %v5304_v32 }
 0x6eb   : > { %v3068_v56 = vadd.f32 %v3067_v6, %v7411_v40  ;;  %v3098_v57 = vpop.f32.mrf.mxu0  ;;  %v3117_v29 = vpop.f32.mrf.mxu1  ;;  %v5331_v40 = vor.u32 %v5676_v8, %v5328_v7 }
 0x6ec   : > { %3592 = vmatmul.bf16.gmra.mxu0 %v7461_v19  ;;  %v3099_v49 = vadd.f32 %v3098_v57, %v7467_v51 }
 0x6ed   : > { %v3087_v38 = vadd.f32 %v3086_v23, %v3068_v56  ;;  %3715 = vmatpush.bf16.msrb.mxu3 %v5331_v40  ;;  %3699 = vmatpush.bf16.msrb.mxu2 %v5243_v25  ;;  %v5296_v56 = vld [vmem:[%s6413_s20 + $0x188] sm:$0xf0] }
 0x6ee   : > { %v3118_v62 = vadd.f32 %v3117_v29, %v3099_v49  ;;  %v5299_v29 = vor.u32 %v5668_v21, %v5296_v56 }
 0x6ef   : > { %v3178_v43 = vmax.f32 %v3087_v38, 0.0 }
 0x6f0   : > { %v3167_v15 = vmax.f32 %v3118_v62, 0.0 }
 0x6f1   : > { %v7475_v52 = vpack.c.bf16 %v3178_v43, %v3174_v41  ;;  %3716 = vmatpush.bf16.msrb.mxu3 %v5323_v42  ;;  %3700 = vmatpush.bf16.msrb.mxu2 %v5235_v4 }
 0x6f2   : > { %v3136_v45 = vpop.f32.mrf.mxu2  ;;  %v3155_v58 = vpop.f32.mrf.mxu3 }
 0x6f3   : > { %3611 = vmatmul.bf16.gmra.mxu1 %v7475_v52  ;;  %v3100_v30 = vpop.f32.mrf.mxu0  ;;  %v3119_v3 = vpop.f32.mrf.mxu1  ;;  %v3137_v55 = vadd.f32 %v3136_v45, %v7480_v34 }
 0x6f4   : > { %v3101_v59 = vadd.f32 %v3100_v30, %v7467_v51 }
 0x6f5   : > { %3717 = vmatpush.bf16.msrb.mxu3 %v5315_v35  ;;  %v3156_v63 = vadd.f32 %v3155_v58, %v3137_v55 }
 0x6f6   : > { %v3120_v46 = vadd.f32 %v3119_v3, %v3101_v59 }
 0x6f7   : > { %v3168_v27 = vmax.f32 %v3156_v63, 0.0 }
 0x6f8   : > { %v3171_v14 = vmax.f32 %v3120_v46, 0.0 }
 0x6f9   : > { %3718 = vmatpush.bf16.msrb.mxu3 %v5307_v16 }
 0x6fa   : > { %v3183_v17 = vpack.c.bf16 %v3171_v14, %v3167_v15  ;;  %v3138_v18 = vpop.f32.mrf.mxu2  ;;  %v3157_v9 = vpop.f32.mrf.mxu3 }
 0x6fb   : > { %v3139_v6 = vadd.f32 %v3138_v18, %v7480_v34  ;;  %v3103_v23 = vpop.f32.mrf.mxu0  ;;  %v3122_v60 = vpop.f32.mrf.mxu1 }
 0x6fc   : > { %3625 = vmatmul.bf16.vlgmr.msra.gmra.mxu2 %v3183_v17  ;;  %3663 = vmatmul.bf16.vlgmr.msrb.gmra.mxu0 %v7432_v5  ;;  %v3104_v11 = vadd.f32 %v3103_v23, %v7467_v51 }
 0x6fd   : > { %v3158_v57 = vadd.f32 %v3157_v9, %v3139_v6  ;;  %3719 = vmatpush.bf16.msrb.mxu3 %v5299_v29 }
 0x6fe   : > { %v3123_v41 = vadd.f32 %v3122_v60, %v3104_v11 }
 0x6ff   : > { %v3172_v33 = vmax.f32 %v3158_v57, 0.0 }
 0x700   : > { %v3175_v49 = vmax.f32 %v3123_v41, 0.0 }
 0x701   : > { %v3184_v38 = vpack.c.bf16 %v3172_v33, %v3168_v27 }
 0x702   : > { %v3141_v8 = vpop.f32.mrf.mxu2  ;;  %v3160_v7 = vpop.f32.mrf.mxu3 }
 0x703   : > { %3644 = vmatmul.bf16.vlgmr.msra.gmra.mxu3 %v3184_v38  ;;  %3682 = vmatmul.bf16.vlgmr.msrb.gmra.mxu1 %v7446_v10  ;;  %v3105_v40 = vpop.f32.mrf.mxu0  ;;  %v3124_v43 = vpop.f32.mrf.mxu1  ;;  %v3142_v48 = vadd.f32 %v3141_v8, %v7480_v34 }
 0x704   : > { %v3106_v5 = vadd.f32 %v3105_v40, %v7467_v51 }
 0x705   : > { %v3161_v45 = vadd.f32 %v3160_v7, %v3142_v48 }
 0x706   : > { %v3125_v22 = vadd.f32 %v3124_v43, %v3106_v5 }
 0x707   : > { %v3176_v30 = vmax.f32 %v3161_v45, 0.0 }
 0x708   : > { %v3179_v20 = vmax.f32 %v3125_v22, 0.0 }
 0x70a   : > { %v3187_v53 = vpack.c.bf16 %v3179_v20, %v3175_v49  ;;  %v3143_v54 = vpop.f32.mrf.mxu2  ;;  %v3162_v42 = vpop.f32.mrf.mxu3 }
 0x70b   : > { %v3144_v58 = vadd.f32 %v3143_v54, %v7480_v34  ;;  %v3253_v34 = vld [vmem:[%s863_s3] sm:$0x3] }
 0x70c   : > { %3630 = vmatmul.bf16.gmra.mxu2 %v3187_v53  ;;  %3668 = vmatmul.bf16.gmra.mxu0 %v7461_v19  ;;  %v3255_v62 = vperm.slane %v3253_v34, 0 }
 0x70d   : > { %v3163_v10 = vadd.f32 %v3162_v42, %v3144_v58 }
 0x70f   : > { %v3180_v3 = vmax.f32 %v3163_v10, 0.0 }
 0x711   : > { %v3188_v51 = vpack.c.bf16 %v3180_v3, %v3176_v30 }
 0x713   : > { %3649 = vmatmul.bf16.gmra.mxu3 %v3188_v51  ;;  %3687 = vmatmul.bf16.gmra.mxu1 %v7475_v52 }
 0x71c   : > { %3701 = vmatmul.bf16.vlgmr.msrb.gmra.mxu2 %v3183_v17 }
 0x723   : > { %3720 = vmatmul.bf16.vlgmr.msrb.gmra.mxu3 %v3184_v38  ;;  %v3256_v38 = vperm.slane %v3253_v34, 1 }
 0x72c   : > { %3706 = vmatmul.bf16.gmra.mxu2 %v3187_v53 }
 0x733   : > { %3725 = vmatmul.bf16.gmra.mxu3 %v3188_v51 }
 0x759   : > { %v3588_v37 = vpop.f32.mrf.mxu0 }
 0x75a   : > { %v3589_v25 = vadd.f32 %v3588_v37, %v3255_v62 }
 0x760   : > { %v3607_v39 = vpop.f32.mrf.mxu1 }
 0x761   : > { %v3590_v61 = vpop.f32.mrf.mxu0  ;;  %v3608_v28 = vadd.f32 %v3607_v39, %v3589_v25 }
 0x762   : > { %v3591_v47 = vadd.f32 %v3590_v61, %v3255_v62 }
 0x768   : > { %v3609_v19 = vpop.f32.mrf.mxu1 }
 0x769   : > { %v3593_v31 = vpop.f32.mrf.mxu0  ;;  %v3610_v55 = vadd.f32 %v3609_v19, %v3591_v47 }
 0x76a   : > { %v3594_v63 = vadd.f32 %v3593_v31, %v3255_v62 }
 0x770   : > { %v3612_v52 = vpop.f32.mrf.mxu1 }
 0x771   : > { %v3595_v14 = vpop.f32.mrf.mxu0  ;;  %v3613_v23 = vadd.f32 %v3612_v52, %v3594_v63 }
 0x772   : > { %v3596_v29 = vadd.f32 %v3595_v14, %v3255_v62 }
 0x778   : > { %v3614_v9 = vpop.f32.mrf.mxu1 }
 0x779   : > { %v3664_v57 = vpop.f32.mrf.mxu0  ;;  %v3615_v11 = vadd.f32 %v3614_v9, %v3596_v29 }
 0x77a   : > { %v3665_v41 = vadd.f32 %v3664_v57, %v3256_v38 }
 0x77f   : > { %v3626_v59 = vpop.f32.mrf.mxu2 }
 0x780   : > { %v3627_v2 = vadd.f32 %v3626_v59, %v3608_v28  ;;  %v3683_v33 = vpop.f32.mrf.mxu1 }
 0x781   : > { %v3666_v43 = vpop.f32.mrf.mxu0  ;;  %v3684_v22 = vadd.f32 %v3683_v33, %v3665_v41 }
 0x782   : > { %v3667_v54 = vadd.f32 %v3666_v43, %v3256_v38 }
 0x786   : > { %v3645_v35 = vpop.f32.mrf.mxu3 }
 0x787   : > { %v3646_v46 = vadd.f32 %v3645_v35, %v3627_v2  ;;  %v3628_v4 = vpop.f32.mrf.mxu2 }
 0x788   : > { %v3629_v15 = vadd.f32 %v3628_v4, %v3610_v55  ;;  %v3685_v48 = vpop.f32.mrf.mxu1 }
 0x789   : > { %v7510_v32 = vadd.f32 %v3646_v46, %v7038_v44  ;;  %v3686_v58 = vadd.f32 %v3685_v48, %v3667_v54  ;;  %v3669_v42 = vpop.f32.mrf.mxu0 }
 0x78a   : > { %v3670_v37 = vadd.f32 %v3669_v42, %v3256_v38 }
 0x78b   : > { %3739 = vst [vmem:[#allocation2 + $0x30] sm:$0xff] %v7510_v32 }
 0x78e   : > { %v3647_v16 = vpop.f32.mrf.mxu3 }
 0x78f   : > { %v3648_v17 = vadd.f32 %v3647_v16, %v3629_v15  ;;  %v3631_v18 = vpop.f32.mrf.mxu2 }
 0x790   : > { %v3632_v60 = vadd.f32 %v3631_v18, %v3613_v23  ;;  %v3688_v30 = vpop.f32.mrf.mxu1 }
 0x791   : > { %v7514_v6 = vadd.f32 %v3648_v17, %v7044_v36  ;;  %v3689_v34 = vadd.f32 %v3688_v30, %v3670_v37  ;;  %v3671_v19 = vpop.f32.mrf.mxu0 }
 0x792   : > { %v3672_v28 = vadd.f32 %v3671_v19, %v3256_v38 }
 0x793   : > { %3741 = vst [vmem:[#allocation2 + $0x18] sm:$0xff] %v7514_v6 }
 0x796   : > { %v3650_v21 = vpop.f32.mrf.mxu3 }
 0x797   : > { %v3651_v44 = vadd.f32 %v3650_v21, %v3632_v60  ;;  %v3633_v56 = vpop.f32.mrf.mxu2 }
 0x798   : > { %v3634_v8 = vadd.f32 %v3633_v56, %v3615_v11  ;;  %v3690_v25 = vpop.f32.mrf.mxu1 }
 0x799   : > { %v3735_v27 = vadd.f32 %v3651_v44, %v7050_v12  ;;  %v3691_v2 = vadd.f32 %v3690_v25, %v3672_v28 }
 0x79b   : > { %3743 = vst [vmem:[#allocation2 + $0x8] sm:$0xff] %v3735_v27 }
 0x79e   : > { %v3652_v7 = vpop.f32.mrf.mxu3 }
 0x79f   : > { %v3653_v40 = vadd.f32 %v3652_v7, %v3634_v8  ;;  %v3702_v36 = vpop.f32.mrf.mxu2 }
 0x7a0   : > { %v3703_v49 = vadd.f32 %v3702_v36, %v3684_v22 }
 0x7a1   : > { %v7519_v5 = vadd.f32 %v3653_v40, %v7056_v24 }
 0x7a3   : > { %3745 = vst [vmem:[#allocation2 + $0x28] sm:$0xff] %v7519_v5 }
 0x7a6   : > { %v3721_v20 = vpop.f32.mrf.mxu3 }
 0x7a7   : > { %v3722_v12 = vadd.f32 %v3721_v20, %v3703_v49  ;;  %v3704_v53 = vpop.f32.mrf.mxu2 }
 0x7a8   : > { %v3705_v10 = vadd.f32 %v3704_v53, %v3686_v58 }
 0x7a9   : > { %v3732_v45 = vadd.f32 %v3722_v12, %v7040_v50 }
 0x7ab   : > { %3740 = vst [vmem:[#allocation2] sm:$0xff] %v3732_v45 }
 0x7ae   : > { %v3723_v3 = vpop.f32.mrf.mxu3 }
 0x7af   : > { %v3724_v24 = vadd.f32 %v3723_v3, %v3705_v10  ;;  %v3707_v51 = vpop.f32.mrf.mxu2 }
 0x7b0   : > { %v3708_v61 = vadd.f32 %v3707_v51, %v3689_v34 }
 0x7b1   : > { %v3734_v39 = vadd.f32 %v3724_v24, %v7046_v1 }
 0x7b3   : > { %3742 = vst [vmem:[#allocation2 + $0x10] sm:$0xff] %v3734_v39 }
 0x7b6   : > { %v3726_v62 = vpop.f32.mrf.mxu3 }
 0x7b7   : > { %v3727_v59 = vadd.f32 %v3726_v62, %v3708_v61  ;;  %v3709_v31 = vpop.f32.mrf.mxu2 }
 0x7b8   : > { %v3710_v52 = vadd.f32 %v3709_v31, %v3691_v2 }
 0x7b9   : > { %v3736_v50 = vadd.f32 %v3727_v59, %v7052_v13 }
 0x7bb   : > { %3744 = vst [vmem:[#allocation2 + $0x20] sm:$0xff] %v3736_v50 }
 0x7be   : > { %v3728_v35 = vpop.f32.mrf.mxu3 }
 0x7bf   : > { %v3729_v46 = vadd.f32 %v3728_v35, %v3710_v52  ;;  %3750 = sbr.rel (%p5356_p5) target bundleno = 2413 (0x96d), region = 124 }
 0x7c1   : > { %v3738_v4 = vadd.f32 %v3729_v46, %v7058_v0 }
 0x7c3   : > { %3746 = vst [vmem:[#allocation2 + $0x38] sm:$0xff] %v3738_v4 }
 0x7c4   : > { %v3759_v1 = vadd.f32 %v3736_v50, %v3735_v27  ;;  %v3753_v47 = vadd.f32 %v3732_v45, %v7510_v32  ;;  %v3762_v55 = vadd.f32 %v3738_v4, %v7519_v5  ;;  %v3756_v13 = vadd.f32 %v3734_v39, %v7514_v6  ;;  %v5699_v48 = vld [vmem:[%s7727_s26 + $0x78] sm:$0xff]  ;;  %v5690_v49 = vld [vmem:[%s7727_s26 + $0x30] sm:$0xff]  ;;  %v5689_v12 = vld [vmem:[%s7727_s26 + $0x28] sm:$0xff] }
 0x7c5   : > { %4034 = vmatpush.bf16.msra.mxu1 %v5699_v48  ;;  %5708 = vmatpush.bf16.msra.mxu3 %v5699_v48  ;;  %v5698_v20 = vld [vmem:[%s7727_s26 + $0x70] sm:$0xff]  ;;  %v5697_v53 = vld [vmem:[%s7727_s26 + $0x68] sm:$0xff]  ;;  %v5688_v54 = vld [vmem:[%s7727_s26 + $0x20] sm:$0xff] }
 0x7c6   : > { %3760 = vadd.xlane.f32.xlu0 %v3759_v1  ;;  %3754 = vadd.xlane.f32.xlu1 %v3753_v47  ;;  %v5687_v58 = vld [vmem:[%s7727_s26 + $0x18] sm:$0xff]  ;;  %v5686_v10 = vld [vmem:[%s7727_s26 + $0x10] sm:$0xff]  ;;  %v5685_v3 = vld [vmem:[%s7727_s26 + $0x8] sm:$0xff] }
 0x7c7   : > { %v5695_v42 = vld [vmem:[%s7727_s26 + $0x58] sm:$0xff]  ;;  %v5694_v30 = vld [vmem:[%s7727_s26 + $0x50] sm:$0xff]  ;;  %v5693_v24 = vld [vmem:[%s7727_s26 + $0x48] sm:$0xff] }
 0x7c8   : > { %v5684_v61 = vld [vmem:[%s7727_s26] sm:$0xff] }
 0x7c9   : > { %4035 = vmatpush.bf16.msra.mxu1 %v5698_v20  ;;  %5709 = vmatpush.bf16.msra.mxu3 %v5698_v20  ;;  %v5692_v19 = vld [vmem:[%s7727_s26 + $0x40] sm:$0xff] }
 0x7cd   : > { %4036 = vmatpush.bf16.msra.mxu1 %v5697_v53  ;;  %5710 = vmatpush.bf16.msra.mxu3 %v5697_v53 }
 0x7ce   : > { %3763 = vadd.xlane.f32.xlu0 %v3762_v55  ;;  %3757 = vadd.xlane.f32.xlu1 %v3756_v13 }
 0x839   : > { %v3761_v15 = vpop.xlane.xlu0 %3760  ;;  %v3755_v14 = vpop.xlane.xlu1 %3754 }
 0x83a   : > { %v3767_v16 = vmul.f32 %v3761_v15, %v6501_v26  ;;  %v3765_v0 = vmul.f32 %v3755_v14, %v6501_v26 }
 0x83c   : > { %v7532_v17 = vsub.f32 %v3735_v27, %v3767_v16  ;;  %v7534_v18 = vsub.f32 %v3736_v50, %v3767_v16  ;;  %v7537_v9 = vsub.f32 %v7510_v32, %v3765_v0  ;;  %v7539_v63 = vsub.f32 %v3732_v45, %v3765_v0  ;;  %v5696_v45 = vld [vmem:[%s7727_s26 + $0x60] sm:$0xff] }
 0x83d   : > { %4037 = vmatpush.bf16.msra.mxu1 %v5696_v45  ;;  %5711 = vmatpush.bf16.msra.mxu3 %v5696_v45 }
 0x83e   : > { %v3781_v23 = vmul.f32 %v7532_v17, %v7532_v17  ;;  %v3782_v60 = vmul.f32 %v7534_v18, %v7534_v18  ;;  %v3777_v21 = vmul.f32 %v7537_v9, %v7537_v9  ;;  %v3778_v44 = vmul.f32 %v7539_v63, %v7539_v63 }
 0x840   : > { %v3791_v56 = vadd.f32 %v3782_v60, %v3781_v23  ;;  %v3785_v57 = vadd.f32 %v3778_v44, %v3777_v21 }
 0x841   : > { %v3764_v29 = vpop.xlane.xlu0 %3763  ;;  %v3758_v27 = vpop.xlane.xlu1 %3757  ;;  %4038 = vmatpush.bf16.msra.mxu1 %v5695_v42  ;;  %5712 = vmatpush.bf16.msra.mxu3 %v5695_v42 }
 0x842   : > { %v3768_v32 = vmul.f32 %v3764_v29, %v6501_v26  ;;  %v3766_v33 = vmul.f32 %v3758_v27, %v6501_v26  ;;  %3792 = vadd.xlane.f32.xlu2 %v3791_v56  ;;  %3786 = vadd.xlane.f32.xlu0 %v3785_v57  ;;  %v3751_v57 = vld [vmem:[#allocation11] sm:$0x3] }
 0x844   : > { %v7552_v11 = vsub.f32 %v7519_v5, %v3768_v32  ;;  %v7554_v38 = vsub.f32 %v3738_v4, %v3768_v32  ;;  %v7557_v8 = vsub.f32 %v7514_v6, %v3766_v33  ;;  %v7559_v7 = vsub.f32 %v3734_v39, %v3766_v33  ;;  %v5691_v6 = vld [vmem:[%s7727_s26 + $0x38] sm:$0xff] }
 0x845   : > { %4015 = vmatpush.bf16.msra.mxu0 %v5691_v6  ;;  %5700 = vmatpush.bf16.msra.mxu2 %v5691_v6  ;;  %v3752_v6 = vld [vmem:[#allocation12] sm:$0x3] }
 0x846   : > { %v3783_v40 = vmul.f32 %v7552_v11, %v7552_v11  ;;  %v3784_v36 = vmul.f32 %v7554_v38, %v7554_v38  ;;  %v3779_v41 = vmul.f32 %v7557_v8, %v7557_v8  ;;  %v3780_v5 = vmul.f32 %v7559_v7, %v7559_v7  ;;  %4039 = vmatpush.bf16.msra.mxu1 %v5694_v30 }
 0x847   : > { %5713 = vmatpush.bf16.msra.mxu3 %v5694_v30  ;;  %v3867_v45 = vperm.slane %v3752_v6, 0 }
 0x848   : > { %v3794_v43 = vadd.f32 %v3784_v36, %v3783_v40  ;;  %v3788_v22 = vadd.f32 %v3780_v5, %v3779_v41  ;;  %v3854_v36 = vperm.slane %v3751_v57, 0 }
 0x849   : > { %4016 = vmatpush.bf16.msra.mxu0 %v5690_v49  ;;  %5701 = vmatpush.bf16.msra.mxu2 %v5690_v49 }
 0x84a   : > { %3795 = vadd.xlane.f32.xlu2 %v3794_v43  ;;  %3789 = vadd.xlane.f32.xlu1 %v3788_v22  ;;  %v3855_v43 = vperm.slane %v3751_v57, 1 }
 0x84b   : > { %4040 = vmatpush.bf16.msra.mxu1 %v5693_v24  ;;  %5714 = vmatpush.bf16.msra.mxu3 %v5693_v24 }
 0x84d   : > { %4017 = vmatpush.bf16.msra.mxu0 %v5689_v12  ;;  %5702 = vmatpush.bf16.msra.mxu2 %v5689_v12 }
 0x84f   : > { %4041 = vmatpush.bf16.msra.mxu1 %v5692_v19  ;;  %5715 = vmatpush.bf16.msra.mxu3 %v5692_v19 }
 0x851   : > { %4018 = vmatpush.bf16.msra.mxu0 %v5688_v54  ;;  %5703 = vmatpush.bf16.msra.mxu2 %v5688_v54 }
 0x855   : > { %4019 = vmatpush.bf16.msra.mxu0 %v5687_v58  ;;  %5704 = vmatpush.bf16.msra.mxu2 %v5687_v58 }
 0x859   : > { %4020 = vmatpush.bf16.msra.mxu0 %v5686_v10  ;;  %5705 = vmatpush.bf16.msra.mxu2 %v5686_v10 }
 0x85d   : > { %4021 = vmatpush.bf16.msra.mxu0 %v5685_v3  ;;  %5706 = vmatpush.bf16.msra.mxu2 %v5685_v3 }
 0x861   : > { %4022 = vmatpush.bf16.msra.mxu0 %v5684_v61  ;;  %5707 = vmatpush.bf16.msra.mxu2 %v5684_v61 }
 0x8b5   : > { %v3793_v51 = vpop.xlane.xlu2 %3792  ;;  %v3787_v37 = vpop.xlane.xlu0 %3786 }
 0x8b6   : > { %v3799_v39 = vmul.f32 %v3793_v51, %v6501_v26  ;;  %v3797_v34 = vmul.f32 %v3787_v37, %v6501_v26 }
 0x8b8   : > { %v3803_v62 = vadd.f32 1e-05, %v3799_v39  ;;  %v3801_v59 = vadd.f32 1e-05, %v3797_v34 }
 0x8ba   : > { %5868 = vrsqrt.f32 %v3803_v62  ;;  %vm3831_vm11 = vweird.f32 %v3803_v62  ;;  %vm3811_vm12 = vweird.f32 %v3801_v59 }
 0x8bb   : > { %5870 = vrsqrt.f32 %v3801_v59 }
 0x8bd   : > { %v3796_v25 = vpop.xlane.xlu2 %3795  ;;  %v3790_v28 = vpop.xlane.xlu1 %3789 }
 0x8be   : > { %v3800_v50 = vmul.f32 %v3796_v25, %v6501_v26  ;;  %v3798_v31 = vmul.f32 %v3790_v28, %v6501_v26 }
 0x8c0   : > { %v5869_v2 = vpop.eup %5868  ;;  %v3804_v52 = vadd.f32 1e-05, %v3800_v50  ;;  %v3802_v35 = vadd.f32 1e-05, %v3798_v31 }
 0x8c1   : > { %v5871_v46 = vpop.eup %5870  ;;  %v3826_v4 = vmul.f32 %v5869_v2, %v3803_v62  ;;  %vm3832_vm10 = vweird.f32 %v5869_v2 }
 0x8c2   : > { %v3806_v1 = vmul.f32 %v5871_v46, %v3801_v59  ;;  %5872 = vrsqrt.f32 %v3804_v52  ;;  %vm3812_vm13 = vweird.f32 %v5871_v46  ;;  %vm3833_vm14 = vmor %vm3831_vm11, %vm3832_vm10  ;;  %vm3821_vm1 = vweird.f32 %v3802_v35 }
 0x8c3   : > { %v3827_v47 = vmul.f32 %v5869_v2, %v3826_v4  ;;  %5874 = vrsqrt.f32 %v3802_v35  ;;  %vm3813_vm15 = vmor %vm3811_vm12, %vm3812_vm13  ;;  %vm3841_vm3 = vweird.f32 %v3804_v52 }
 0x8c4   : > { %v3807_v55 = vmul.f32 %v5871_v46, %v3806_v1 }
 0x8c5   : > { %v3828_v13 = vmul.f32 0.5, %v3827_v47 }
 0x8c6   : > { %v3808_v15 = vmul.f32 0.5, %v3807_v55 }
 0x8c7   : > { %v3829_v14 = vsub.f32 1.5, %v3828_v13 }
 0x8c8   : > { %v5873_v16 = vpop.eup %5872  ;;  %v3809_v0 = vsub.f32 1.5, %v3808_v15 }
 0x8c9   : > { %v5875_v23 = vpop.eup %5874  ;;  %v3830_v60 = vmul.f32 %v5869_v2, %v3829_v14  ;;  %v3836_v26 = vmul.f32 %v5873_v16, %v3804_v52  ;;  %vm3842_vm0 = vweird.f32 %v5873_v16 }
 0x8ca   : > { %v3810_v21 = vmul.f32 %v5871_v46, %v3809_v0  ;;  %v3816_v44 = vmul.f32 %v5875_v23, %v3802_v35  ;;  %vm3822_vm2 = vweird.f32 %v5875_v23  ;;  %vm3843_vm4 = vmor %vm3841_vm3, %vm3842_vm0 }
 0x8cb   : > { %v3837_v56 = vmul.f32 %v5873_v16, %v3836_v26  ;;  %v3834_v27 = vsel %vm3833_vm14, %v5869_v2, %v3830_v60  ;;  %vm3823_vm5 = vmor %vm3821_vm1, %vm3822_vm2 }
 0x8cc   : > { %v3817_v29 = vmul.f32 %v5875_v23, %v3816_v44  ;;  %v3814_v33 = vsel %vm3813_vm15, %v5871_v46, %v3810_v21  ;;  %v3849_v5 = vmul.f32 %v3834_v27, %v7532_v17  ;;  %v3850_v48 = vmul.f32 %v3834_v27, %v7534_v18 }
 0x8cd   : > { %v3838_v32 = vmul.f32 0.5, %v3837_v56  ;;  %v3845_v20 = vmul.f32 %v3814_v33, %v7537_v9  ;;  %v3846_v12 = vmul.f32 %v3814_v33, %v7539_v63  ;;  %v3868_v17 = vperm.slane %v3752_v6, 1 }
 0x8ce   : > { %v3818_v40 = vmul.f32 0.5, %v3817_v29  ;;  %v3862_v58 = vmul.f32 %v3854_v36, %v3849_v5  ;;  %v3863_v3 = vmul.f32 %v3855_v43, %v3850_v48 }
 0x8cf   : > { %v3839_v41 = vsub.f32 1.5, %v3838_v32  ;;  %v3858_v24 = vmul.f32 %v3854_v36, %v3845_v20  ;;  %v3859_v51 = vmul.f32 %v3855_v43, %v3846_v12 }
 0x8d0   : > { %v3819_v22 = vsub.f32 1.5, %v3818_v40  ;;  %v3875_v61 = vadd.f32 %v3867_v45, %v3862_v58  ;;  %v3876_v62 = vadd.f32 %v3868_v17, %v3863_v3 }
 0x8d1   : > { %v3840_v49 = vmul.f32 %v5873_v16, %v3839_v41  ;;  %v3871_v25 = vadd.f32 %v3867_v45, %v3858_v24 }
 0x8d2   : > { %v3820_v53 = vmul.f32 %v5875_v23, %v3819_v22 }
 0x8d3   : > { %v3844_v54 = vsel %vm3843_vm4, %v5873_v16, %v3840_v49 }
 0x8d4   : > { %v3824_v42 = vsel %vm3823_vm5, %v5875_v23, %v3820_v53  ;;  %v3851_v10 = vmul.f32 %v3844_v54, %v7552_v11  ;;  %v3852_v30 = vmul.f32 %v3844_v54, %v7554_v38  ;;  %v3872_v11 = vadd.f32 %v3868_v17, %v3859_v51 }
 0x8d5   : > { %v3847_v18 = vmul.f32 %v3824_v42, %v7557_v8  ;;  %v3848_v9 = vmul.f32 %v3824_v42, %v7559_v7  ;;  %v5867_v7 = vld [vmem:[%s7728_s30] ss:$0 sm:$0xff] }
 0x8d6   : > { %v3864_v63 = vmul.f32 %v3854_v36, %v3851_v10  ;;  %v3865_v37 = vmul.f32 %v3855_v43, %v3852_v30 }
 0x8d7   : > { %v3860_v39 = vmul.f32 %v3854_v36, %v3847_v18  ;;  %v3861_v34 = vmul.f32 %v3855_v43, %v3848_v9 }
 0x8d8   : > { %v3877_v19 = vadd.f32 %v3867_v45, %v3864_v63  ;;  %v3878_v59 = vadd.f32 %v3868_v17, %v3865_v37 }
 0x8d9   : > { %v3873_v28 = vadd.f32 %v3867_v45, %v3860_v39  ;;  %v3874_v50 = vadd.f32 %v3868_v17, %v3861_v34 }
 0x8da   : > { %v3881_v38 = vpack.c.bf16 %v3877_v19, %v3875_v61  ;;  %v3882_v31 = vpack.c.bf16 %v3878_v59, %v3876_v62 }
 0x8db   : > { %v3879_v2 = vpack.c.bf16 %v3873_v28, %v3871_v25  ;;  %v3880_v8 = vpack.c.bf16 %v3874_v50, %v3872_v11 }
 0x8dc   : > { %4028 = vmatmul.bf16.vlgmr.msra.gmra.mxu2 %v3881_v38  ;;  %4047 = vmatmul.bf16.vlgmr.msra.gmra.mxu3 %v3882_v31 }
 0x8dd   : > { %4023 = vmatmul.bf16.vlgmr.msra.gmra.mxu0 %v3879_v2  ;;  %4042 = vmatmul.bf16.vlgmr.msra.gmra.mxu1 %v3880_v8 }
 0x95a   : > { %v4024_v52 = vpop.f32.mrf.mxu0  ;;  %v4043_v35 = vpop.f32.mrf.mxu1 }
 0x95b   : > { %v4025_v46 = vadd.f32 %v5867_v7, %v4024_v52 }
 0x95d   : > { %v4044_v4 = vadd.f32 %v4043_v35, %v4025_v46 }
 0x95f   : > { %4053 = vst [vmem:[#allocation14] sm:$0xff] %v4044_v4  ;;  %v4029_v1 = vpop.f32.mrf.mxu2  ;;  %v4048_v47 = vpop.f32.mrf.mxu3 }
 0x960   : > { %v4030_v55 = vadd.f32 %v5867_v7, %v4029_v1 }
 0x962   : > { %v4049_v13 = vadd.f32 %v4048_v47, %v4030_v55  ;;  %v4026_v15 = vpop.f32.mrf.mxu0  ;;  %v4045_v16 = vpop.f32.mrf.mxu1 }
 0x963   : > { %v4027_v14 = vadd.f32 %v5867_v7, %v4026_v15 }
 0x964   : > { %4055 = vst [vmem:[#allocation14 + $0x10] sm:$0xff] %v4049_v13 }
 0x965   : > { %v4046_v0 = vadd.f32 %v4045_v16, %v4027_v14 }
 0x967   : > { %4054 = vst [vmem:[#allocation14 + $0x8] sm:$0xff] %v4046_v0  ;;  %v4031_v23 = vpop.f32.mrf.mxu2  ;;  %v4050_v26 = vpop.f32.mrf.mxu3 }
 0x968   : > { %v4032_v60 = vadd.f32 %v5867_v7, %v4031_v23 }
 0x96a   : > { %v4051_v21 = vadd.f32 %v4050_v26, %v4032_v60 }
 0x96c   : > { %4056 = vst [vmem:[#allocation14 + $0x18] sm:$0xff] %v4051_v21 }
 0x96d PF: > { %p5765_p8 = scmp.eq.s32.totalorder %s6264_s0, 1  ;;  %s6147_s9 = smov [#allocation14]  }
 0x96e   : > { %s4062_s10 = sshll.u32 %s6147_s9, 4  ;;  %s7729_s18 = sld [smem:[#allocation42_spill]]  ;;  %s4063_s10 = int_to_ptr.vmem [resolvable:$true] %s4062_s10 }
 0x96f   : > { %s6148_s4 = smov 128   ;;  %s6149_s28 = smov 8  }
 0x974   : > { %s4064_s27 = sshll.u32 %s7729_s18, 4  ;;  %s4065_s27 = int_to_ptr.hbm [resolvable:$true] %s4064_s27 }
 0x975   : > { %5737 = dma.vmem_to_hbm [thread:$0]  (%p5765_p8), %s4063_s10, 512, %s4065_s27, [#allocation5], %s6148_s4, %s6148_s4, %s6149_s28  }
 0x976   : > { %6121 = dma.done.wait (%p5765_p8), [#allocation5], 512  }
 0x977   : > { %6123 = vsyncadd (%p5765_p8), [#allocation5], 4294966784 }
 0x978 PF: > { %s7730_s30 = sld [smem:[#allocation23_spill]] }
 0x979   : > { %s7731_s27 = sld [smem:[#allocation21_spill]] }
 0x97a   : > { %s7732_s28 = sld [smem:[#allocation22_spill]] }
 0x97b   : > { %s7733_s29 = sld [smem:[#allocation24_spill]] }
 0x97e   : > { %p36_p9 = scmp.ge.s32.totalorder %s7730_s30, 4  }
 0x980   :  { %38 = sbr.rel (!%p36_p9) target bundleno = 28 (0x1c), region = 206 }
 0x985   :  { %4081 = vsyncpa [#allocation4], 1 }
 0x986   :  { %4083 = vsyncpa [#allocation4 + $0x1], 1 }
 0x987   :  { %4084 = vsyncpa [#allocation7], 1 }
 0x988   :  { %4086 = vsyncpa [#allocation7 + $0x1], 1 }
 0x989   :  { %4087 = vsyncpa [#allocation10], 1 }
 0x98a   :  { %4089 = vsyncpa [#allocation10 + $0x1], 1 }
 0x98b   :  { %4090 = vsyncpa [#allocation13], 1 }
 0x98c   :  { %4091 = vsyncpa [#allocation5], 1 }
 0x98d   :  { %4093 = vsyncpa [#allocation5 + $0x1], 1 }

</bundles_post_ra>
